<compile_context>
chip_gen: v7x
topology: tpu7x:2x2x1
jax: 0.10.0
libtpu: 0.0.40
codegen_flags: <defaults>
</compile_context>

<pallas_src>
import functools

import jax
import jax.numpy as jnp
from jax.experimental import pallas as pl
from jax.experimental.pallas import tpu as pltpu

_EPS = 1e-5


def _store_padded(h_ref, act, halo, L):
    """Write an activation into a halo-padded VMEM scratch, zeroing only the halos."""
    Bv = h_ref.shape[0]
    Lp = h_ref.shape[1]
    Cv = h_ref.shape[2]
    if halo > 0:
        zeros_halo = jnp.zeros((Bv, halo, Cv), h_ref.dtype)
        h_ref[:, 0:halo, :] = zeros_halo
        h_ref[:, halo + L:Lp, :] = zeros_halo
    h_ref[:, halo:halo + L, :] = act.astype(h_ref.dtype)


def _fused_kernel(x_ref,
                  w1_ref, w2_ref, w3_ref, w4_ref,
                  g1_ref, b1_ref, g2_ref, b2_ref, g3_ref, b3_ref, g4_ref, b4_ref,
                  o_ref,
                  h0, h1, h2, h3,
                  *, B, L):
    """Whole network in one kernel.

    x_ref : (B, L, 29)  bf16, channels-last
    wX_ref: conv taps, (K, Cin, Cout) bf16 for layers 1-3; (3, 16) f32 for layer 4
    gX/bX : BatchNorm gamma/beta, (1, 1, Cout) f32 (layer 4: (1, 1) f32)
    o_ref : (B, L) f32  (single output channel, lane-dense along L)
    h0-h3 : VMEM scratch holding zero-padded (haloed) activations in bf16
    """
    f32 = jnp.float32

    # -------- stage 0: zero-padded input (halo = 5) --------
    _store_padded(h0, x_ref[...], 5, L)

    def conv(h_ref, w_ref, K):
        """Conv1d over a padded VMEM activation: K shifted (B,L,Cin)x(Cin,Cout) MXU matmuls."""
        Cout = w_ref.shape[-1]
        acc = jnp.zeros((B, L, Cout), f32)
        for t in range(K):                                # unrolled at trace time
            acc = acc + jax.lax.dot_general(
                h_ref[:, t:t + L, :], w_ref[t],
                dimension_numbers=(((2,), (0,)), ((), ())),
                preferred_element_type=f32)
        return acc

    def bn_relu(acc, g_ref, b_ref):
        """Batch-stat BatchNorm (one-pass sum/sumsq) folded into scale/shift, + ReLU."""
        n = acc.shape[0] * acc.shape[1]
        s = jnp.sum(acc, axis=(0, 1), keepdims=True)
        ss = jnp.sum(acc * acc, axis=(0, 1), keepdims=True)
        mean = s * (1.0 / n)
        var = jnp.maximum(ss * (1.0 / n) - mean * mean, 0.0)
        scale = g_ref[...] * jax.lax.rsqrt(var + _EPS)
        shift = b_ref[...] - mean * scale
        return jnp.maximum(acc * scale + shift, 0.0)

    # -------- layer 1: Conv(29->64, K=11) + BN + ReLU --------
    a1 = bn_relu(conv(h0, w1_ref, 11), g1_ref, b1_ref)    # (B, L, 64) f32
    _store_padded(h1, a1, 4, L)

    # -------- layer 2: Conv(64->32, K=9) + BN + ReLU --------
    a2 = bn_relu(conv(h1, w2_ref, 9), g2_ref, b2_ref)     # (B, L, 32) f32
    _store_padded(h2, a2, 3, L)

    # -------- layer 3: Conv(32->16, K=7) + BN + ReLU --------
    a3 = bn_relu(conv(h2, w3_ref, 7), g3_ref, b3_ref)     # (B, L, 16) f32
    _store_padded(h3, a3, 1, L)

    # -------- layer 4: Conv(16->1, K=3) + BN(1) + Sigmoid, lane-dense output --------
    w4 = w4_ref[...]                                      # (3, 16) f32
    z = jnp.zeros((B, L), f32)
    for t in range(3):
        wt = w4[t].reshape(1, 1, 16)
        z = z + jnp.sum(h3[:, t:t + L, :].astype(f32) * wt, axis=-1)

    n = B * L
    s = jnp.sum(z, axis=(0, 1), keepdims=True)            # (1, 1)
    ss = jnp.sum(z * z, axis=(0, 1), keepdims=True)
    mean = s * (1.0 / n)
    var = jnp.maximum(ss * (1.0 / n) - mean * mean, 0.0)
    scale = g4_ref[...] * jax.lax.rsqrt(var + _EPS)
    shift = b4_ref[...] - mean * scale
    o_ref[...] = jax.nn.sigmoid(z * scale + shift).astype(o_ref.dtype)


# ----------------------- parameter construction (deterministic) -----------------------

_LAYER_CFG = [
    # (Cin, Cout, K)
    (29, 64, 11),
    (64, 32, 9),
    (32, 16, 7),
    (16, 1, 3),
]


def init_params(seed=0):
    key = jax.random.PRNGKey(seed)
    params = []
    for (cin, cout, k) in _LAYER_CFG:
        key, kw, kb = jax.random.split(key, 3)
        fan_in = cin * k
        bound = 1.0 / jnp.sqrt(fan_in)
        # PyTorch Conv1d weight is (Cout, Cin, K); store as (K, Cin, Cout) for the kernel.
        w_torch = jax.random.uniform(kw, (cout, cin, k), jnp.float32, -bound, bound)
        w = jnp.transpose(w_torch, (2, 1, 0))
        # Conv bias is generated for module fidelity but NOT used: under batch-stat
        # BatchNorm the bias cancels exactly ((acc+b) - mean(acc+b) == acc - mean(acc)).
        b = jax.random.uniform(kb, (cout,), jnp.float32, -bound, bound)
        gamma = jnp.ones((cout,), jnp.float32)   # BatchNorm1d default init
        beta = jnp.zeros((cout,), jnp.float32)
        params.append(dict(w=w, b=b, gamma=gamma, beta=beta))
    return params


# ----------------------- wrapper -----------------------

def baseline_segmentation_net(x_ncl, params):
    """Forward pass. x_ncl: (B, 29, L) in PyTorch NCL layout. Returns (B, 1, L) f32."""
    B, _, L = x_ncl.shape
    x_blc = jnp.transpose(x_ncl, (0, 2, 1)).astype(jnp.bfloat16)   # (B, L, 29)

    p1, p2, p3, p4 = params
    kernel = functools.partial(_fused_kernel, B=B, L=L)
    vmem = pl.BlockSpec(memory_space=pltpu.MemorySpace.VMEM)

    out = pl.pallas_call(
        kernel,
        out_shape=jax.ShapeDtypeStruct((B, L), jnp.float32),
        in_specs=[vmem] * 13,
        out_specs=vmem,
        scratch_shapes=[
            pltpu.VMEM((B, L + 10, 29), jnp.bfloat16),   # padded input   (halo 5)
            pltpu.VMEM((B, L + 8, 64), jnp.bfloat16),    # layer-1 output (halo 4)
            pltpu.VMEM((B, L + 6, 32), jnp.bfloat16),    # layer-2 output (halo 3)
            pltpu.VMEM((B, L + 2, 16), jnp.bfloat16),    # layer-3 output (halo 1)
        ],
        compiler_params=pltpu.CompilerParams(
            # Above the 32 MiB scoped default, comfortably under v7x's 64 MiB physical VMEM.
            vmem_limit_bytes=48 * 1024 * 1024,
        ),
    )(
        x_blc,
        p1["w"].astype(jnp.bfloat16),
        p2["w"].astype(jnp.bfloat16),
        p3["w"].astype(jnp.bfloat16),
        p4["w"].reshape(3, 16).astype(jnp.float32),
        p1["gamma"].reshape(1, 1, 64), p1["beta"].reshape(1, 1, 64),
        p2["gamma"].reshape(1, 1, 32), p2["beta"].reshape(1, 1, 32),
        p3["gamma"].reshape(1, 1, 16), p3["beta"].reshape(1, 1, 16),
        p4["gamma"].reshape(1, 1), p4["beta"].reshape(1, 1),
    )
    return out.reshape(B, 1, L)


if __name__ == "__main__":
    key = jax.random.PRNGKey(0)
    B, C, L = 2, 29, 16
    x = jax.random.normal(key, (B, C, L), dtype=jnp.float32)

    params = init_params(seed=0)
    fwd = jax.jit(baseline_segmentation_net)
    out = fwd(x, params)
    out = jax.block_until_ready(out)

    assert out.shape == (B, 1, L), out.shape
    assert bool(jnp.all(jnp.isfinite(out)))
    assert bool(jnp.all((out >= 0.0) & (out <= 1.0)))  # sigmoid output range
    print("KERNEL_OK")
</pallas_src>

<mosaic_0001>
module attributes {stable_mosaic.version = 11 : i64} {
  func.func @_fused_kernel(%arg0: memref<2x16x29xbf16, #tpu.memory_space<vmem>>, %arg1: memref<11x29x64xbf16, #tpu.memory_space<vmem>>, %arg2: memref<9x64x32xbf16, #tpu.memory_space<vmem>>, %arg3: memref<7x32x16xbf16, #tpu.memory_space<vmem>>, %arg4: memref<3x16xf32, #tpu.memory_space<vmem>>, %arg5: memref<1x1x64xf32, #tpu.memory_space<vmem>>, %arg6: memref<1x1x64xf32, #tpu.memory_space<vmem>>, %arg7: memref<1x1x32xf32, #tpu.memory_space<vmem>>, %arg8: memref<1x1x32xf32, #tpu.memory_space<vmem>>, %arg9: memref<1x1x16xf32, #tpu.memory_space<vmem>>, %arg10: memref<1x1x16xf32, #tpu.memory_space<vmem>>, %arg11: memref<1x1xf32, #tpu.memory_space<vmem>>, %arg12: memref<1x1xf32, #tpu.memory_space<vmem>>, %arg13: memref<2x16xf32, #tpu.memory_space<vmem>>, %arg14: memref<2x26x29xbf16, #tpu.memory_space<vmem>>, %arg15: memref<2x24x64xbf16, #tpu.memory_space<vmem>>, %arg16: memref<2x22x32xbf16, #tpu.memory_space<vmem>>, %arg17: memref<2x18x16xbf16, #tpu.memory_space<vmem>>) attributes {dimension_semantics = [], scalar_prefetch = 0 : i64, scratch_operands = 4 : i64, tpu.core_type = #tpu.core_type<tc>} {
    %c0 = arith.constant 0 : index
    %c0_0 = arith.constant 0 : index
    %c0_1 = arith.constant 0 : index
    %0 = vector.load %arg0[%c0, %c0_0, %c0_1] : memref<2x16x29xbf16, #tpu.memory_space<vmem>>, vector<2x16x29xbf16>
    %cst = arith.constant 0.000000e+00 : bf16
    %1 = vector.broadcast %cst : bf16 to vector<2x5x29xbf16>
    %c0_2 = arith.constant 0 : index
    %c0_3 = arith.constant 0 : index
    %c0_4 = arith.constant 0 : index
    %2 = vector.load %arg14[%c0_2, %c0_3, %c0_4] : memref<2x26x29xbf16, #tpu.memory_space<vmem>>, vector<2x5x29xbf16>
    tpu.vector_store %arg14[%c0_2, %c0_3, %c0_4], %1 {strides = array<i32>} : memref<2x26x29xbf16, #tpu.memory_space<vmem>>, vector<2x5x29xbf16>,
    %c0_5 = arith.constant 0 : index
    %c21 = arith.constant 21 : index
    %c0_6 = arith.constant 0 : index
    %3 = vector.load %arg14[%c0_5, %c21, %c0_6] : memref<2x26x29xbf16, #tpu.memory_space<vmem>>, vector<2x5x29xbf16>
    tpu.vector_store %arg14[%c0_5, %c21, %c0_6], %1 {strides = array<i32>} : memref<2x26x29xbf16, #tpu.memory_space<vmem>>, vector<2x5x29xbf16>,
    %c0_7 = arith.constant 0 : index
    %c5 = arith.constant 5 : index
    %c0_8 = arith.constant 0 : index
    %4 = vector.load %arg14[%c0_7, %c5, %c0_8] : memref<2x26x29xbf16, #tpu.memory_space<vmem>>, vector<2x16x29xbf16>
    tpu.vector_store %arg14[%c0_7, %c5, %c0_8], %0 {strides = array<i32>} : memref<2x26x29xbf16, #tpu.memory_space<vmem>>, vector<2x16x29xbf16>,
    %cst_9 = arith.constant 0.000000e+00 : f32
    %5 = vector.broadcast %cst_9 : f32 to vector<2x16x64xf32>
    %c0_10 = arith.constant 0 : index
    %c0_11 = arith.constant 0 : index
    %c0_12 = arith.constant 0 : index
    %6 = vector.load %arg14[%c0_10, %c0_11, %c0_12] : memref<2x26x29xbf16, #tpu.memory_space<vmem>>, vector<2x16x29xbf16>
    %c0_13 = arith.constant 0 : index
    %c0_14 = arith.constant 0 : index
    %c0_15 = arith.constant 0 : index
    %7 = vector.load %arg1[%c0_13, %c0_14, %c0_15] : memref<11x29x64xbf16, #tpu.memory_space<vmem>>, vector<1x29x64xbf16>
    %8 = vector.shape_cast %7 : vector<1x29x64xbf16> to vector<29x64xbf16>
    %cst_16 = arith.constant dense<0.000000e+00> : vector<2x16x64xf32>
    %9 = tpu.matmul %6, %8, %cst_16 {dimension_numbers = #tpu.dot_dimension_numbers<[2], [0], [0, 1], [1], [0, 0, 0, 1, 1, 1], [], []>} : vector<2x16x29xbf16>, vector<29x64xbf16>, vector<2x16x64xf32> -> vector<2x16x64xf32>
    %10 = arith.addf %5, %9 : vector<2x16x64xf32>
    %c0_17 = arith.constant 0 : index
    %c1 = arith.constant 1 : index
    %c0_18 = arith.constant 0 : index
    %11 = vector.load %arg14[%c0_17, %c1, %c0_18] : memref<2x26x29xbf16, #tpu.memory_space<vmem>>, vector<2x16x29xbf16>
    %c1_19 = arith.constant 1 : index
    %c0_20 = arith.constant 0 : index
    %c0_21 = arith.constant 0 : index
    %12 = vector.load %arg1[%c1_19, %c0_20, %c0_21] : memref<11x29x64xbf16, #tpu.memory_space<vmem>>, vector<1x29x64xbf16>
    %13 = vector.shape_cast %12 : vector<1x29x64xbf16> to vector<29x64xbf16>
    %cst_22 = arith.constant dense<0.000000e+00> : vector<2x16x64xf32>
    %14 = tpu.matmul %11, %13, %cst_22 {dimension_numbers = #tpu.dot_dimension_numbers<[2], [0], [0, 1], [1], [0, 0, 0, 1, 1, 1], [], []>} : vector<2x16x29xbf16>, vector<29x64xbf16>, vector<2x16x64xf32> -> vector<2x16x64xf32>
    %15 = arith.addf %10, %14 : vector<2x16x64xf32>
    %c0_23 = arith.constant 0 : index
    %c2 = arith.constant 2 : index
    %c0_24 = arith.constant 0 : index
    %16 = vector.load %arg14[%c0_23, %c2, %c0_24] : memref<2x26x29xbf16, #tpu.memory_space<vmem>>, vector<2x16x29xbf16>
    %c2_25 = arith.constant 2 : index
    %c0_26 = arith.constant 0 : index
    %c0_27 = arith.constant 0 : index
    %17 = vector.load %arg1[%c2_25, %c0_26, %c0_27] : memref<11x29x64xbf16, #tpu.memory_space<vmem>>, vector<1x29x64xbf16>
    %18 = vector.shape_cast %17 : vector<1x29x64xbf16> to vector<29x64xbf16>
    %cst_28 = arith.constant dense<0.000000e+00> : vector<2x16x64xf32>
    %19 = tpu.matmul %16, %18, %cst_28 {dimension_numbers = #tpu.dot_dimension_numbers<[2], [0], [0, 1], [1], [0, 0, 0, 1, 1, 1], [], []>} : vector<2x16x29xbf16>, vector<29x64xbf16>, vector<2x16x64xf32> -> vector<2x16x64xf32>
    %20 = arith.addf %15, %19 : vector<2x16x64xf32>
    %c0_29 = arith.constant 0 : index
    %c3 = arith.constant 3 : index
    %c0_30 = arith.constant 0 : index
    %21 = vector.load %arg14[%c0_29, %c3, %c0_30] : memref<2x26x29xbf16, #tpu.memory_space<vmem>>, vector<2x16x29xbf16>
    %c3_31 = arith.constant 3 : index
    %c0_32 = arith.constant 0 : index
    %c0_33 = arith.constant 0 : index
    %22 = vector.load %arg1[%c3_31, %c0_32, %c0_33] : memref<11x29x64xbf16, #tpu.memory_space<vmem>>, vector<1x29x64xbf16>
    %23 = vector.shape_cast %22 : vector<1x29x64xbf16> to vector<29x64xbf16>
    %cst_34 = arith.constant dense<0.000000e+00> : vector<2x16x64xf32>
    %24 = tpu.matmul %21, %23, %cst_34 {dimension_numbers = #tpu.dot_dimension_numbers<[2], [0], [0, 1], [1], [0, 0, 0, 1, 1, 1], [], []>} : vector<2x16x29xbf16>, vector<29x64xbf16>, vector<2x16x64xf32> -> vector<2x16x64xf32>
    %25 = arith.addf %20, %24 : vector<2x16x64xf32>
    %c0_35 = arith.constant 0 : index
    %c4 = arith.constant 4 : index
    %c0_36 = arith.constant 0 : index
    %26 = vector.load %arg14[%c0_35, %c4, %c0_36] : memref<2x26x29xbf16, #tpu.memory_space<vmem>>, vector<2x16x29xbf16>
    %c4_37 = arith.constant 4 : index
    %c0_38 = arith.constant 0 : index
    %c0_39 = arith.constant 0 : index
    %27 = vector.load %arg1[%c4_37, %c0_38, %c0_39] : memref<11x29x64xbf16, #tpu.memory_space<vmem>>, vector<1x29x64xbf16>
    %28 = vector.shape_cast %27 : vector<1x29x64xbf16> to vector<29x64xbf16>
    %cst_40 = arith.constant dense<0.000000e+00> : vector<2x16x64xf32>
    %29 = tpu.matmul %26, %28, %cst_40 {dimension_numbers = #tpu.dot_dimension_numbers<[2], [0], [0, 1], [1], [0, 0, 0, 1, 1, 1], [], []>} : vector<2x16x29xbf16>, vector<29x64xbf16>, vector<2x16x64xf32> -> vector<2x16x64xf32>
    %30 = arith.addf %25, %29 : vector<2x16x64xf32>
    %c0_41 = arith.constant 0 : index
    %c5_42 = arith.constant 5 : index
    %c0_43 = arith.constant 0 : index
    %31 = vector.load %arg14[%c0_41, %c5_42, %c0_43] : memref<2x26x29xbf16, #tpu.memory_space<vmem>>, vector<2x16x29xbf16>
    %c5_44 = arith.constant 5 : index
    %c0_45 = arith.constant 0 : index
    %c0_46 = arith.constant 0 : index
    %32 = vector.load %arg1[%c5_44, %c0_45, %c0_46] : memref<11x29x64xbf16, #tpu.memory_space<vmem>>, vector<1x29x64xbf16>
    %33 = vector.shape_cast %32 : vector<1x29x64xbf16> to vector<29x64xbf16>
    %cst_47 = arith.constant dense<0.000000e+00> : vector<2x16x64xf32>
    %34 = tpu.matmul %31, %33, %cst_47 {dimension_numbers = #tpu.dot_dimension_numbers<[2], [0], [0, 1], [1], [0, 0, 0, 1, 1, 1], [], []>} : vector<2x16x29xbf16>, vector<29x64xbf16>, vector<2x16x64xf32> -> vector<2x16x64xf32>
    %35 = arith.addf %30, %34 : vector<2x16x64xf32>
    %c0_48 = arith.constant 0 : index
    %c6 = arith.constant 6 : index
    %c0_49 = arith.constant 0 : index
    %36 = vector.load %arg14[%c0_48, %c6, %c0_49] : memref<2x26x29xbf16, #tpu.memory_space<vmem>>, vector<2x16x29xbf16>
    %c6_50 = arith.constant 6 : index
    %c0_51 = arith.constant 0 : index
    %c0_52 = arith.constant 0 : index
    %37 = vector.load %arg1[%c6_50, %c0_51, %c0_52] : memref<11x29x64xbf16, #tpu.memory_space<vmem>>, vector<1x29x64xbf16>
    %38 = vector.shape_cast %37 : vector<1x29x64xbf16> to vector<29x64xbf16>
    %cst_53 = arith.constant dense<0.000000e+00> : vector<2x16x64xf32>
    %39 = tpu.matmul %36, %38, %cst_53 {dimension_numbers = #tpu.dot_dimension_numbers<[2], [0], [0, 1], [1], [0, 0, 0, 1, 1, 1], [], []>} : vector<2x16x29xbf16>, vector<29x64xbf16>, vector<2x16x64xf32> -> vector<2x16x64xf32>
    %40 = arith.addf %35, %39 : vector<2x16x64xf32>
    %c0_54 = arith.constant 0 : index
    %c7 = arith.constant 7 : index
    %c0_55 = arith.constant 0 : index
    %41 = vector.load %arg14[%c0_54, %c7, %c0_55] : memref<2x26x29xbf16, #tpu.memory_space<vmem>>, vector<2x16x29xbf16>
    %c7_56 = arith.constant 7 : index
    %c0_57 = arith.constant 0 : index
    %c0_58 = arith.constant 0 : index
    %42 = vector.load %arg1[%c7_56, %c0_57, %c0_58] : memref<11x29x64xbf16, #tpu.memory_space<vmem>>, vector<1x29x64xbf16>
    %43 = vector.shape_cast %42 : vector<1x29x64xbf16> to vector<29x64xbf16>
    %cst_59 = arith.constant dense<0.000000e+00> : vector<2x16x64xf32>
    %44 = tpu.matmul %41, %43, %cst_59 {dimension_numbers = #tpu.dot_dimension_numbers<[2], [0], [0, 1], [1], [0, 0, 0, 1, 1, 1], [], []>} : vector<2x16x29xbf16>, vector<29x64xbf16>, vector<2x16x64xf32> -> vector<2x16x64xf32>
    %45 = arith.addf %40, %44 : vector<2x16x64xf32>
    %c0_60 = arith.constant 0 : index
    %c8 = arith.constant 8 : index
    %c0_61 = arith.constant 0 : index
    %46 = vector.load %arg14[%c0_60, %c8, %c0_61] : memref<2x26x29xbf16, #tpu.memory_space<vmem>>, vector<2x16x29xbf16>
    %c8_62 = arith.constant 8 : index
    %c0_63 = arith.constant 0 : index
    %c0_64 = arith.constant 0 : index
    %47 = vector.load %arg1[%c8_62, %c0_63, %c0_64] : memref<11x29x64xbf16, #tpu.memory_space<vmem>>, vector<1x29x64xbf16>
    %48 = vector.shape_cast %47 : vector<1x29x64xbf16> to vector<29x64xbf16>
    %cst_65 = arith.constant dense<0.000000e+00> : vector<2x16x64xf32>
    %49 = tpu.matmul %46, %48, %cst_65 {dimension_numbers = #tpu.dot_dimension_numbers<[2], [0], [0, 1], [1], [0, 0, 0, 1, 1, 1], [], []>} : vector<2x16x29xbf16>, vector<29x64xbf16>, vector<2x16x64xf32> -> vector<2x16x64xf32>
    %50 = arith.addf %45, %49 : vector<2x16x64xf32>
    %c0_66 = arith.constant 0 : index
    %c9 = arith.constant 9 : index
    %c0_67 = arith.constant 0 : index
    %51 = vector.load %arg14[%c0_66, %c9, %c0_67] : memref<2x26x29xbf16, #tpu.memory_space<vmem>>, vector<2x16x29xbf16>
    %c9_68 = arith.constant 9 : index
    %c0_69 = arith.constant 0 : index
    %c0_70 = arith.constant 0 : index
    %52 = vector.load %arg1[%c9_68, %c0_69, %c0_70] : memref<11x29x64xbf16, #tpu.memory_space<vmem>>, vector<1x29x64xbf16>
    %53 = vector.shape_cast %52 : vector<1x29x64xbf16> to vector<29x64xbf16>
    %cst_71 = arith.constant dense<0.000000e+00> : vector<2x16x64xf32>
    %54 = tpu.matmul %51, %53, %cst_71 {dimension_numbers = #tpu.dot_dimension_numbers<[2], [0], [0, 1], [1], [0, 0, 0, 1, 1, 1], [], []>} : vector<2x16x29xbf16>, vector<29x64xbf16>, vector<2x16x64xf32> -> vector<2x16x64xf32>
    %55 = arith.addf %50, %54 : vector<2x16x64xf32>
    %c0_72 = arith.constant 0 : index
    %c10 = arith.constant 10 : index
    %c0_73 = arith.constant 0 : index
    %56 = vector.load %arg14[%c0_72, %c10, %c0_73] : memref<2x26x29xbf16, #tpu.memory_space<vmem>>, vector<2x16x29xbf16>
    %c10_74 = arith.constant 10 : index
    %c0_75 = arith.constant 0 : index
    %c0_76 = arith.constant 0 : index
    %57 = vector.load %arg1[%c10_74, %c0_75, %c0_76] : memref<11x29x64xbf16, #tpu.memory_space<vmem>>, vector<1x29x64xbf16>
    %58 = vector.shape_cast %57 : vector<1x29x64xbf16> to vector<29x64xbf16>
    %cst_77 = arith.constant dense<0.000000e+00> : vector<2x16x64xf32>
    %59 = tpu.matmul %56, %58, %cst_77 {dimension_numbers = #tpu.dot_dimension_numbers<[2], [0], [0, 1], [1], [0, 0, 0, 1, 1, 1], [], []>} : vector<2x16x29xbf16>, vector<29x64xbf16>, vector<2x16x64xf32> -> vector<2x16x64xf32>
    %60 = arith.addf %55, %59 : vector<2x16x64xf32>
    %cst_78 = arith.constant dense<0.000000e+00> : vector<64xf32>
    %61 = vector.multi_reduction <add>, %60, %cst_78 [0, 1] : vector<2x16x64xf32> to vector<64xf32>
    %62 = vector.shape_cast %61 : vector<64xf32> to vector<1x1x64xf32>
    %63 = arith.mulf %60, %60 : vector<2x16x64xf32>
    %cst_79 = arith.constant dense<0.000000e+00> : vector<64xf32>
    %64 = vector.multi_reduction <add>, %63, %cst_79 [0, 1] : vector<2x16x64xf32> to vector<64xf32>
    %65 = vector.shape_cast %64 : vector<64xf32> to vector<1x1x64xf32>
    %cst_80 = arith.constant 3.125000e-02 : f32
    %66 = vector.broadcast %cst_80 : f32 to vector<1x1x64xf32>
    %67 = arith.mulf %62, %66 : vector<1x1x64xf32>
    %cst_81 = arith.constant 3.125000e-02 : f32
    %68 = vector.broadcast %cst_81 : f32 to vector<1x1x64xf32>
    %69 = arith.mulf %65, %68 : vector<1x1x64xf32>
    %70 = arith.mulf %67, %67 : vector<1x1x64xf32>
    %71 = arith.subf %69, %70 : vector<1x1x64xf32>
    %cst_82 = arith.constant 0.000000e+00 : f32
    %72 = vector.broadcast %cst_82 : f32 to vector<1x1x64xf32>
    %73 = arith.maximumf %71, %72 : vector<1x1x64xf32>
    %c0_83 = arith.constant 0 : index
    %c0_84 = arith.constant 0 : index
    %c0_85 = arith.constant 0 : index
    %74 = vector.load %arg5[%c0_83, %c0_84, %c0_85] : memref<1x1x64xf32, #tpu.memory_space<vmem>>, vector<1x1x64xf32>
    %cst_86 = arith.constant 9.99999974E-6 : f32
    %75 = vector.broadcast %cst_86 : f32 to vector<1x1x64xf32>
    %76 = arith.addf %73, %75 : vector<1x1x64xf32>
    %77 = math.rsqrt %76 : vector<1x1x64xf32>
    %78 = arith.mulf %74, %77 : vector<1x1x64xf32>
    %c0_87 = arith.constant 0 : index
    %c0_88 = arith.constant 0 : index
    %c0_89 = arith.constant 0 : index
    %79 = vector.load %arg6[%c0_87, %c0_88, %c0_89] : memref<1x1x64xf32, #tpu.memory_space<vmem>>, vector<1x1x64xf32>
    %80 = arith.mulf %67, %78 : vector<1x1x64xf32>
    %81 = arith.subf %79, %80 : vector<1x1x64xf32>
    %82 = vector.broadcast %78 : vector<1x1x64xf32> to vector<2x16x64xf32>
    %83 = arith.mulf %60, %82 : vector<2x16x64xf32>
    %84 = vector.broadcast %81 : vector<1x1x64xf32> to vector<2x16x64xf32>
    %85 = arith.addf %83, %84 : vector<2x16x64xf32>
    %cst_90 = arith.constant 0.000000e+00 : f32
    %86 = vector.broadcast %cst_90 : f32 to vector<2x16x64xf32>
    %87 = arith.maximumf %85, %86 : vector<2x16x64xf32>
    %cst_91 = arith.constant 0.000000e+00 : bf16
    %88 = vector.broadcast %cst_91 : bf16 to vector<2x4x64xbf16>
    %c0_92 = arith.constant 0 : index
    %c0_93 = arith.constant 0 : index
    %c0_94 = arith.constant 0 : index
    %89 = vector.load %arg15[%c0_92, %c0_93, %c0_94] : memref<2x24x64xbf16, #tpu.memory_space<vmem>>, vector<2x4x64xbf16>
    tpu.vector_store %arg15[%c0_92, %c0_93, %c0_94], %88 {strides = array<i32>} : memref<2x24x64xbf16, #tpu.memory_space<vmem>>, vector<2x4x64xbf16>,
    %c0_95 = arith.constant 0 : index
    %c20 = arith.constant 20 : index
    %c0_96 = arith.constant 0 : index
    %90 = vector.load %arg15[%c0_95, %c20, %c0_96] : memref<2x24x64xbf16, #tpu.memory_space<vmem>>, vector<2x4x64xbf16>
    tpu.vector_store %arg15[%c0_95, %c20, %c0_96], %88 {strides = array<i32>} : memref<2x24x64xbf16, #tpu.memory_space<vmem>>, vector<2x4x64xbf16>,
    %91 = arith.truncf %87 : vector<2x16x64xf32> to vector<2x16x64xbf16>
    %c0_97 = arith.constant 0 : index
    %c4_98 = arith.constant 4 : index
    %c0_99 = arith.constant 0 : index
    %92 = vector.load %arg15[%c0_97, %c4_98, %c0_99] : memref<2x24x64xbf16, #tpu.memory_space<vmem>>, vector<2x16x64xbf16>
    tpu.vector_store %arg15[%c0_97, %c4_98, %c0_99], %91 {strides = array<i32>} : memref<2x24x64xbf16, #tpu.memory_space<vmem>>, vector<2x16x64xbf16>,
    %cst_100 = arith.constant 0.000000e+00 : f32
    %93 = vector.broadcast %cst_100 : f32 to vector<2x16x32xf32>
    %c0_101 = arith.constant 0 : index
    %c0_102 = arith.constant 0 : index
    %c0_103 = arith.constant 0 : index
    %94 = vector.load %arg15[%c0_101, %c0_102, %c0_103] : memref<2x24x64xbf16, #tpu.memory_space<vmem>>, vector<2x16x64xbf16>
    %c0_104 = arith.constant 0 : index
    %c0_105 = arith.constant 0 : index
    %c0_106 = arith.constant 0 : index
    %95 = vector.load %arg2[%c0_104, %c0_105, %c0_106] : memref<9x64x32xbf16, #tpu.memory_space<vmem>>, vector<1x64x32xbf16>
    %96 = vector.shape_cast %95 : vector<1x64x32xbf16> to vector<64x32xbf16>
    %cst_107 = arith.constant dense<0.000000e+00> : vector<2x16x32xf32>
    %97 = tpu.matmul %94, %96, %cst_107 {dimension_numbers = #tpu.dot_dimension_numbers<[2], [0], [0, 1], [1], [0, 0, 0, 1, 1, 1], [], []>} : vector<2x16x64xbf16>, vector<64x32xbf16>, vector<2x16x32xf32> -> vector<2x16x32xf32>
    %98 = arith.addf %93, %97 : vector<2x16x32xf32>
    %c0_108 = arith.constant 0 : index
    %c1_109 = arith.constant 1 : index
    %c0_110 = arith.constant 0 : index
    %99 = vector.load %arg15[%c0_108, %c1_109, %c0_110] : memref<2x24x64xbf16, #tpu.memory_space<vmem>>, vector<2x16x64xbf16>
    %c1_111 = arith.constant 1 : index
    %c0_112 = arith.constant 0 : index
    %c0_113 = arith.constant 0 : index
    %100 = vector.load %arg2[%c1_111, %c0_112, %c0_113] : memref<9x64x32xbf16, #tpu.memory_space<vmem>>, vector<1x64x32xbf16>
    %101 = vector.shape_cast %100 : vector<1x64x32xbf16> to vector<64x32xbf16>
    %cst_114 = arith.constant dense<0.000000e+00> : vector<2x16x32xf32>
    %102 = tpu.matmul %99, %101, %cst_114 {dimension_numbers = #tpu.dot_dimension_numbers<[2], [0], [0, 1], [1], [0, 0, 0, 1, 1, 1], [], []>} : vector<2x16x64xbf16>, vector<64x32xbf16>, vector<2x16x32xf32> -> vector<2x16x32xf32>
    %103 = arith.addf %98, %102 : vector<2x16x32xf32>
    %c0_115 = arith.constant 0 : index
    %c2_116 = arith.constant 2 : index
    %c0_117 = arith.constant 0 : index
    %104 = vector.load %arg15[%c0_115, %c2_116, %c0_117] : memref<2x24x64xbf16, #tpu.memory_space<vmem>>, vector<2x16x64xbf16>
    %c2_118 = arith.constant 2 : index
    %c0_119 = arith.constant 0 : index
    %c0_120 = arith.constant 0 : index
    %105 = vector.load %arg2[%c2_118, %c0_119, %c0_120] : memref<9x64x32xbf16, #tpu.memory_space<vmem>>, vector<1x64x32xbf16>
    %106 = vector.shape_cast %105 : vector<1x64x32xbf16> to vector<64x32xbf16>
    %cst_121 = arith.constant dense<0.000000e+00> : vector<2x16x32xf32>
    %107 = tpu.matmul %104, %106, %cst_121 {dimension_numbers = #tpu.dot_dimension_numbers<[2], [0], [0, 1], [1], [0, 0, 0, 1, 1, 1], [], []>} : vector<2x16x64xbf16>, vector<64x32xbf16>, vector<2x16x32xf32> -> vector<2x16x32xf32>
    %108 = arith.addf %103, %107 : vector<2x16x32xf32>
    %c0_122 = arith.constant 0 : index
    %c3_123 = arith.constant 3 : index
    %c0_124 = arith.constant 0 : index
    %109 = vector.load %arg15[%c0_122, %c3_123, %c0_124] : memref<2x24x64xbf16, #tpu.memory_space<vmem>>, vector<2x16x64xbf16>
    %c3_125 = arith.constant 3 : index
    %c0_126 = arith.constant 0 : index
    %c0_127 = arith.constant 0 : index
    %110 = vector.load %arg2[%c3_125, %c0_126, %c0_127] : memref<9x64x32xbf16, #tpu.memory_space<vmem>>, vector<1x64x32xbf16>
    %111 = vector.shape_cast %110 : vector<1x64x32xbf16> to vector<64x32xbf16>
    %cst_128 = arith.constant dense<0.000000e+00> : vector<2x16x32xf32>
    %112 = tpu.matmul %109, %111, %cst_128 {dimension_numbers = #tpu.dot_dimension_numbers<[2], [0], [0, 1], [1], [0, 0, 0, 1, 1, 1], [], []>} : vector<2x16x64xbf16>, vector<64x32xbf16>, vector<2x16x32xf32> -> vector<2x16x32xf32>
    %113 = arith.addf %108, %112 : vector<2x16x32xf32>
    %c0_129 = arith.constant 0 : index
    %c4_130 = arith.constant 4 : index
    %c0_131 = arith.constant 0 : index
    %114 = vector.load %arg15[%c0_129, %c4_130, %c0_131] : memref<2x24x64xbf16, #tpu.memory_space<vmem>>, vector<2x16x64xbf16>
    %c4_132 = arith.constant 4 : index
    %c0_133 = arith.constant 0 : index
    %c0_134 = arith.constant 0 : index
    %115 = vector.load %arg2[%c4_132, %c0_133, %c0_134] : memref<9x64x32xbf16, #tpu.memory_space<vmem>>, vector<1x64x32xbf16>
    %116 = vector.shape_cast %115 : vector<1x64x32xbf16> to vector<64x32xbf16>
    %cst_135 = arith.constant dense<0.000000e+00> : vector<2x16x32xf32>
    %117 = tpu.matmul %114, %116, %cst_135 {dimension_numbers = #tpu.dot_dimension_numbers<[2], [0], [0, 1], [1], [0, 0, 0, 1, 1, 1], [], []>} : vector<2x16x64xbf16>, vector<64x32xbf16>, vector<2x16x32xf32> -> vector<2x16x32xf32>
    %118 = arith.addf %113, %117 : vector<2x16x32xf32>
    %c0_136 = arith.constant 0 : index
    %c5_137 = arith.constant 5 : index
    %c0_138 = arith.constant 0 : index
    %119 = vector.load %arg15[%c0_136, %c5_137, %c0_138] : memref<2x24x64xbf16, #tpu.memory_space<vmem>>, vector<2x16x64xbf16>
    %c5_139 = arith.constant 5 : index
    %c0_140 = arith.constant 0 : index
    %c0_141 = arith.constant 0 : index
    %120 = vector.load %arg2[%c5_139, %c0_140, %c0_141] : memref<9x64x32xbf16, #tpu.memory_space<vmem>>, vector<1x64x32xbf16>
    %121 = vector.shape_cast %120 : vector<1x64x32xbf16> to vector<64x32xbf16>
    %cst_142 = arith.constant dense<0.000000e+00> : vector<2x16x32xf32>
    %122 = tpu.matmul %119, %121, %cst_142 {dimension_numbers = #tpu.dot_dimension_numbers<[2], [0], [0, 1], [1], [0, 0, 0, 1, 1, 1], [], []>} : vector<2x16x64xbf16>, vector<64x32xbf16>, vector<2x16x32xf32> -> vector<2x16x32xf32>
    %123 = arith.addf %118, %122 : vector<2x16x32xf32>
    %c0_143 = arith.constant 0 : index
    %c6_144 = arith.constant 6 : index
    %c0_145 = arith.constant 0 : index
    %124 = vector.load %arg15[%c0_143, %c6_144, %c0_145] : memref<2x24x64xbf16, #tpu.memory_space<vmem>>, vector<2x16x64xbf16>
    %c6_146 = arith.constant 6 : index
    %c0_147 = arith.constant 0 : index
    %c0_148 = arith.constant 0 : index
    %125 = vector.load %arg2[%c6_146, %c0_147, %c0_148] : memref<9x64x32xbf16, #tpu.memory_space<vmem>>, vector<1x64x32xbf16>
    %126 = vector.shape_cast %125 : vector<1x64x32xbf16> to vector<64x32xbf16>
    %cst_149 = arith.constant dense<0.000000e+00> : vector<2x16x32xf32>
    %127 = tpu.matmul %124, %126, %cst_149 {dimension_numbers = #tpu.dot_dimension_numbers<[2], [0], [0, 1], [1], [0, 0, 0, 1, 1, 1], [], []>} : vector<2x16x64xbf16>, vector<64x32xbf16>, vector<2x16x32xf32> -> vector<2x16x32xf32>
    %128 = arith.addf %123, %127 : vector<2x16x32xf32>
    %c0_150 = arith.constant 0 : index
    %c7_151 = arith.constant 7 : index
    %c0_152 = arith.constant 0 : index
    %129 = vector.load %arg15[%c0_150, %c7_151, %c0_152] : memref<2x24x64xbf16, #tpu.memory_space<vmem>>, vector<2x16x64xbf16>
    %c7_153 = arith.constant 7 : index
    %c0_154 = arith.constant 0 : index
    %c0_155 = arith.constant 0 : index
    %130 = vector.load %arg2[%c7_153, %c0_154, %c0_155] : memref<9x64x32xbf16, #tpu.memory_space<vmem>>, vector<1x64x32xbf16>
    %131 = vector.shape_cast %130 : vector<1x64x32xbf16> to vector<64x32xbf16>
    %cst_156 = arith.constant dense<0.000000e+00> : vector<2x16x32xf32>
    %132 = tpu.matmul %129, %131, %cst_156 {dimension_numbers = #tpu.dot_dimension_numbers<[2], [0], [0, 1], [1], [0, 0, 0, 1, 1, 1], [], []>} : vector<2x16x64xbf16>, vector<64x32xbf16>, vector<2x16x32xf32> -> vector<2x16x32xf32>
    %133 = arith.addf %128, %132 : vector<2x16x32xf32>
    %c0_157 = arith.constant 0 : index
    %c8_158 = arith.constant 8 : index
    %c0_159 = arith.constant 0 : index
    %134 = vector.load %arg15[%c0_157, %c8_158, %c0_159] : memref<2x24x64xbf16, #tpu.memory_space<vmem>>, vector<2x16x64xbf16>
    %c8_160 = arith.constant 8 : index
    %c0_161 = arith.constant 0 : index
    %c0_162 = arith.constant 0 : index
    %135 = vector.load %arg2[%c8_160, %c0_161, %c0_162] : memref<9x64x32xbf16, #tpu.memory_space<vmem>>, vector<1x64x32xbf16>
    %136 = vector.shape_cast %135 : vector<1x64x32xbf16> to vector<64x32xbf16>
    %cst_163 = arith.constant dense<0.000000e+00> : vector<2x16x32xf32>
    %137 = tpu.matmul %134, %136, %cst_163 {dimension_numbers = #tpu.dot_dimension_numbers<[2], [0], [0, 1], [1], [0, 0, 0, 1, 1, 1], [], []>} : vector<2x16x64xbf16>, vector<64x32xbf16>, vector<2x16x32xf32> -> vector<2x16x32xf32>
    %138 = arith.addf %133, %137 : vector<2x16x32xf32>
    %cst_164 = arith.constant dense<0.000000e+00> : vector<32xf32>
    %139 = vector.multi_reduction <add>, %138, %cst_164 [0, 1] : vector<2x16x32xf32> to vector<32xf32>
    %140 = vector.shape_cast %139 : vector<32xf32> to vector<1x1x32xf32>
    %141 = arith.mulf %138, %138 : vector<2x16x32xf32>
    %cst_165 = arith.constant dense<0.000000e+00> : vector<32xf32>
    %142 = vector.multi_reduction <add>, %141, %cst_165 [0, 1] : vector<2x16x32xf32> to vector<32xf32>
    %143 = vector.shape_cast %142 : vector<32xf32> to vector<1x1x32xf32>
    %cst_166 = arith.constant 3.125000e-02 : f32
    %144 = vector.broadcast %cst_166 : f32 to vector<1x1x32xf32>
    %145 = arith.mulf %140, %144 : vector<1x1x32xf32>
    %cst_167 = arith.constant 3.125000e-02 : f32
    %146 = vector.broadcast %cst_167 : f32 to vector<1x1x32xf32>
    %147 = arith.mulf %143, %146 : vector<1x1x32xf32>
    %148 = arith.mulf %145, %145 : vector<1x1x32xf32>
    %149 = arith.subf %147, %148 : vector<1x1x32xf32>
    %cst_168 = arith.constant 0.000000e+00 : f32
    %150 = vector.broadcast %cst_168 : f32 to vector<1x1x32xf32>
    %151 = arith.maximumf %149, %150 : vector<1x1x32xf32>
    %c0_169 = arith.constant 0 : index
    %c0_170 = arith.constant 0 : index
    %c0_171 = arith.constant 0 : index
    %152 = vector.load %arg7[%c0_169, %c0_170, %c0_171] : memref<1x1x32xf32, #tpu.memory_space<vmem>>, vector<1x1x32xf32>
    %cst_172 = arith.constant 9.99999974E-6 : f32
    %153 = vector.broadcast %cst_172 : f32 to vector<1x1x32xf32>
    %154 = arith.addf %151, %153 : vector<1x1x32xf32>
    %155 = math.rsqrt %154 : vector<1x1x32xf32>
    %156 = arith.mulf %152, %155 : vector<1x1x32xf32>
    %c0_173 = arith.constant 0 : index
    %c0_174 = arith.constant 0 : index
    %c0_175 = arith.constant 0 : index
    %157 = vector.load %arg8[%c0_173, %c0_174, %c0_175] : memref<1x1x32xf32, #tpu.memory_space<vmem>>, vector<1x1x32xf32>
    %158 = arith.mulf %145, %156 : vector<1x1x32xf32>
    %159 = arith.subf %157, %158 : vector<1x1x32xf32>
    %160 = vector.broadcast %156 : vector<1x1x32xf32> to vector<2x16x32xf32>
    %161 = arith.mulf %138, %160 : vector<2x16x32xf32>
    %162 = vector.broadcast %159 : vector<1x1x32xf32> to vector<2x16x32xf32>
    %163 = arith.addf %161, %162 : vector<2x16x32xf32>
    %cst_176 = arith.constant 0.000000e+00 : f32
    %164 = vector.broadcast %cst_176 : f32 to vector<2x16x32xf32>
    %165 = arith.maximumf %163, %164 : vector<2x16x32xf32>
    %cst_177 = arith.constant 0.000000e+00 : bf16
    %166 = vector.broadcast %cst_177 : bf16 to vector<2x3x32xbf16>
    %c0_178 = arith.constant 0 : index
    %c0_179 = arith.constant 0 : index
    %c0_180 = arith.constant 0 : index
    %167 = vector.load %arg16[%c0_178, %c0_179, %c0_180] : memref<2x22x32xbf16, #tpu.memory_space<vmem>>, vector<2x3x32xbf16>
    tpu.vector_store %arg16[%c0_178, %c0_179, %c0_180], %166 {strides = array<i32>} : memref<2x22x32xbf16, #tpu.memory_space<vmem>>, vector<2x3x32xbf16>,
    %c0_181 = arith.constant 0 : index
    %c19 = arith.constant 19 : index
    %c0_182 = arith.constant 0 : index
    %168 = vector.load %arg16[%c0_181, %c19, %c0_182] : memref<2x22x32xbf16, #tpu.memory_space<vmem>>, vector<2x3x32xbf16>
    tpu.vector_store %arg16[%c0_181, %c19, %c0_182], %166 {strides = array<i32>} : memref<2x22x32xbf16, #tpu.memory_space<vmem>>, vector<2x3x32xbf16>,
    %169 = arith.truncf %165 : vector<2x16x32xf32> to vector<2x16x32xbf16>
    %c0_183 = arith.constant 0 : index
    %c3_184 = arith.constant 3 : index
    %c0_185 = arith.constant 0 : index
    %170 = vector.load %arg16[%c0_183, %c3_184, %c0_185] : memref<2x22x32xbf16, #tpu.memory_space<vmem>>, vector<2x16x32xbf16>
    tpu.vector_store %arg16[%c0_183, %c3_184, %c0_185], %169 {strides = array<i32>} : memref<2x22x32xbf16, #tpu.memory_space<vmem>>, vector<2x16x32xbf16>,
    %cst_186 = arith.constant 0.000000e+00 : f32
    %171 = vector.broadcast %cst_186 : f32 to vector<2x16x16xf32>
    %c0_187 = arith.constant 0 : index
    %c0_188 = arith.constant 0 : index
    %c0_189 = arith.constant 0 : index
    %172 = vector.load %arg16[%c0_187, %c0_188, %c0_189] : memref<2x22x32xbf16, #tpu.memory_space<vmem>>, vector<2x16x32xbf16>
    %c0_190 = arith.constant 0 : index
    %c0_191 = arith.constant 0 : index
    %c0_192 = arith.constant 0 : index
    %173 = vector.load %arg3[%c0_190, %c0_191, %c0_192] : memref<7x32x16xbf16, #tpu.memory_space<vmem>>, vector<1x32x16xbf16>
    %174 = vector.shape_cast %173 : vector<1x32x16xbf16> to vector<32x16xbf16>
    %cst_193 = arith.constant dense<0.000000e+00> : vector<2x16x16xf32>
    %175 = tpu.matmul %172, %174, %cst_193 {dimension_numbers = #tpu.dot_dimension_numbers<[2], [0], [0, 1], [1], [0, 0, 0, 1, 1, 1], [], []>} : vector<2x16x32xbf16>, vector<32x16xbf16>, vector<2x16x16xf32> -> vector<2x16x16xf32>
    %176 = arith.addf %171, %175 : vector<2x16x16xf32>
    %c0_194 = arith.constant 0 : index
    %c1_195 = arith.constant 1 : index
    %c0_196 = arith.constant 0 : index
    %177 = vector.load %arg16[%c0_194, %c1_195, %c0_196] : memref<2x22x32xbf16, #tpu.memory_space<vmem>>, vector<2x16x32xbf16>
    %c1_197 = arith.constant 1 : index
    %c0_198 = arith.constant 0 : index
    %c0_199 = arith.constant 0 : index
    %178 = vector.load %arg3[%c1_197, %c0_198, %c0_199] : memref<7x32x16xbf16, #tpu.memory_space<vmem>>, vector<1x32x16xbf16>
    %179 = vector.shape_cast %178 : vector<1x32x16xbf16> to vector<32x16xbf16>
    %cst_200 = arith.constant dense<0.000000e+00> : vector<2x16x16xf32>
    %180 = tpu.matmul %177, %179, %cst_200 {dimension_numbers = #tpu.dot_dimension_numbers<[2], [0], [0, 1], [1], [0, 0, 0, 1, 1, 1], [], []>} : vector<2x16x32xbf16>, vector<32x16xbf16>, vector<2x16x16xf32> -> vector<2x16x16xf32>
    %181 = arith.addf %176, %180 : vector<2x16x16xf32>
    %c0_201 = arith.constant 0 : index
    %c2_202 = arith.constant 2 : index
    %c0_203 = arith.constant 0 : index
    %182 = vector.load %arg16[%c0_201, %c2_202, %c0_203] : memref<2x22x32xbf16, #tpu.memory_space<vmem>>, vector<2x16x32xbf16>
    %c2_204 = arith.constant 2 : index
    %c0_205 = arith.constant 0 : index
    %c0_206 = arith.constant 0 : index
    %183 = vector.load %arg3[%c2_204, %c0_205, %c0_206] : memref<7x32x16xbf16, #tpu.memory_space<vmem>>, vector<1x32x16xbf16>
    %184 = vector.shape_cast %183 : vector<1x32x16xbf16> to vector<32x16xbf16>
    %cst_207 = arith.constant dense<0.000000e+00> : vector<2x16x16xf32>
    %185 = tpu.matmul %182, %184, %cst_207 {dimension_numbers = #tpu.dot_dimension_numbers<[2], [0], [0, 1], [1], [0, 0, 0, 1, 1, 1], [], []>} : vector<2x16x32xbf16>, vector<32x16xbf16>, vector<2x16x16xf32> -> vector<2x16x16xf32>
    %186 = arith.addf %181, %185 : vector<2x16x16xf32>
    %c0_208 = arith.constant 0 : index
    %c3_209 = arith.constant 3 : index
    %c0_210 = arith.constant 0 : index
    %187 = vector.load %arg16[%c0_208, %c3_209, %c0_210] : memref<2x22x32xbf16, #tpu.memory_space<vmem>>, vector<2x16x32xbf16>
    %c3_211 = arith.constant 3 : index
    %c0_212 = arith.constant 0 : index
    %c0_213 = arith.constant 0 : index
    %188 = vector.load %arg3[%c3_211, %c0_212, %c0_213] : memref<7x32x16xbf16, #tpu.memory_space<vmem>>, vector<1x32x16xbf16>
    %189 = vector.shape_cast %188 : vector<1x32x16xbf16> to vector<32x16xbf16>
    %cst_214 = arith.constant dense<0.000000e+00> : vector<2x16x16xf32>
    %190 = tpu.matmul %187, %189, %cst_214 {dimension_numbers = #tpu.dot_dimension_numbers<[2], [0], [0, 1], [1], [0, 0, 0, 1, 1, 1], [], []>} : vector<2x16x32xbf16>, vector<32x16xbf16>, vector<2x16x16xf32> -> vector<2x16x16xf32>
    %191 = arith.addf %186, %190 : vector<2x16x16xf32>
    %c0_215 = arith.constant 0 : index
    %c4_216 = arith.constant 4 : index
    %c0_217 = arith.constant 0 : index
    %192 = vector.load %arg16[%c0_215, %c4_216, %c0_217] : memref<2x22x32xbf16, #tpu.memory_space<vmem>>, vector<2x16x32xbf16>
    %c4_218 = arith.constant 4 : index
    %c0_219 = arith.constant 0 : index
    %c0_220 = arith.constant 0 : index
    %193 = vector.load %arg3[%c4_218, %c0_219, %c0_220] : memref<7x32x16xbf16, #tpu.memory_space<vmem>>, vector<1x32x16xbf16>
    %194 = vector.shape_cast %193 : vector<1x32x16xbf16> to vector<32x16xbf16>
    %cst_221 = arith.constant dense<0.000000e+00> : vector<2x16x16xf32>
    %195 = tpu.matmul %192, %194, %cst_221 {dimension_numbers = #tpu.dot_dimension_numbers<[2], [0], [0, 1], [1], [0, 0, 0, 1, 1, 1], [], []>} : vector<2x16x32xbf16>, vector<32x16xbf16>, vector<2x16x16xf32> -> vector<2x16x16xf32>
    %196 = arith.addf %191, %195 : vector<2x16x16xf32>
    %c0_222 = arith.constant 0 : index
    %c5_223 = arith.constant 5 : index
    %c0_224 = arith.constant 0 : index
    %197 = vector.load %arg16[%c0_222, %c5_223, %c0_224] : memref<2x22x32xbf16, #tpu.memory_space<vmem>>, vector<2x16x32xbf16>
    %c5_225 = arith.constant 5 : index
    %c0_226 = arith.constant 0 : index
    %c0_227 = arith.constant 0 : index
    %198 = vector.load %arg3[%c5_225, %c0_226, %c0_227] : memref<7x32x16xbf16, #tpu.memory_space<vmem>>, vector<1x32x16xbf16>
    %199 = vector.shape_cast %198 : vector<1x32x16xbf16> to vector<32x16xbf16>
    %cst_228 = arith.constant dense<0.000000e+00> : vector<2x16x16xf32>
    %200 = tpu.matmul %197, %199, %cst_228 {dimension_numbers = #tpu.dot_dimension_numbers<[2], [0], [0, 1], [1], [0, 0, 0, 1, 1, 1], [], []>} : vector<2x16x32xbf16>, vector<32x16xbf16>, vector<2x16x16xf32> -> vector<2x16x16xf32>
    %201 = arith.addf %196, %200 : vector<2x16x16xf32>
    %c0_229 = arith.constant 0 : index
    %c6_230 = arith.constant 6 : index
    %c0_231 = arith.constant 0 : index
    %202 = vector.load %arg16[%c0_229, %c6_230, %c0_231] : memref<2x22x32xbf16, #tpu.memory_space<vmem>>, vector<2x16x32xbf16>
    %c6_232 = arith.constant 6 : index
    %c0_233 = arith.constant 0 : index
    %c0_234 = arith.constant 0 : index
    %203 = vector.load %arg3[%c6_232, %c0_233, %c0_234] : memref<7x32x16xbf16, #tpu.memory_space<vmem>>, vector<1x32x16xbf16>
    %204 = vector.shape_cast %203 : vector<1x32x16xbf16> to vector<32x16xbf16>
    %cst_235 = arith.constant dense<0.000000e+00> : vector<2x16x16xf32>
    %205 = tpu.matmul %202, %204, %cst_235 {dimension_numbers = #tpu.dot_dimension_numbers<[2], [0], [0, 1], [1], [0, 0, 0, 1, 1, 1], [], []>} : vector<2x16x32xbf16>, vector<32x16xbf16>, vector<2x16x16xf32> -> vector<2x16x16xf32>
    %206 = arith.addf %201, %205 : vector<2x16x16xf32>
    %cst_236 = arith.constant dense<0.000000e+00> : vector<16xf32>
    %207 = vector.multi_reduction <add>, %206, %cst_236 [0, 1] : vector<2x16x16xf32> to vector<16xf32>
    %208 = vector.shape_cast %207 : vector<16xf32> to vector<1x1x16xf32>
    %209 = arith.mulf %206, %206 : vector<2x16x16xf32>
    %cst_237 = arith.constant dense<0.000000e+00> : vector<16xf32>
    %210 = vector.multi_reduction <add>, %209, %cst_237 [0, 1] : vector<2x16x16xf32> to vector<16xf32>
    %211 = vector.shape_cast %210 : vector<16xf32> to vector<1x1x16xf32>
    %cst_238 = arith.constant 3.125000e-02 : f32
    %212 = vector.broadcast %cst_238 : f32 to vector<1x1x16xf32>
    %213 = arith.mulf %208, %212 : vector<1x1x16xf32>
    %cst_239 = arith.constant 3.125000e-02 : f32
    %214 = vector.broadcast %cst_239 : f32 to vector<1x1x16xf32>
    %215 = arith.mulf %211, %214 : vector<1x1x16xf32>
    %216 = arith.mulf %213, %213 : vector<1x1x16xf32>
    %217 = arith.subf %215, %216 : vector<1x1x16xf32>
    %cst_240 = arith.constant 0.000000e+00 : f32
    %218 = vector.broadcast %cst_240 : f32 to vector<1x1x16xf32>
    %219 = arith.maximumf %217, %218 : vector<1x1x16xf32>
    %c0_241 = arith.constant 0 : index
    %c0_242 = arith.constant 0 : index
    %c0_243 = arith.constant 0 : index
    %220 = vector.load %arg9[%c0_241, %c0_242, %c0_243] : memref<1x1x16xf32, #tpu.memory_space<vmem>>, vector<1x1x16xf32>
    %cst_244 = arith.constant 9.99999974E-6 : f32
    %221 = vector.broadcast %cst_244 : f32 to vector<1x1x16xf32>
    %222 = arith.addf %219, %221 : vector<1x1x16xf32>
    %223 = math.rsqrt %222 : vector<1x1x16xf32>
    %224 = arith.mulf %220, %223 : vector<1x1x16xf32>
    %c0_245 = arith.constant 0 : index
    %c0_246 = arith.constant 0 : index
    %c0_247 = arith.constant 0 : index
    %225 = vector.load %arg10[%c0_245, %c0_246, %c0_247] : memref<1x1x16xf32, #tpu.memory_space<vmem>>, vector<1x1x16xf32>
    %226 = arith.mulf %213, %224 : vector<1x1x16xf32>
    %227 = arith.subf %225, %226 : vector<1x1x16xf32>
    %228 = vector.broadcast %224 : vector<1x1x16xf32> to vector<2x16x16xf32>
    %229 = arith.mulf %206, %228 : vector<2x16x16xf32>
    %230 = vector.broadcast %227 : vector<1x1x16xf32> to vector<2x16x16xf32>
    %231 = arith.addf %229, %230 : vector<2x16x16xf32>
    %cst_248 = arith.constant 0.000000e+00 : f32
    %232 = vector.broadcast %cst_248 : f32 to vector<2x16x16xf32>
    %233 = arith.maximumf %231, %232 : vector<2x16x16xf32>
    %cst_249 = arith.constant 0.000000e+00 : bf16
    %234 = vector.broadcast %cst_249 : bf16 to vector<2x1x16xbf16>
    %c0_250 = arith.constant 0 : index
    %c0_251 = arith.constant 0 : index
    %c0_252 = arith.constant 0 : index
    %235 = vector.load %arg17[%c0_250, %c0_251, %c0_252] : memref<2x18x16xbf16, #tpu.memory_space<vmem>>, vector<2x1x16xbf16>
    tpu.vector_store %arg17[%c0_250, %c0_251, %c0_252], %234 {strides = array<i32>} : memref<2x18x16xbf16, #tpu.memory_space<vmem>>, vector<2x1x16xbf16>,
    %c0_253 = arith.constant 0 : index
    %c17 = arith.constant 17 : index
    %c0_254 = arith.constant 0 : index
    %236 = vector.load %arg17[%c0_253, %c17, %c0_254] : memref<2x18x16xbf16, #tpu.memory_space<vmem>>, vector<2x1x16xbf16>
    tpu.vector_store %arg17[%c0_253, %c17, %c0_254], %234 {strides = array<i32>} : memref<2x18x16xbf16, #tpu.memory_space<vmem>>, vector<2x1x16xbf16>,
    %237 = arith.truncf %233 : vector<2x16x16xf32> to vector<2x16x16xbf16>
    %c0_255 = arith.constant 0 : index
    %c1_256 = arith.constant 1 : index
    %c0_257 = arith.constant 0 : index
    %238 = vector.load %arg17[%c0_255, %c1_256, %c0_257] : memref<2x18x16xbf16, #tpu.memory_space<vmem>>, vector<2x16x16xbf16>
    tpu.vector_store %arg17[%c0_255, %c1_256, %c0_257], %237 {strides = array<i32>} : memref<2x18x16xbf16, #tpu.memory_space<vmem>>, vector<2x16x16xbf16>,
    %c0_258 = arith.constant 0 : index
    %c0_259 = arith.constant 0 : index
    %239 = vector.load %arg4[%c0_258, %c0_259] : memref<3x16xf32, #tpu.memory_space<vmem>>, vector<3x16xf32>
    %cst_260 = arith.constant 0.000000e+00 : f32
    %240 = vector.broadcast %cst_260 : f32 to vector<2x16xf32>
    %241 = vector.extract_strided_slice %239 {offsets = [0, 0], sizes = [1, 16], strides = [1, 1]} : vector<3x16xf32> to vector<1x16xf32>
    %242 = vector.shape_cast %241 : vector<1x16xf32> to vector<16xf32>
    %243 = vector.shape_cast %242 : vector<16xf32> to vector<1x1x16xf32>
    %c0_261 = arith.constant 0 : index
    %c0_262 = arith.constant 0 : index
    %c0_263 = arith.constant 0 : index
    %244 = vector.load %arg17[%c0_261, %c0_262, %c0_263] : memref<2x18x16xbf16, #tpu.memory_space<vmem>>, vector<2x16x16xbf16>
    %245 = arith.extf %244 : vector<2x16x16xbf16> to vector<2x16x16xf32>
    %246 = vector.broadcast %243 : vector<1x1x16xf32> to vector<2x16x16xf32>
    %247 = arith.mulf %245, %246 : vector<2x16x16xf32>
    %cst_264 = arith.constant dense<0.000000e+00> : vector<2x16xf32>
    %248 = vector.multi_reduction <add>, %247, %cst_264 [2] : vector<2x16x16xf32> to vector<2x16xf32>
    %249 = arith.addf %240, %248 : vector<2x16xf32>
    %250 = vector.extract_strided_slice %239 {offsets = [1, 0], sizes = [1, 16], strides = [1, 1]} : vector<3x16xf32> to vector<1x16xf32>
    %251 = vector.shape_cast %250 : vector<1x16xf32> to vector<16xf32>
    %252 = vector.shape_cast %251 : vector<16xf32> to vector<1x1x16xf32>
    %c0_265 = arith.constant 0 : index
    %c1_266 = arith.constant 1 : index
    %c0_267 = arith.constant 0 : index
    %253 = vector.load %arg17[%c0_265, %c1_266, %c0_267] : memref<2x18x16xbf16, #tpu.memory_space<vmem>>, vector<2x16x16xbf16>
    %254 = arith.extf %253 : vector<2x16x16xbf16> to vector<2x16x16xf32>
    %255 = vector.broadcast %252 : vector<1x1x16xf32> to vector<2x16x16xf32>
    %256 = arith.mulf %254, %255 : vector<2x16x16xf32>
    %cst_268 = arith.constant dense<0.000000e+00> : vector<2x16xf32>
    %257 = vector.multi_reduction <add>, %256, %cst_268 [2] : vector<2x16x16xf32> to vector<2x16xf32>
    %258 = arith.addf %249, %257 : vector<2x16xf32>
    %259 = vector.extract_strided_slice %239 {offsets = [2, 0], sizes = [1, 16], strides = [1, 1]} : vector<3x16xf32> to vector<1x16xf32>
    %260 = vector.shape_cast %259 : vector<1x16xf32> to vector<16xf32>
    %261 = vector.shape_cast %260 : vector<16xf32> to vector<1x1x16xf32>
    %c0_269 = arith.constant 0 : index
    %c2_270 = arith.constant 2 : index
    %c0_271 = arith.constant 0 : index
    %262 = vector.load %arg17[%c0_269, %c2_270, %c0_271] : memref<2x18x16xbf16, #tpu.memory_space<vmem>>, vector<2x16x16xbf16>
    %263 = arith.extf %262 : vector<2x16x16xbf16> to vector<2x16x16xf32>
    %264 = vector.broadcast %261 : vector<1x1x16xf32> to vector<2x16x16xf32>
    %265 = arith.mulf %263, %264 : vector<2x16x16xf32>
    %cst_272 = arith.constant dense<0.000000e+00> : vector<2x16xf32>
    %266 = vector.multi_reduction <add>, %265, %cst_272 [2] : vector<2x16x16xf32> to vector<2x16xf32>
    %267 = arith.addf %258, %266 : vector<2x16xf32>
    %268 = vector.shape_cast %267 : vector<2x16xf32> to vector<1x2x16xf32>
    %cst_273 = arith.constant dense<0.000000e+00> : vector<1xf32>
    %269 = vector.multi_reduction <add>, %268, %cst_273 [1, 2] : vector<1x2x16xf32> to vector<1xf32>
    %270 = vector.shape_cast %269 : vector<1xf32> to vector<1x1x1xf32>
    %271 = vector.extract %270[0, 0, 0] : f32 from vector<1x1x1xf32>
    %272 = vector.broadcast %271 : f32 to vector<1x1xf32>
    %273 = arith.mulf %267, %267 : vector<2x16xf32>
    %274 = vector.shape_cast %273 : vector<2x16xf32> to vector<1x2x16xf32>
    %cst_274 = arith.constant dense<0.000000e+00> : vector<1xf32>
    %275 = vector.multi_reduction <add>, %274, %cst_274 [1, 2] : vector<1x2x16xf32> to vector<1xf32>
    %276 = vector.shape_cast %275 : vector<1xf32> to vector<1x1x1xf32>
    %277 = vector.extract %276[0, 0, 0] : f32 from vector<1x1x1xf32>
    %278 = vector.broadcast %277 : f32 to vector<1x1xf32>
    %cst_275 = arith.constant 3.125000e-02 : f32
    %279 = vector.broadcast %cst_275 : f32 to vector<1x1xf32>
    %280 = arith.mulf %272, %279 : vector<1x1xf32>
    %cst_276 = arith.constant 3.125000e-02 : f32
    %281 = vector.broadcast %cst_276 : f32 to vector<1x1xf32>
    %282 = arith.mulf %278, %281 : vector<1x1xf32>
    %283 = arith.mulf %280, %280 : vector<1x1xf32>
    %284 = arith.subf %282, %283 : vector<1x1xf32>
    %cst_277 = arith.constant 0.000000e+00 : f32
    %285 = vector.broadcast %cst_277 : f32 to vector<1x1xf32>
    %286 = arith.maximumf %284, %285 : vector<1x1xf32>
    %c0_278 = arith.constant 0 : index
    %c0_279 = arith.constant 0 : index
    %287 = vector.load %arg11[%c0_278, %c0_279] : memref<1x1xf32, #tpu.memory_space<vmem>>, vector<1x1xf32>
    %cst_280 = arith.constant 9.99999974E-6 : f32
    %288 = vector.broadcast %cst_280 : f32 to vector<1x1xf32>
    %289 = arith.addf %286, %288 : vector<1x1xf32>
    %290 = math.rsqrt %289 : vector<1x1xf32>
    %291 = arith.mulf %287, %290 : vector<1x1xf32>
    %c0_281 = arith.constant 0 : index
    %c0_282 = arith.constant 0 : index
    %292 = vector.load %arg12[%c0_281, %c0_282] : memref<1x1xf32, #tpu.memory_space<vmem>>, vector<1x1xf32>
    %293 = arith.mulf %280, %291 : vector<1x1xf32>
    %294 = arith.subf %292, %293 : vector<1x1xf32>
    %295 = vector.broadcast %291 : vector<1x1xf32> to vector<2x16xf32>
    %296 = arith.mulf %267, %295 : vector<2x16xf32>
    %297 = vector.broadcast %294 : vector<1x1xf32> to vector<2x16xf32>
    %298 = arith.addf %296, %297 : vector<2x16xf32>
    %299 = arith.negf %298 : vector<2x16xf32>
    %300 = math.exp %299 : vector<2x16xf32>
    %cst_283 = arith.constant 1.000000e+00 : f32
    %301 = vector.broadcast %cst_283 : f32 to vector<2x16xf32>
    %302 = arith.addf %301, %300 : vector<2x16xf32>
    %303 = arith.divf %301, %302 : vector<2x16xf32>
    %c0_284 = arith.constant 0 : index
    %c0_285 = arith.constant 0 : index
    %304 = vector.load %arg13[%c0_284, %c0_285] : memref<2x16xf32, #tpu.memory_space<vmem>>, vector<2x16xf32>
    tpu.vector_store %arg13[%c0_284, %c0_285], %303 {strides = array<i32>} : memref<2x16xf32, #tpu.memory_space<vmem>>, vector<2x16xf32>,
    return
  }
}

</mosaic_0001>

<bundles_post_ra>
// kernel: baseline_segmentation_net.1
= control target key start
LH: loop header
LB: loop body
LE: loop exit
PB: predicated region body
PF: predicated region fallthrough
CT: control target
= control target key end

     0   :  { %s6217_s0 = inlined_call_operand.vmem [shape: bf16[2,16,29], index: 0, kind: input, shape index: {}]   ;;  %s6218_s1 = inlined_call_operand.vmem [shape: bf16[11,29,64], index: 1, kind: input, shape index: {}]   ;;  %s6219_s2 = inlined_call_operand.vmem [shape: bf16[9,64,32], index: 2, kind: input, shape index: {}]   ;;  %s6220_s3 = inlined_call_operand.vmem [shape: bf16[7,32,16], index: 3, kind: input, shape index: {}]   ;;  %s6221_s4 = inlined_call_operand.vmem [shape: f32[3,16], index: 4, kind: input, shape index: {}]   ;;  %s6222_s5 = inlined_call_operand.vmem [shape: f32[1,1,64], index: 5, kind: input, shape index: {}]   ;;  %s6223_s6 = inlined_call_operand.vmem [shape: f32[1,1,64], index: 6, kind: input, shape index: {}]   ;;  %s6224_s7 = inlined_call_operand.vmem [shape: f32[1,1,32], index: 7, kind: input, shape index: {}]   ;;  %s6225_s8 = inlined_call_operand.vmem [shape: f32[1,1,32], index: 8, kind: input, shape index: {}]   ;;  %s6226_s9 = inlined_call_operand.vmem [shape: f32[1,1,16], index: 9, kind: input, shape index: {}]   ;;  %s6227_s10 = inlined_call_operand.vmem [shape: f32[1,1,16], index: 10, kind: input, shape index: {}]   ;;  %s6228_s11 = inlined_call_operand.<no memory space> [shape: f32[1,1], index: 11, kind: input, shape index: {}]   ;;  %s6229_s13 = inlined_call_operand.hbm [shape: f32[2,16], index: 13, kind: output, shape index: {}]   ;;  %s6230_s12 = inlined_call_operand.<no memory space> [shape: f32[1,1], index: 12, kind: input, shape index: {}]  }
   0x1   :  { %v18_v0 = vstv %s6228_s11  ;;  %v20_v1 = vstv %s6230_s12 }
   0x2   :  { %19 = vst [vmem:[#allocation6] sm:$0x1] %v18_v0  ;;  %21 = vst [vmem:[#allocation7] sm:$0x1] %v20_v1 }
   0x3   :  { %v4931_v2 = vld [vmem:[%s6218_s1 + $0x10] sm:$0xff]   ;;  %vm226_vm0 = vcmask 1045504   ;;  %v4932_v3 = vld [vmem:[%s6218_s1 + $0x18] sm:$0x7f]   ;;  %vm227_vm1 = vcmask 1046528   ;;  %v5059_v6 = vmov 65535  }
   0x4   :  { %4574 = vmatprep.subr.bf16.mxu0 %v4931_v2  ;;  %v50_v4 = vld [vmem:[%s6217_s0] sm:$0xf]  ;;  %v51_v5 = vld [vmem:[%s6217_s0 + $0x4] sm:$0xf]  ;;  %v228_v7 = vsel %vm226_vm0, 4294967295, %v5059_v6  ;;  %vm54_vm2 = vcmask 231424  }
   0x5   :  { %4575 = vmatpush3.bf16.msra.mxu0 %v4931_v2  ;;  %vm55_vm3 = vsmask.f32 2304  ;;  %v57_v8 = vld [vmem:[#allocation2] sm:$0x7]  ;;  %v5152_v9 = vsel %vm227_vm1, %v228_v7, 0  ;;  %vm63_vm5 = vcmask 232450  }
   0x6   :  { %vm5155_vm4 = vmand %vm54_vm2, %vm55_vm3  ;;  %vm64_vm6 = vsmask.f32 7946  ;;  %v66_v11 = vld [vmem:[#allocation2 + $0x8] sm:$0xc]  ;;  %v231_v12 = vand.u32 %v4932_v3, %v5152_v9  ;;  %v78_v15 = vshrl.u32 %v50_v4, 16  ;;  %v81_v17 = vshll.u32 %v50_v4, 16 }
   0x7   :  { %v58_v13 = vsel %vm5155_vm4, 0, %v57_v8  ;;  %vm5162_vm7 = vmand %vm63_vm5, %vm64_vm6  ;;  %v87_v18 = vshrl.u32 %v51_v5, 16  ;;  %v90_v19 = vshll.u32 %v51_v5, 16  ;;  %vm75_vm8 = vsmask.f32 6416  ;;  %v5171_v24 = vld [vmem:[%s6218_s1] sm:$0xff]  }
   0x8   :  { %59 = vst [vmem:[#allocation2] sm:$0x7] %v58_v13  ;;  %v67_v16 = vsel %vm5162_vm7, 0, %v66_v11  ;;  %4576 = vmatprep.subr.bf16.mxu0 %v231_v12  ;;  %v80_v20 = vrot.slane %v78_v15, 5  ;;  %v83_v21 = vrot.slane %v81_v17, 6  ;;  %vm5183_vm9 = vmor %vm55_vm3, %vm75_vm8  ;;  %vm124_vm10 = vcmask 232448  }
   0x9   :  { %68 = vst [vmem:[#allocation2 + $0x8] sm:$0xc] %v67_v16  ;;  %4577 = vmatpush3.bf16.msra.mxu0 %v231_v12  ;;  %v89_v22 = vrot.slane %v87_v18, 5  ;;  %v92_v23 = vrot.slane %v90_v19, 6  ;;  %v52_v25 = vld [vmem:[%s6217_s0 + $0x8] sm:$0xf] }
   0xa   :  { %v53_v26 = vld [vmem:[%s6217_s0 + $0xc] sm:$0xf]  ;;  %v60_v27 = vld [vmem:[#allocation2 + $0x10] sm:$0x7]  ;;  %v84_v28 = vor.u32 %v83_v21, %v80_v20  ;;  %4582 = vmatprep.subr.bf16.mxu0 %v5171_v24  ;;  %v71_v31 = vld [vmem:[#allocation2 + $0x18] sm:$0xc] }
   0xb   :  { %v93_v29 = vor.u32 %v92_v23, %v89_v22  ;;  %v61_v30 = vsel %vm5155_vm4, 0, %v60_v27  ;;  %v97_v32 = vshrl.u32 %v52_v25, 16  ;;  %v72_v34 = vsel %vm5162_vm7, 0, %v71_v31 }
   0xc   :  { %62 = vst [vmem:[#allocation2 + $0x10] sm:$0x7] %v61_v30  ;;  %v100_v35 = vshll.u32 %v52_v25, 16  ;;  %v106_v36 = vshrl.u32 %v53_v26, 16  ;;  %v109_v37 = vshll.u32 %v53_v26, 16  ;;  %v85_v38 = vrot.slane %v84_v28, 4 }
   0xd   :  { %v95_v39 = vrot.slane %v93_v29, 4  ;;  %73 = vst [vmem:[#allocation2 + $0x18] sm:$0xc] %v72_v34  ;;  %v99_v40 = vrot.slane %v97_v32, 5  ;;  %vm151_vm11 = vsmask.f32 3328 }
   0xe   :  { %v102_v42 = vrot.slane %v100_v35, 6  ;;  %v108_v43 = vrot.slane %v106_v36, 5  ;;  %v111_v44 = vrot.slane %v109_v37, 6  ;;  %v94_v45 = vsel %vm5183_vm9, %v85_v38, %v93_v29  ;;  %v4934_v32 = vld [vmem:[%s6218_s1 + $0x8] sm:$0x7f]  }
   0xf   :  { %v121_v41 = vld [vmem:[#allocation2] sm:$0xc]  ;;  %125 = vst.msk [vmem:[#allocation2 + $0x4] sm:$0xf] %vm124_vm10, %v94_v45  ;;  %vm152_vm12 = vsmask.f32 7440 }
  0x10   :  { %v122_v46 = vsel %vm5162_vm7, %v84_v28, %v121_v41  ;;  %v126_v47 = vld [vmem:[#allocation2 + $0x8] sm:$0x7]  ;;  %v103_v49 = vor.u32 %v102_v42, %v99_v40  ;;  %v112_v50 = vor.u32 %v111_v44, %v108_v43  ;;  %vm5220_vm13 = vmor %vm151_vm11, %vm152_vm12  ;;  %vm219_vm14 = vcmask 236544  }
  0x11   :  { %123 = vst [vmem:[#allocation2] sm:$0xc] %v122_v46  ;;  %v127_v48 = vsel %vm5155_vm4, %v95_v39, %v126_v47  ;;  %v310_v40 = vand.u32 %v4934_v32, %v5152_v9  ;;  %vm372_vm15 = vcmask 1042432   ;;  %vm373_vm2 = vcmask 1046532   ;;  %v4935_v46 = vld [vmem:[%s6218_s1 + $0x20] sm:$0xff]  }
  0x12   :  { %128 = vst [vmem:[#allocation2 + $0x8] sm:$0x7] %v127_v48  ;;  %v104_v51 = vrot.slane %v103_v49, 4  ;;  %v114_v52 = vrot.slane %v112_v50, 4  ;;  %v4937_v47 = vld [vmem:[%s6218_s1 + $0x28] sm:$0x7f]   ;;  %vm5262_vm3 = vmor %vm372_vm15, %vm373_vm2 }
  0x13   :  { %v129_v53 = vld [vmem:[#allocation2 + $0x10] sm:$0xc]  ;;  %vm612_vm5 = vcmask 1045508   ;;  %vm957_vm8 = vsmask.f32 4368  ;;  %vm69_vm12 = vcmask 229376  }
  0x14   :  { %v113_v54 = vsel %vm5183_vm9, %v104_v51, %v112_v50  ;;  %v130_v55 = vsel %vm5162_vm7, %v103_v49, %v129_v53  ;;  %v133_v56 = vld [vmem:[#allocation2 + $0x18] sm:$0x7]  ;;  %vm956_vm7 = vsmask.f32 256  ;;  %vm714_vm11 = vsmask.f32 1280 }
  0x15   :  { %131 = vst [vmem:[#allocation2 + $0x10] sm:$0xc] %v130_v55  ;;  %132 = vst.msk [vmem:[#allocation2 + $0x14] sm:$0xf] %vm124_vm10, %v113_v54  ;;  %v134_v57 = vsel %vm5155_vm4, %v114_v52, %v133_v56  ;;  %vm611_vm4 = vcmask 1041408  }
  0x16   :  { %135 = vst [vmem:[#allocation2 + $0x18] sm:$0x7] %v134_v57  ;;  %v5203_v59 = vld [vmem:[#allocation2 + $0x4] sm:$0xf]  ;;  %vm5322_vm6 = vmor %vm611_vm4, %vm612_vm5  ;;  %vm715_vm15 = vsmask.f32 5392 }
  0x17   :  { %v5208_v63 = vshll.u32 %v5203_v59, 16  ;;  %v5211_v0 = vshrl.u32 %v5203_v59, 16  ;;  %v377_v41 = vrot.slane %v5203_v59, 5  ;;  %vm5357_vm10 = vmor %vm956_vm7, %vm957_vm8  ;;  %vm853_vm4 = vcmask 1040384  }
  0x18   :  { %v136_v58 = vld [vmem:[#allocation2] sm:$0xf]  ;;  %vm5425_vm2 = vmor %vm714_vm11, %vm715_vm15  ;;  %vm854_vm5 = vcmask 1044484  }
  0x19   :  { %v5205_v60 = vld [vmem:[#allocation2 + $0x8] sm:$0x1]  ;;  %v155_v61 = vshrl.u32 %v136_v58, 16  ;;  %v158_v62 = vshll.u32 %v136_v58, 16  ;;  %v166_v4 = vrot.slane %v5208_v63, 5  ;;  %v170_v5 = vrot.slane %v5211_v0, 4  ;;  %vm5442_vm8 = vmor %vm853_vm4, %vm854_vm5 }
  0x1a   :  { %v174_v1 = vshll.u32 %v5205_v60, 16  ;;  %v4094_v38 = vcombine.low %v136_v58, %v5203_v59  ;;  %v361_v42 = vld [vmem:[#allocation2] sm:$0xe]  ;;  %v380_v45 = vrot.slane %v5205_v60, 5  ;;  %v379_v49 = vrot.slane %v377_v41, 4 }
  0x1b   :  { %v157_v2 = vrot.slane %v155_v61, 4  ;;  %v160_v3 = vrot.slane %v158_v62, 5  ;;  %v171_v7 = vor.u32 %v170_v5, %v166_v4  ;;  %v476_v43 = vshrl.u32 %v361_v42, 16 }
  0x1c   :  { %v176_v8 = vrot.slane %v174_v1, 5  ;;  %v5216_v10 = vld [vmem:[#allocation2 + $0x10] sm:$0xf]  ;;  %v5218_v11 = vld [vmem:[#allocation2 + $0x14] sm:$0xf]  ;;  %v479_v44 = vshll.u32 %v361_v42, 16  ;;  %v381_v58 = vsel %vm5262_vm3, %v379_v49, %v380_v45 }
  0x1d   :  { %v161_v6 = vor.u32 %v160_v3, %v157_v2  ;;  %v5224_v13 = vld [vmem:[#allocation2 + $0x18] sm:$0x1]  ;;  %v179_v14 = vshrl.u32 %v5216_v10, 16  ;;  %v182_v15 = vshll.u32 %v5216_v10, 16  ;;  %v5229_v16 = vshll.u32 %v5218_v11, 16 }
  0x1e   :  { %v5232_v17 = vshrl.u32 %v5218_v11, 16  ;;  %v172_v19 = vrot.slane %v171_v7, 4  ;;  %v198_v20 = vshll.u32 %v5224_v13, 16  ;;  %v4104_v48 = vrot.slane %v361_v42, 9  ;;  %v362_v51 = vld [vmem:[#allocation2 + $0x10] sm:$0xe] }
  0x1f   :  { %v162_v18 = vrot.slane %v161_v6, 4  ;;  %v181_v21 = vrot.slane %v179_v14, 4  ;;  %v184_v22 = vrot.slane %v182_v15, 5  ;;  %v190_v23 = vrot.slane %v5229_v16, 5 }
  0x20   :  { %v194_v25 = vrot.slane %v5232_v17, 4  ;;  %v177_v27 = vsel %vm5220_vm13, %v172_v19, %v176_v8  ;;  %v200_v31 = vrot.slane %v198_v20, 5  ;;  %v384_v52 = vrot.slane %v5218_v11, 5  ;;  %v5281_v19 = vld [vmem:[#allocation2 + $0x18] sm:$0x3] }
  0x21   :  { %v167_v26 = vsel %vm5220_vm13, %v162_v18, %v166_v4  ;;  %v185_v29 = vor.u32 %v184_v22, %v181_v21  ;;  %v478_v53 = vrot.slane %v476_v43, 5  ;;  %v481_v54 = vrot.slane %v479_v44, 6 }
  0x22   :  { %v4088_v28 = vcombine.low %v167_v26, %v177_v27  ;;  %v195_v30 = vor.u32 %v194_v25, %v190_v23  ;;  %v484_v55 = vrot.slane %v5211_v0, 5  ;;  %v485_v56 = vrot.slane %v5208_v63, 6 }
  0x23   :  { %v186_v34 = vrot.slane %v185_v29, 4  ;;  %v378_v57 = vsel %vm5262_vm3, %v4104_v48, %v377_v41  ;;  %v499_v62 = vshrl.u32 %v362_v51, 16  ;;  %v502_v1 = vshll.u32 %v362_v51, 16  ;;  %v5310_v41 = vld [vmem:[#allocation2 + $0x8] sm:$0x7] }
  0x24   :  { %4578 = vmatprep.mubr.msk.bf16.mxu0 %vm219_vm14, %v4088_v28  ;;  %v196_v35 = vrot.slane %v195_v30, 4  ;;  %v4095_v2 = vcombine.low %v5216_v10, %v5218_v11  ;;  %v413_v3 = vand.u32 %v4937_v47, %v5152_v9  ;;  %v387_v4 = vrot.slane %v5224_v13, 5  ;;  %v4938_v10 = vld [vmem:[%s6218_s1 + $0x30] sm:$0xff]   ;;  %v5295_v30 = vld [vmem:[#allocation2] sm:$0xc] }
  0x25   :  { %v191_v36 = vsel %vm5220_vm13, %v186_v34, %v190_v23  ;;  %v4106_v5 = vcombine.low %v378_v57, %v381_v58  ;;  %v4105_v6 = vrot.slane %v362_v51, 9  ;;  %v482_v7 = vor.u32 %v481_v54, %v478_v53  ;;  %v5319_v51 = vld [vmem:[#allocation2 + $0x8] sm:$0xf]  ;;  %v5332_v58 = vld [vmem:[#allocation2 + $0x10] sm:$0xc] }
  0x26   :  { %v201_v37 = vsel %vm5220_vm13, %v196_v35, %v200_v31  ;;  %v386_v8 = vrot.slane %v384_v52, 4  ;;  %v486_v14 = vor.u32 %v485_v56, %v484_v55  ;;  %v501_v20 = vrot.slane %v499_v62, 5  ;;  %v5330_v56 = vld [vmem:[#allocation2] sm:$0x8] }
  0x27   :  { %v4089_v39 = vcombine.low %v191_v36, %v201_v37  ;;  %v504_v21 = vrot.slane %v502_v1, 6  ;;  %v507_v22 = vrot.slane %v5232_v17, 5  ;;  %v508_v23 = vrot.slane %v5229_v16, 6  ;;  %v4939_v36 = vld [vmem:[%s6218_s1 + $0x38] sm:$0x7f]  }
  0x28   :  { %v385_v13 = vsel %vm5262_vm3, %v4105_v6, %v384_v52  ;;  %v483_v25 = vrot.slane %v482_v7, 4  ;;  %v388_v26 = vsel %vm5262_vm3, %v386_v8, %v387_v4  ;;  %v488_v27 = vrot.slane %v486_v14, 4  ;;  %v4941_v37 = vld [vmem:[%s6218_s1 + $0x48] sm:$0x7f]   ;;  %v4940_v7 = vld [vmem:[%s6218_s1 + $0x40] sm:$0xff]  }
  0x29   :  { %4579 = vmatmul.mubr.msk.bf16.vlgmr.msra.gmra.mrb[0].mxu0 %vm219_vm14, %v4089_v39  ;;  %v513_v29 = vshrl.u32 %v5281_v19, 16  ;;  %v505_v31 = vor.u32 %v504_v21, %v501_v20  ;;  %v5297_v32 = vor.u32 %v508_v23, %v507_v22  ;;  %v516_v34 = vshll.u32 %v5281_v19, 16 }
  0x2a   :  { %4583 = vmatpush3.bf16.msra.mxu0 %v5171_v24  ;;  %4586 = vmatprep.mubr.msk.bf16.mxu0 %vm219_vm14, %v4094_v38  ;;  %v5266_v24 = vld [vmem:[#allocation2 + $0x8] sm:$0x3]  ;;  %v616_v35 = vrot.slane %v5203_v59, 6  ;;  %v4107_v38 = vcombine.low %v385_v13, %v388_v26  ;;  %v487_v39 = vsel %vm5183_vm9, %v483_v25, %v486_v14  ;;  %v718_v45 = vshrl.u32 %v5295_v30, 16 }
  0x2b   :  { %4584 = vmatprep.subr.bf16.mxu0 %v310_v40  ;;  %v490_v60 = vshrl.u32 %v5266_v24, 16  ;;  %v493_v61 = vshll.u32 %v5266_v24, 16  ;;  %v515_v43 = vrot.slane %v513_v29, 5  ;;  %v619_v44 = vrot.slane %v5266_v24, 6 }
  0x2c   :  { %v511_v47 = vrot.slane %v5297_v32, 4  ;;  %v518_v48 = vrot.slane %v516_v34, 6  ;;  %v618_v49 = vrot.slane %v616_v35, 4  ;;  %v721_v53 = vshll.u32 %v5295_v30, 16 }
  0x2d   :  { %v492_v15 = vrot.slane %v490_v60, 5  ;;  %v495_v18 = vrot.slane %v493_v61, 6  ;;  %v726_v54 = vrot.slane %v5211_v0, 6  ;;  %v727_v24 = vrot.slane %v5208_v63, 7  ;;  %v5334_v60 = vld [vmem:[#allocation2 + $0x10] sm:$0x8] }
  0x2e   :  { %4585 = vmatpush3.bf16.msra.mxu0 %v310_v40  ;;  %v4126_v40 = vrot.slane %v5295_v30, 10  ;;  %v732_v55 = vshrl.u32 %v5310_v41, 16  ;;  %v5336_v61 = vld [vmem:[#allocation2 + $0x18] sm:$0xf]  ;;  %v545_v62 = vand.u32 %v4939_v36, %v5152_v9  ;;  %v5340_v1 = vand.u32 %v4941_v37, %v5152_v9 }
  0x2f   :  { %4590 = vmatprep.subr.bf16.mxu0 %v4935_v46  ;;  %v496_v28 = vor.u32 %v495_v18, %v492_v15  ;;  %v964_v6 = vrot.slane %v5211_v0, 7  ;;  %v741_v8 = vshrl.u32 %v5332_v58, 16  ;;  %v969_v15 = vshrl.u32 %v5319_v51, 16 }
  0x30   :  { %v5347_v4 = vsel %vm5322_vm6, %v4126_v40, %v616_v35  ;;  %v972_v18 = vshll.u32 %v5319_v51, 16  ;;  %v977_v20 = vshrl.u32 %v5334_v60, 16  ;;  %v519_v21 = vor.u32 %v518_v48, %v515_v43  ;;  %v5391_v48 = vld [vmem:[#allocation2 + $0x18] sm:$0x7] }
  0x31   :  { %v497_v42 = vsel %vm5183_vm9, %v488_v27, %v496_v28  ;;  %v965_v23 = vor.u32 %v964_v6, %v5208_v63  ;;  %v967_v13 = vrot.slane %v964_v6, 4  ;;  %v971_v25 = vrot.slane %v969_v15, 7 }
  0x32   :  { %v4116_v57 = vcombine.low %v487_v39, %v497_v42  ;;  %v4161_v26 = vrot.slane %v977_v20, 11  ;;  %v981_v27 = vrot.slane %v5232_v17, 7  ;;  %v986_v28 = vshrl.u32 %v5336_v61, 16 }
  0x33   :  { %v620_v29 = vsel %vm5322_vm6, %v618_v49, %v619_v44  ;;  %v744_v30 = vshll.u32 %v5332_v58, 16  ;;  %v974_v34 = vor.u32 %v972_v18, %v971_v25  ;;  %v520_v39 = vsel %vm5183_vm9, %v511_v47, %v519_v21 }
  0x34   :  { %v982_v35 = vor.u32 %v981_v27, %v5229_v16  ;;  %v984_v36 = vrot.slane %v981_v27, 4  ;;  %v988_v37 = vrot.slane %v986_v28, 7  ;;  %v723_v40 = vrot.slane %v721_v53, 7 }
  0x35   :  { %4587 = vmatmul.mubr.msk.bf16.vlgmr.msra.gmra.mrb[0].mxu0 %vm219_vm14, %v4095_v2  ;;  %v5342_v2 = vrot.slane %v718_v45, 6  ;;  %v975_v42 = vsel %vm5357_vm10, %v967_v13, %v974_v34  ;;  %v5060_v45 = vmov 0   ;;  %v623_v47 = vrot.slane %v5218_v11, 6 }
  0x36   :  { %4591 = vmatpush3.bf16.msra.mxu0 %v4935_v46  ;;  %4594 = vmatprep.mubr.msk.bf16.mxu0 %vm219_vm14, %v4106_v5  ;;  %v5316_v46 = vrot.slane %v505_v31, 4  ;;  %v960_v5 = vshrl.u32 %v5330_v56, 16  ;;  %v989_v31 = vshll.u32 %v5336_v61, 16  ;;  %v983_v43 = vsel %vm5357_vm10, %v4161_v26, %v982_v35  ;;  %70 = vst.msk [vmem:[#allocation2 + $0xc] sm:$0x1] %vm69_vm12, %v5060_v45 }
  0x37   :  { %4592 = vmatprep.subr.bf16.mxu0 %v413_v3  ;;  %74 = vst.msk [vmem:[#allocation2 + $0x1c] sm:$0x1] %vm69_vm12, %v5060_v45  ;;  %4930 = vset.pattern.permute.xlu1 %v5060_v45  ;;  %v746_v6 = vrot.slane %v744_v30, 7  ;;  %v724_v18 = vor.u32 %v723_v40, %v5342_v2  ;;  %v734_v20 = vrot.slane %v732_v55, 6  ;;  %v625_v21 = vrot.slane %v623_v47, 4  ;;  %v4942_v55 = vld [vmem:[%s6218_s1 + $0x50] sm:$0xff]  }
  0x38   :  { %v4160_v22 = vrot.slane %v960_v5, 11  ;;  %v991_v44 = vor.u32 %v989_v31, %v988_v37  ;;  %4929 = vset.pattern.permute.xlu0 %v5060_v45  ;;  %v758_v0 = vshll.u32 %v5391_v48, 16  ;;  %v865_v25 = vrot.slane %v5218_v11, 7  ;;  %v4943_v26 = vld [vmem:[%s6218_s1 + $0x58] sm:$0x7f]  }
  0x39   :  { %v725_v2 = vrot.slane %v724_v18, 4  ;;  %v861_v31 = vrot.slane %v5310_v41, 7  ;;  %v4149_v34 = vrot.slane %v5334_v60, 11  ;;  %v4944_v60 = vld [vmem:[%s6218_s1 + $0x60] sm:$0xff]  }
  0x3a   :  { %4593 = vmatpush3.bf16.msra.mxu0 %v413_v3  ;;  %v735_v3 = vshll.u32 %v5310_v41, 16  ;;  %v992_v5 = vsel %vm5357_vm10, %v984_v36, %v991_v44  ;;  %v760_v28 = vrot.slane %v758_v0, 7  ;;  %v787_v41 = vand.u32 %v4943_v26, %v5152_v9 }
  0x3b   :  { %4598 = vmatprep.subr.bf16.mxu0 %v4938_v10  ;;  %v5404_v15 = vcombine.low %v983_v43, %v992_v5 }
  0x41   :  { %4595 = vmatmul.mubr.msk.bf16.vlgmr.msra.gmra.mrb[0].mxu0 %vm219_vm14, %v4107_v38  ;;  %v510_v38 = vsel %vm5183_vm9, %v5316_v46, %v5297_v32  ;;  %v4128_v32 = vcombine.low %v5347_v4, %v620_v29  ;;  %v4127_v46 = vrot.slane %v5332_v58, 10  ;;  %v728_v58 = vor.u32 %v727_v24, %v726_v54 }
  0x42   :  { %4599 = vmatpush3.bf16.msra.mxu0 %v4938_v10  ;;  %4602 = vmatprep.mubr.msk.bf16.mxu0 %vm219_vm14, %v4116_v57  ;;  %v966_v10 = vsel %vm5357_vm10, %v4160_v22, %v965_v23  ;;  %v4117_v53 = vcombine.low %v510_v38, %v520_v39  ;;  %v749_v57 = vrot.slane %v5232_v17, 6  ;;  %v743_v4 = vrot.slane %v741_v8, 6 }
  0x43   :  { %4600 = vmatprep.subr.bf16.mxu0 %v545_v62  ;;  %v5393_v49 = vcombine.low %v966_v10, %v975_v42  ;;  %v737_v17 = vrot.slane %v735_v3, 7  ;;  %v626_v22 = vrot.slane %v5281_v19, 6  ;;  %v858_v24 = vrot.slane %v5203_v59, 7  ;;  %v4945_v42 = vld [vmem:[%s6218_s1 + $0x68] sm:$0x7f]  }
  0x44   :  { %v747_v54 = vor.u32 %v746_v6, %v743_v4  ;;  %v730_v19 = vrot.slane %v728_v58, 4  ;;  %v624_v23 = vsel %vm5322_vm6, %v4127_v46, %v623_v47  ;;  %v4148_v29 = vrot.slane %v5330_v56, 11 }
  0x45   :  { %v738_v3 = vor.u32 %v737_v17, %v734_v20  ;;  %v860_v10 = vrot.slane %v858_v24, 4  ;;  %v729_v35 = vsel %vm5425_vm2, %v725_v2, %v728_v58  ;;  %v867_v56 = vrot.slane %v865_v25, 4 }
  0x46   :  { %4601 = vmatpush3.bf16.msra.mxu0 %v545_v62  ;;  %v750_v62 = vrot.slane %v5229_v16, 7  ;;  %v755_v16 = vshrl.u32 %v5391_v48, 16  ;;  %v748_v30 = vrot.slane %v747_v54, 4 }
  0x47   :  { %4606 = vmatprep.subr.bf16.mxu0 %v4940_v7  ;;  %v739_v36 = vsel %vm5425_vm2, %v730_v19, %v738_v3  ;;  %v862_v46 = vsel %vm5442_vm8, %v860_v10, %v861_v31 }
  0x48   :  { %v751_v63 = vor.u32 %v750_v62, %v749_v57  ;;  %v757_v8 = vrot.slane %v755_v16, 6  ;;  %v4138_v39 = vcombine.low %v729_v35, %v739_v36  ;;  %v4946_v57 = vld [vmem:[%s6218_s1 + $0x70] sm:$0xff]  }
  0x4a   :  { %v753_v27 = vrot.slane %v751_v63, 4  ;;  %v761_v40 = vor.u32 %v760_v28, %v757_v8  ;;  %v752_v43 = vsel %vm5425_vm2, %v748_v30, %v751_v63 }
  0x4c   :  { %v762_v44 = vsel %vm5425_vm2, %v753_v27, %v761_v40 }
  0x4d   :  { %4603 = vmatmul.mubr.msk.bf16.vlgmr.msra.gmra.mrb[0].mxu0 %vm219_vm14, %v4117_v53  ;;  %v4139_v47 = vcombine.low %v752_v43, %v762_v44  ;;  %v894_v53 = vand.u32 %v4945_v42, %v5152_v9 }
  0x4e   :  { %4607 = vmatpush3.bf16.msra.mxu0 %v4940_v7  ;;  %4610 = vmatprep.mubr.msk.bf16.mxu0 %vm219_vm14, %v4128_v32  ;;  %v627_v7 = vsel %vm5322_vm6, %v625_v21, %v626_v22  ;;  %v859_v32 = vsel %vm5442_vm8, %v4148_v29, %v858_v24 }
  0x4f   :  { %4608 = vmatprep.subr.bf16.mxu0 %v5340_v1  ;;  %v4129_v38 = vcombine.low %v624_v23, %v627_v7 }
  0x52   :  { %4609 = vmatpush3.bf16.msra.mxu0 %v5340_v1  ;;  %v868_v1 = vrot.slane %v5391_v48, 7  ;;  %v4150_v48 = vcombine.low %v859_v32, %v862_v46 }
  0x53   :  { %4614 = vmatprep.subr.bf16.mxu0 %v4942_v55 }
  0x59   :  { %4611 = vmatmul.mubr.msk.bf16.vlgmr.msra.gmra.mrb[0].mxu0 %vm219_vm14, %v4129_v38 }
  0x5a   :  { %4615 = vmatpush3.bf16.msra.mxu0 %v4942_v55  ;;  %4618 = vmatprep.mubr.msk.bf16.mxu0 %vm219_vm14, %v4138_v39 }
  0x5b   :  { %4616 = vmatprep.subr.bf16.mxu0 %v787_v41 }
  0x5e   :  { %4617 = vmatpush3.bf16.msra.mxu0 %v787_v41 }
  0x5f   :  { %4622 = vmatprep.subr.bf16.mxu0 %v4944_v60 }
  0x65   :  { %4619 = vmatmul.mubr.msk.bf16.vlgmr.msra.gmra.mrb[0].mxu0 %vm219_vm14, %v4139_v47 }
  0x66   :  { %4623 = vmatpush3.bf16.msra.mxu0 %v4944_v60  ;;  %4626 = vmatprep.mubr.msk.bf16.mxu0 %vm219_vm14, %v4150_v48 }
  0x67   :  { %4624 = vmatprep.subr.bf16.mxu0 %v894_v53 }
  0x68   :  { %22 = vsyncpa [#allocation9], 0  ;;  %v866_v62 = vsel %vm5442_vm8, %v4149_v34, %v865_v25  ;;  %v869_v5 = vsel %vm5442_vm8, %v867_v56, %v868_v1  ;;  %v4947_v58 = vld [vmem:[%s6218_s1 + $0x78] sm:$0x7f]   ;;  %v1156_v18 = vld [vmem:[#allocation2 + $0x4] sm:$0xf]  ;;  %v4172_v19 = vcombine.low %v5203_v59, %v5319_v51  ;;  %v4173_v41 = vcombine.low %v5218_v11, %v5336_v61 }
  0x69   :  { %v4151_v4 = vcombine.low %v866_v62, %v869_v5  ;;  %v1017_v6 = vand.u32 %v4947_v58, %v5152_v9  ;;  %v5478_v20 = vld [vmem:[#allocation2 + $0x8] sm:$0xf]  ;;  %v4948_v17 = vld [vmem:[%s6218_s1 + $0x80] sm:$0xff]   ;;  %v1168_v16 = vshrl.u32 %v1156_v18, 16  ;;  %v1171_v21 = vshll.u32 %v1156_v18, 16  ;;  %v4950_v51 = vld [vmem:[%s6218_s1 + $0x90] sm:$0xff]  }
  0x6a   :  { %4625 = vmatpush3.bf16.msra.mxu0 %v894_v53  ;;  %v1177_v22 = vshll.u32 %v5478_v20, 16  ;;  %v1181_v63 = vshrl.u32 %v5478_v20, 16  ;;  %v4949_v0 = vld [vmem:[%s6218_s1 + $0x88] sm:$0x7f]   ;;  %v1159_v25 = vld [vmem:[#allocation2 + $0x14] sm:$0xf] }
  0x6b   :  { %4630 = vmatprep.subr.bf16.mxu0 %v4946_v57  ;;  %v1170_v54 = vrot.slane %v1168_v16, 4  ;;  %v1173_v24 = vrot.slane %v1171_v21, 5  ;;  %v1158_v2 = vld [vmem:[#allocation2 + $0xc] sm:$0x1]  ;;  %v1101_v3 = vand.u32 %v4949_v0, %v5152_v9  ;;  %v5494_v26 = vld [vmem:[#allocation2 + $0x18] sm:$0xf] }
  0x6c   :  { %v1183_v55 = vrot.slane %v1181_v63, 4  ;;  %v1187_v7 = vshll.u32 %v1158_v2, 16  ;;  %v1192_v27 = vshrl.u32 %v1159_v25, 16  ;;  %v1195_v28 = vshll.u32 %v1159_v25, 16  ;;  %v4952_v56 = vld [vmem:[%s6218_s1 + $0x98] sm:$0x7f]  }
  0x6d   :  { %v1174_v8 = vor.u32 %v1173_v24, %v1170_v54  ;;  %v1201_v29 = vshll.u32 %v5494_v26, 16  ;;  %v1205_v59 = vshrl.u32 %v5494_v26, 16  ;;  %v1161_v39 = vld [vmem:[#allocation2 + $0x1c] sm:$0x1]  ;;  %v1239_v44 = vand.u32 %v4952_v56, %v5152_v9  ;;  %v1294_v46 = vld [vmem:[#allocation2 + $0x4] sm:$0xe] }
  0x6e   :  { %v1189_v31 = vrot.slane %v1187_v7, 5  ;;  %v1194_v34 = vrot.slane %v1192_v27, 4  ;;  %v1211_v43 = vshll.u32 %v1161_v39, 16  ;;  %v1309_v32 = vrot.slane %v5478_v20, 5  ;;  %v4953_v11 = vld [vmem:[%s6218_s1 + $0xa0] sm:$0xff]  }
  0x6f   :  { %v1175_v30 = vrot.slane %v1174_v8, 4  ;;  %v1203_v35 = vrot.slane %v1201_v29, 5  ;;  %v1207_v36 = vrot.slane %v1205_v59, 4  ;;  %v4192_v61 = vrot.slane %v1294_v46, 9  ;;  %v5000_v12 = vld [vmem:[%s6220_s3 + $0x20] sm:$0xff]  }
  0x70   :  { %v1213_v53 = vrot.slane %v1211_v43, 5  ;;  %v1312_v62 = vrot.slane %v1158_v2, 5  ;;  %v1316_v16 = vrot.slane %v5494_v26, 5  ;;  %v1319_v54 = vrot.slane %v1161_v39, 5  ;;  %v4956_v2 = vld [vmem:[%s6219_s2 + $0x28] sm:$0xff]   ;;  %v5005_v50 = vld [vmem:[%s6220_s3 + $0x40] sm:$0xff]  }
  0x71   :  { %4627 = vmatmul.mubr.msk.bf16.vlgmr.msra.gmra.mrb[0].mxu0 %vm219_vm14, %v4151_v4  ;;  %v1208_v42 = vor.u32 %v1207_v36, %v1203_v35  ;;  %v4954_v4 = vld [vmem:[%s6218_s1 + $0xa8] sm:$0x7f]   ;;  %vm1467_vm12 = vcmask 517120   ;;  %vm1470_vm15 = vcmask 519170   ;;  %vm1502_vm4 = vcmask 519168  }
  0x72   :  { %4631 = vmatpush3.bf16.msra.mxu0 %v4946_v57  ;;  %4634 = vmatprep.mubr.msk.bf16.mxu0 %vm219_vm14, %v5393_v49  ;;  %v1179_v49 = vrot.slane %v1177_v22, 5  ;;  %v1311_v57 = vrot.slane %v1309_v32, 4  ;;  %v1345_v21 = vand.u32 %v4954_v4, %v5152_v9  ;;  %v1295_v22 = vld [vmem:[#allocation2 + $0x14] sm:$0xe]  ;;  %v1318_v0 = vrot.slane %v1316_v16, 4  ;;  %v4955_v9 = vld [vmem:[%s6219_s2 + $0x20] sm:$0xff]  }
  0x73   :  { %4632 = vmatprep.subr.bf16.mxu0 %v1017_v6  ;;  %v1209_v48 = vrot.slane %v1208_v42, 4  ;;  %v4193_v63 = vrot.slane %v1295_v22, 9  ;;  %1468 = vst.msk [vmem:[#allocation3] sm:$0x3] %vm1467_vm12, %v5060_v45  ;;  %1469 = vst.msk [vmem:[#allocation3 + $0xc] sm:$0x3] %vm1467_vm12, %v5060_v45  ;;  %4662 = vmatprep.subr.bf16.mxu1 %v4955_v9 }
  0x74   :  { %v1184_v23 = vor.u32 %v1183_v55, %v1179_v49  ;;  %v1180_v1 = vsel %vm5220_vm13, %v1175_v30, %v1179_v49  ;;  %v1313_v18 = vsel %vm5262_vm3, %v1311_v57, %v1312_v62  ;;  %v1320_v49 = vsel %vm5262_vm3, %v1318_v0, %v1319_v54  ;;  %1471 = vst.msk [vmem:[#allocation3 + $0x8] sm:$0xc] %vm1470_vm15, %v5060_v45  ;;  %v3719_v14 = vld [vmem:[%s6221_s4] sm:$0x7] }
  0x75   :  { %v1214_v58 = vsel %vm5220_vm13, %v1209_v48, %v1213_v53  ;;  %v1317_v24 = vsel %vm5262_vm3, %v4193_v63, %v1316_v16  ;;  %1472 = vst.msk [vmem:[#allocation3 + $0x14] sm:$0xc] %vm1470_vm15, %v5060_v45  ;;  %4663 = vmatpush3.bf16.msra.mxu1 %v4955_v9  ;;  %v4958_v45 = vld [vmem:[%s6219_s2 + $0x38] sm:$0xff]   ;;  %v1440_v63 = vld [vmem:[%s6223_s6] sm:$0x1]  ;;  %vm2698_vm5 = vcmask 254976  }
  0x76   :  { %4633 = vmatpush3.bf16.msra.mxu0 %v1017_v6  ;;  %v1185_v10 = vrot.slane %v1184_v23, 4  ;;  %v1310_v6 = vsel %vm5262_vm3, %v4192_v61, %v1309_v32  ;;  %v4195_v55 = vcombine.low %v1317_v24, %v1320_v49  ;;  %4664 = vmatprep.subr.bf16.mxu1 %v4956_v2 }
  0x77   :  { %4638 = vmatprep.subr.bf16.mxu0 %v4948_v17 }
  0x78   :  { %v1190_v38 = vsel %vm5220_vm13, %v1185_v10, %v1189_v31 }
  0x79   :  { %v4182_v60 = vcombine.low %v1180_v1, %v1190_v38  ;;  %4665 = vmatpush3.bf16.msra.mxu1 %v4956_v2 }
  0x7d   :  { %4635 = vmatmul.mubr.msk.bf16.vlgmr.msra.gmra.mrb[0].mxu0 %vm219_vm14, %v5404_v15  ;;  %v1197_v15 = vrot.slane %v1195_v28, 5 }
  0x7e   :  { %4639 = vmatpush3.bf16.msra.mxu0 %v4948_v17  ;;  %4642 = vmatprep.mubr.msk.bf16.mxu0 %vm219_vm14, %v4172_v19  ;;  %v4194_v17 = vcombine.low %v1310_v6, %v1313_v18  ;;  %v4957_v19 = vld [vmem:[%s6219_s2 + $0x30] sm:$0xff]   ;;  %v1444_v18 = vlaneseq }
  0x7f   :  { %4640 = vmatprep.subr.bf16.mxu0 %v1101_v3  ;;  %v1198_v40 = vor.u32 %v1197_v15, %v1194_v34  ;;  %4666 = vmatprep.subr.bf16.mxu1 %v4957_v19 }
  0x80   :  { %4667 = vmatpush3.bf16.msra.mxu1 %v4957_v19 }
  0x81   :  { %v1199_v47 = vrot.slane %v1198_v40, 4  ;;  %4668 = vmatprep.subr.bf16.mxu1 %v4958_v45 }
  0x82   :  { %4641 = vmatpush3.bf16.msra.mxu0 %v1101_v3  ;;  %v5563_v3 = vld [vmem:[%s6219_s2] sm:$0xff]  }
  0x83   :  { %4646 = vmatprep.subr.bf16.mxu0 %v4950_v51  ;;  %v1204_v5 = vsel %vm5220_vm13, %v1199_v47, %v1203_v35 }
  0x84   :  { %v4183_v20 = vcombine.low %v1204_v5, %v1214_v58  ;;  %4669 = vmatpush3.bf16.msra.mxu1 %v4958_v45 }
  0x85   :  { %4674 = vmatprep.subr.bf16.mxu1 %v5563_v3 }
  0x89   :  { %4643 = vmatmul.mubr.msk.bf16.vlgmr.msra.gmra.mrb[0].mxu0 %vm219_vm14, %v4173_v41 }
  0x8a   :  { %4647 = vmatpush3.bf16.msra.mxu0 %v4950_v51  ;;  %4650 = vmatprep.mubr.msk.bf16.mxu0 %vm219_vm14, %v4182_v60 }
  0x8b   :  { %4648 = vmatprep.subr.bf16.mxu0 %v1239_v44 }
  0x8e   :  { %4649 = vmatpush3.bf16.msra.mxu0 %v1239_v44 }
  0x8f   :  { %4654 = vmatprep.subr.bf16.mxu0 %v4953_v11 }
  0x95   :  { %4651 = vmatmul.mubr.msk.bf16.vlgmr.msra.gmra.mrb[0].mxu0 %vm219_vm14, %v4183_v20  ;;  %v5575_v20 = vshrl.u32 %v1444_v18, 7 }
  0x96   :  { %4655 = vmatpush3.bf16.msra.mxu0 %v4953_v11  ;;  %4658 = vmatprep.mubr.msk.bf16.mxu0 %vm219_vm14, %v4194_v17  ;;  %v1436_v17 = vld [vmem:[%s6222_s5] sm:$0x1] }
  0x97   :  { %4656 = vmatprep.subr.bf16.mxu0 %v1345_v21  ;;  %v5581_v16 = vsub.s32 0, %v5575_v20 }
  0x9a   :  { %4657 = vmatpush3.bf16.msra.mxu0 %v1345_v21 }
  0xa1   :  { %4659 = vmatmul.mubr.msk.bf16.vlgmr.msra.gmra.mrb[0].mxu0 %vm219_vm14, %v4195_v55  ;;  %vm1400_vm14 = vcmask 523264  }
 0x174   :  { %v4660_v8 = vpop.f32.mrb[0].mxu0 }
 0x175   :  { %v1381_v23 = vpop.f32.mrb[1].mxu0  ;;  %v1416_v27 = vmul.f32 %v4660_v8, %v4660_v8  ;;  %v1404_v30 = vsel %vm1400_vm14, %v4660_v8, 0.0 }
 0x176   :  { %v1414_v7 = vmul.f32 %v1381_v23, %v1381_v23  ;;  %v4661_v25 = vpop.f32.mrb[2].mxu0  ;;  %v1401_v28 = vsel %vm1400_vm14, %v1381_v23, 0.0 }
 0x177   :  { %v1384_v26 = vpop.f32.mrb[3].mxu0  ;;  %v1417_v31 = vmul.f32 %v4661_v25, %v4661_v25  ;;  %v1421_v36 = vsel %vm1400_vm14, %v1416_v27, 0.0  ;;  %v1406_v56 = vsel %vm1400_vm14, %v4661_v25, 0.0 }
 0x178   :  { %v1402_v29 = vsel %vm1400_vm14, %v1384_v26, 0.0  ;;  %v1415_v59 = vmul.f32 %v1384_v26, %v1384_v26  ;;  %v1418_v10 = vsel %vm1400_vm14, %v1414_v7, 0.0 }
 0x179   :  { %v1403_v51 = vadd.f32 %v1402_v29, %v1401_v28  ;;  %v1423_v39 = vsel %vm1400_vm14, %v1417_v31, 0.0 }
 0x17a   :  { %v1419_v34 = vsel %vm1400_vm14, %v1415_v59, 0.0 }
 0x17b   :  { %v1405_v15 = vadd.f32 %v1404_v30, %v1403_v51  ;;  %v1420_v35 = vadd.f32 %v1419_v34, %v1418_v10 }
 0x17d   :  { %v1407_v1 = vadd.f32 %v1406_v56, %v1405_v15  ;;  %v1422_v38 = vadd.f32 %v1421_v36, %v1420_v35 }
 0x17f   :  { %v1408_v41 = vrot.slane %v1407_v1, 4  ;;  %v1424_v60 = vadd.f32 %v1423_v39, %v1422_v38 }
 0x181   :  { %v1409_v40 = vadd.f32 %v1408_v41, %v1407_v1  ;;  %v1425_v42 = vrot.slane %v1424_v60, 4 }
 0x183   :  { %v1410_v43 = vrot.slane %v1409_v40, 2  ;;  %v1426_v44 = vadd.f32 %v1425_v42, %v1424_v60 }
 0x185   :  { %v1411_v32 = vadd.f32 %v1410_v43, %v1409_v40  ;;  %v1427_v46 = vrot.slane %v1426_v44, 2 }
 0x187   :  { %v1412_v47 = vrot.slane %v1411_v32, 1  ;;  %v1428_v48 = vadd.f32 %v1427_v46, %v1426_v44 }
 0x189   :  { %v1413_v53 = vadd.f32 %v1412_v47, %v1411_v32  ;;  %v1429_v11 = vrot.slane %v1428_v48, 1 }
 0x18b   :  { %v1430_v61 = vadd.f32 %v1429_v11, %v1428_v48  ;;  %v1431_v57 = vmul.f32 0.03125, %v1413_v53 }
 0x18d   :  { %v1432_v62 = vmul.f32 0.03125, %v1430_v61  ;;  %v1433_v5 = vmul.f32 %v1431_v57, %v1431_v57 }
 0x18f   :  { %v1434_v58 = vsub.f32 %v1432_v62, %v1433_v5 }
 0x191   :  { %v1435_v4 = vmax.f32 %v1434_v58, 0.0 }
 0x193   :  { %v1437_v6 = vadd.f32 1e-05, %v1435_v4 }
 0x195   :  { %5011 = vrsqrt.f32 %v1437_v6 }
 0x19f   :  { %v5012_v21 = vpop.eup %5011 }
 0x1a0   :  { %v1439_v22 = vmul.f32 %v5012_v21, %v1436_v17 }
 0x1a2   :  { %v1441_v0 = vmul.f32 %v1439_v22, %v1431_v57  ;;  %v1447_v54 = vrot.slane %v1439_v22, %v5581_v16 }
 0x1a4   :  { %v1442_v24 = vsub.f32 %v1440_v63, %v1441_v0  ;;  %v1449_v49 = vmul.f32 %v1447_v54, %v1381_v23  ;;  %v1450_v55 = vmul.f32 %v1447_v54, %v1384_v26  ;;  %v1451_v9 = vmul.f32 %v4660_v8, %v1447_v54 }
 0x1a5   :  { %v1452_v2 = vmul.f32 %v4661_v25, %v1447_v54 }
 0x1a6   :  { %v1457_v19 = vrot.slane %v1442_v24, %v5581_v16 }
 0x1a8   :  { %v1459_v45 = vadd.f32 %v1457_v19, %v1449_v49  ;;  %v1460_v7 = vadd.f32 %v1457_v19, %v1450_v55  ;;  %v1461_v27 = vadd.f32 %v1457_v19, %v1451_v9  ;;  %v1462_v28 = vadd.f32 %v1457_v19, %v1452_v2 }
 0x1aa   :  { %v1463_v29 = vmax.f32 %v1459_v45, 0.0  ;;  %v1464_v59 = vmax.f32 %v1460_v7, 0.0  ;;  %v1465_v51 = vmax.f32 %v1461_v27, 0.0  ;;  %v1466_v30 = vmax.f32 %v1462_v28, 0.0 }
 0x1ac   :  { %v4432_v10 = vpack.c.bf16 %v1463_v29, %v1463_v29  ;;  %v4433_v31 = vpack.c.bf16 %v1464_v59, %v1464_v59  ;;  %v4434_v34 = vpack.c.bf16 %v1465_v51, %v1465_v51  ;;  %v4435_v15 = vpack.c.bf16 %v1466_v30, %v1466_v30 }
 0x1ae   :  { %v1485_v35 = vrot.slane %v4432_v10, 6  ;;  %v1487_v36 = vrot.slane %v4433_v31, 6  ;;  %v1490_v23 = vrot.slane %v4434_v34, 6  ;;  %v1492_v26 = vrot.slane %v4435_v15, 6  ;;  %v4961_v31 = vld [vmem:[%s6219_s2 + $0x8] sm:$0xff]   ;;  %v4962_v15 = vld [vmem:[%s6219_s2 + $0x10] sm:$0xff]  }
 0x1b0   :  { %v1486_v8 = vrot.slane %v1485_v35, 4  ;;  %v1489_v25 = vrot.slane %v1487_v36, 4  ;;  %v1491_v56 = vrot.slane %v1490_v23, 4  ;;  %v1494_v1 = vrot.slane %v1492_v26, 4  ;;  %1501 = vst.msk [vmem:[#allocation3] sm:$0xc] %vm1470_vm15, %v1485_v35 }
 0x1b1   :  { %1505 = vst.msk [vmem:[#allocation3 + $0xc] sm:$0xc] %vm1470_vm15, %v1490_v23  ;;  %vm5863_vm15 = vmand %vm2698_vm5, %vm714_vm11  ;;  %vm2631_vm11 = vcmask 261120   ;;  %vm2771_vm5 = vcmask 257025  }
 0x1b2   :  { %v1488_v38 = vsel %vm5322_vm6, %v1486_v8, %v1487_v36  ;;  %v1493_v39 = vsel %vm5322_vm6, %v1491_v56, %v1492_v26  ;;  %1504 = vst.msk [vmem:[#allocation3 + $0x8] sm:$0x3] %vm1467_vm12, %v1489_v25  ;;  %1507 = vst.msk [vmem:[#allocation3 + $0x14] sm:$0x3] %vm1467_vm12, %v1494_v1  ;;  %v4963_v36 = vld [vmem:[%s6219_s2 + $0x18] sm:$0xff]   ;;  %vm2706_vm12 = vcmask 256001  }
 0x1b3   :  { %1503 = vst.msk [vmem:[#allocation3 + $0x4] sm:$0xf] %vm1502_vm4, %v1488_v38  ;;  %1506 = vst.msk [vmem:[#allocation3 + $0x10] sm:$0xf] %vm1502_vm4, %v1493_v39  ;;  %vm2707_vm4 = vsmask.f32 7942 }
 0x1b7   :  { %v1508_v41 = vld [vmem:[#allocation3] sm:$0xf] }
 0x1b8   :  { %v5596_v60 = vld [vmem:[#allocation3 + $0xc] sm:$0xf]  ;;  %v1532_v40 = vshrl.u32 %v1508_v41, 16  ;;  %v1535_v42 = vshll.u32 %v1508_v41, 16  ;;  %v1753_v26 = vld [vmem:[#allocation3] sm:$0xe] }
 0x1b9   :  { %v1556_v43 = vshrl.u32 %v5596_v60, 16  ;;  %v1559_v44 = vshll.u32 %v5596_v60, 16  ;;  %v1520_v32 = vld [vmem:[#allocation3 + $0x8] sm:$0x1]  ;;  %v5602_v53 = vld [vmem:[#allocation3 + $0x14] sm:$0x1] }
 0x1ba   :  { %v5600_v46 = vld [vmem:[#allocation3 + $0x4] sm:$0xf]  ;;  %v1534_v47 = vrot.slane %v1532_v40, 4  ;;  %v1537_v48 = vrot.slane %v1535_v42, 5  ;;  %v5610_v57 = vld [vmem:[#allocation3 + $0x10] sm:$0xf] }
 0x1bb   :  { %v5605_v11 = vshll.u32 %v5600_v46, 16  ;;  %v5608_v61 = vshrl.u32 %v5600_v46, 16  ;;  %v1558_v62 = vrot.slane %v1556_v43, 4  ;;  %v1561_v5 = vrot.slane %v1559_v44, 5 }
 0x1bc   :  { %v1538_v58 = vor.u32 %v1537_v48, %v1534_v47  ;;  %v5613_v4 = vshll.u32 %v5610_v57, 16  ;;  %v5616_v6 = vshrl.u32 %v5610_v57, 16  ;;  %v1551_v22 = vshll.u32 %v1520_v32, 16  ;;  %v4966_v47 = vld [vmem:[%s6219_s2 + $0x48] sm:$0xff]  }
 0x1bd   :  { %v1543_v17 = vrot.slane %v5605_v11, 5  ;;  %v1547_v21 = vrot.slane %v5608_v61, 4  ;;  %v1562_v63 = vor.u32 %v1561_v5, %v1558_v62  ;;  %v1575_v24 = vshll.u32 %v5602_v53, 16  ;;  %v5664_v62 = vld [vmem:[#allocation3 + $0x8] sm:$0x3] }
 0x1be   :  { %v1567_v0 = vrot.slane %v5613_v4, 5  ;;  %v1571_v54 = vrot.slane %v5616_v6, 4  ;;  %v1539_v49 = vrot.slane %v1538_v58, 4  ;;  %v1553_v45 = vrot.slane %v1551_v22, 5 }
 0x1bf   :  { %v1548_v55 = vor.u32 %v1547_v21, %v1543_v17  ;;  %v1563_v9 = vrot.slane %v1562_v63, 4  ;;  %v1577_v27 = vrot.slane %v1575_v24, 5  ;;  %v4220_v34 = vcombine.low %v1508_v41, %v5600_v46  ;;  %v4967_v21 = vld [vmem:[%s6219_s2 + $0x50] sm:$0xff]   ;;  %v5678_v24 = vld [vmem:[#allocation3] sm:$0x8] }
 0x1c0   :  { %v1572_v2 = vor.u32 %v1571_v54, %v1567_v0  ;;  %v1544_v28 = vsel %vm5220_vm13, %v1539_v49, %v1543_v17  ;;  %v1770_v35 = vrot.slane %v5600_v46, 5  ;;  %v1773_v8 = vrot.slane %v1520_v32, 5  ;;  %v5680_v49 = vld [vmem:[#allocation3 + $0x8] sm:$0xf] }
 0x1c1   :  { %v1549_v19 = vrot.slane %v1548_v55, 4  ;;  %v1568_v51 = vsel %vm5220_vm13, %v1563_v9, %v1567_v0  ;;  %v2155_v25 = vrot.slane %v5608_v61, 6  ;;  %v2156_v56 = vrot.slane %v5605_v11, 7  ;;  %v1754_v55 = vld [vmem:[#allocation3 + $0xc] sm:$0xe] }
 0x1c2   :  { %v1573_v7 = vrot.slane %v1572_v2, 4  ;;  %v1772_v23 = vrot.slane %v1770_v35, 4  ;;  %v4236_v1 = vrot.slane %v1753_v26, 9  ;;  %v1883_v39 = vshrl.u32 %v1753_v26, 16 }
 0x1c3   :  { %v1554_v29 = vsel %vm5220_vm13, %v1549_v19, %v1553_v45  ;;  %v1886_v41 = vshll.u32 %v1753_v26, 16  ;;  %v5653_v40 = vor.u32 %v2156_v56, %v2155_v25  ;;  %v2178_v42 = vrot.slane %v5616_v6, 6  ;;  %v5682_v45 = vld [vmem:[#allocation3 + $0xc] sm:$0x8] }
 0x1c4   :  { %v4212_v59 = vcombine.low %v1544_v28, %v1554_v29  ;;  %v1578_v30 = vsel %vm5220_vm13, %v1573_v7, %v1577_v27  ;;  %v1774_v38 = vsel %vm5262_vm3, %v1772_v23, %v1773_v8  ;;  %v2179_v43 = vrot.slane %v5613_v4, 7  ;;  %v4968_v29 = vld [vmem:[%s6219_s2 + $0x58] sm:$0xff]  }
 0x1c5   :  { %v4213_v10 = vcombine.low %v1568_v51, %v1578_v30  ;;  %v4221_v44 = vcombine.low %v5596_v60, %v5610_v57  ;;  %v1771_v32 = vsel %vm5262_vm3, %v4236_v1, %v1770_v35  ;;  %v1891_v5 = vrot.slane %v5608_v61, 5 }
 0x1c6   :  { %4670 = vmatprep.mubr.msk.bf16.mxu1 %vm1400_vm14, %v4212_v59  ;;  %v4238_v48 = vcombine.low %v1771_v32, %v1774_v38  ;;  %v1892_v58 = vrot.slane %v5605_v11, 6  ;;  %v5668_v17 = vor.u32 %v2179_v43, %v2178_v42  ;;  %v1777_v60 = vrot.slane %v5610_v57, 5 }
 0x1c7   :  { %4671 = vmatmul.mubr.msk.bf16.vlgmr.msra.gmra.mrb[0].mxu1 %vm1400_vm14, %v4213_v10  ;;  %v1885_v22 = vrot.slane %v1883_v39, 5  ;;  %v1888_v63 = vrot.slane %v1886_v41, 6  ;;  %v1897_v0 = vshrl.u32 %v5664_v62, 16  ;;  %v1900_v54 = vshll.u32 %v5664_v62, 16  ;;  %v5690_v10 = vld [vmem:[#allocation3 + $0x14] sm:$0xf] }
 0x1c8   :  { %4675 = vmatpush3.bf16.msra.mxu1 %v5563_v3  ;;  %4682 = vmatprep.mubr.msk.bf16.mxu1 %vm1400_vm14, %v4220_v34  ;;  %v4965_v3 = vld [vmem:[%s6219_s2 + $0x40] sm:$0xff]   ;;  %v1893_v9 = vor.u32 %v1892_v58, %v1891_v5  ;;  %v1779_v2 = vrot.slane %v1777_v60, 4  ;;  %v2411_v7 = vshrl.u32 %v5678_v24, 16  ;;  %v2415_v27 = vrot.slane %v5608_v61, 7 }
 0x1c9   :  { %4676 = vmatprep.subr.bf16.mxu1 %v4961_v31  ;;  %v1889_v19 = vor.u32 %v1888_v63, %v1885_v22  ;;  %v2420_v28 = vshrl.u32 %v5680_v49, 16  ;;  %v4237_v59 = vrot.slane %v1754_v55, 9  ;;  %v1899_v51 = vrot.slane %v1897_v0, 5 }
 0x1ca   :  { %v1902_v30 = vrot.slane %v1900_v54, 6  ;;  %v1895_v34 = vrot.slane %v1893_v9, 4  ;;  %v2416_v35 = vor.u32 %v2415_v27, %v5605_v11  ;;  %v2423_v23 = vshll.u32 %v5680_v49, 16  ;;  %v4970_v54 = vld [vmem:[%s6219_s2 + $0x68] sm:$0xff]  }
 0x1cb   :  { %v2422_v61 = vrot.slane %v2420_v28, 7  ;;  %v2428_v26 = vshrl.u32 %v5682_v45, 16  ;;  %v2432_v25 = vrot.slane %v5616_v6, 7  ;;  %v2437_v56 = vshrl.u32 %v5690_v10, 16 }
 0x1cc   :  { %4677 = vmatpush3.bf16.msra.mxu1 %v4961_v31  ;;  %v1780_v31 = vrot.slane %v5602_v53, 5  ;;  %v4969_v53 = vld [vmem:[%s6219_s2 + $0x60] sm:$0xff]   ;;  %v1903_v11 = vor.u32 %v1902_v30, %v1899_v51  ;;  %v1778_v32 = vsel %vm5262_vm3, %v4237_v59, %v1777_v60  ;;  %v1909_v58 = vshll.u32 %v1754_v55, 16 }
 0x1cd   :  { %4678 = vmatprep.subr.bf16.mxu1 %v4962_v15  ;;  %v2425_v38 = vor.u32 %v2423_v23, %v2422_v61  ;;  %v4323_v39 = vrot.slane %v2428_v26, 11  ;;  %v2433_v41 = vor.u32 %v2432_v25, %v5613_v4  ;;  %v2435_v42 = vrot.slane %v2432_v25, 4 }
 0x1ce   :  { %v1781_v8 = vsel %vm5262_vm3, %v1779_v2, %v1780_v31  ;;  %v2439_v43 = vrot.slane %v2437_v56, 7  ;;  %v5722_v2 = vld [vmem:[#allocation3 + $0x14] sm:$0x3]  ;;  %v2034_v30 = vrot.slane %v5600_v46, 6  ;;  %v2037_v25 = vrot.slane %v5664_v62, 6  ;;  %v4974_v62 = vld [vmem:[%s6219_s2 + $0x88] sm:$0xff]  }
 0x1cf   :  { %v2434_v22 = vsel %vm5357_vm10, %v4323_v39, %v2433_v41  ;;  %v4239_v0 = vcombine.low %v1778_v32, %v1781_v8  ;;  %v1920_v59 = vshrl.u32 %v5722_v2, 16  ;;  %v1923_v51 = vshll.u32 %v5722_v2, 16  ;;  %v2017_v8 = vld [vmem:[#allocation3] sm:$0xc]  ;;  %v4975_v32 = vld [vmem:[%s6219_s2 + $0x90] sm:$0xff]  }
 0x1d0   :  { %4679 = vmatpush3.bf16.msra.mxu1 %v4962_v15  ;;  %v4322_v15 = vrot.slane %v2411_v7, 11  ;;  %v1915_v7 = vrot.slane %v5613_v4, 6  ;;  %v4971_v4 = vld [vmem:[%s6219_s2 + $0x70] sm:$0xff]   ;;  %v2036_v61 = vrot.slane %v2034_v30, 4  ;;  %v2147_v41 = vshrl.u32 %v2017_v8, 16 }
 0x1d1   :  { %4680 = vmatprep.subr.bf16.mxu1 %v4963_v36 }
 0x1d2   :  { %v2417_v1 = vsel %vm5357_vm10, %v4322_v15, %v2416_v35  ;;  %v1925_v15 = vrot.slane %v1923_v51, 6  ;;  %v4972_v35 = vld [vmem:[%s6219_s2 + $0x78] sm:$0xff]  }
 0x1d4   :  { %4681 = vmatpush3.bf16.msra.mxu1 %v4963_v36  ;;  %v2418_v36 = vrot.slane %v2415_v27, 4 }
 0x1d5   :  { %4686 = vmatprep.subr.bf16.mxu1 %v4965_v3 }
 0x1d6   :  { %v2426_v5 = vsel %vm5357_vm10, %v2418_v36, %v2425_v38 }
 0x1d7   :  { %4683 = vmatmul.mubr.msk.bf16.vlgmr.msra.gmra.mrb[0].mxu1 %vm1400_vm14, %v4221_v44  ;;  %v2440_v44 = vshll.u32 %v5690_v10, 16 }
 0x1d8   :  { %4687 = vmatpush3.bf16.msra.mxu1 %v4965_v3  ;;  %4694 = vmatprep.mubr.msk.bf16.mxu1 %vm1400_vm14, %v4238_v48  ;;  %v1890_v3 = vrot.slane %v1889_v19, 4  ;;  %v1906_v48 = vshrl.u32 %v1754_v55, 16  ;;  %v1914_v55 = vrot.slane %v5616_v6, 5 }
 0x1d9   :  { %4688 = vmatprep.subr.bf16.mxu1 %v4966_v47  ;;  %v2442_v63 = vor.u32 %v2440_v44, %v2439_v43  ;;  %v5756_v44 = vld [vmem:[#allocation3 + $0x8] sm:$0x7] }
 0x1da   :  { %v1894_v60 = vsel %vm5183_vm9, %v1890_v3, %v1893_v9  ;;  %v1908_v9 = vrot.slane %v1906_v48, 5  ;;  %v1916_v6 = vor.u32 %v1915_v7, %v1914_v55  ;;  %v4973_v3 = vld [vmem:[%s6219_s2 + $0x80] sm:$0xff]   ;;  %v2018_v55 = vld [vmem:[#allocation3 + $0xc] sm:$0xc]  ;;  %v2159_v7 = vrot.slane %v5653_v40, 4 }
 0x1db   :  { %v2443_v27 = vsel %vm5357_vm10, %v2435_v42, %v2442_v63  ;;  %v2150_v42 = vshll.u32 %v2017_v8, 16  ;;  %v4976_v63 = vld [vmem:[%s6219_s2 + $0x98] sm:$0xff]   ;;  %v4271_v51 = vrot.slane %v2018_v55, 10 }
 0x1dc   :  { %4689 = vmatpush3.bf16.msra.mxu1 %v4966_v47  ;;  %v1904_v47 = vsel %vm5183_vm9, %v1895_v34, %v1903_v11  ;;  %v5729_v28 = vcombine.low %v2434_v22, %v2443_v27  ;;  %v1922_v34 = vrot.slane %v1920_v59, 5  ;;  %v1918_v36 = vrot.slane %v1916_v6, 4 }
 0x1dd   :  { %4690 = vmatprep.subr.bf16.mxu1 %v4967_v21  ;;  %v4254_v19 = vcombine.low %v1894_v60, %v1904_v47  ;;  %v2038_v11 = vsel %vm5322_vm6, %v2036_v61, %v2037_v25  ;;  %v2149_v47 = vrot.slane %v2147_v41, 6  ;;  %v2152_v48 = vrot.slane %v2150_v42, 7  ;;  %v4981_v42 = vld [vmem:[%s6219_s2 + $0xc0] sm:$0xff]  }
 0x1de   :  { %v1926_v26 = vor.u32 %v1925_v15, %v1922_v34  ;;  %v2041_v22 = vrot.slane %v5610_v57, 6  ;;  %v2044_v27 = vrot.slane %v5722_v2, 6  ;;  %v2173_v2 = vshll.u32 %v2018_v55, 16 }
 0x1df   :  { %v2298_v25 = vrot.slane %v5600_v46, 7 }
 0x1e0   :  { %4691 = vmatpush3.bf16.msra.mxu1 %v4967_v21  ;;  %v5713_v21 = vcombine.low %v2417_v1, %v2426_v5  ;;  %v1927_v56 = vsel %vm5183_vm9, %v1918_v36, %v1926_v26  ;;  %v2161_v5 = vshrl.u32 %v5756_v44, 16  ;;  %v2136_v36 = vld [vmem:[#allocation3 + $0x14] sm:$0x7]  ;;  %v2175_v26 = vrot.slane %v2173_v2, 7  ;;  %v2709_v2 = vld [vmem:[#allocation4 + $0x8] sm:$0x6] }
 0x1e1   :  { %4692 = vmatprep.subr.bf16.mxu1 %v4968_v29 }
 0x1e2   :  { %v2163_v60 = vrot.slane %v2161_v5, 6 }
 0x1e4   :  { %4693 = vmatpush3.bf16.msra.mxu1 %v4968_v29  ;;  %v1911_v29 = vrot.slane %v1909_v58, 6  ;;  %v2164_v58 = vshll.u32 %v5756_v44, 16 }
 0x1e5   :  { %4698 = vmatprep.subr.bf16.mxu1 %v4969_v53 }
 0x1e6   :  { %v1912_v31 = vor.u32 %v1911_v29, %v1908_v9  ;;  %v4977_v9 = vld [vmem:[%s6219_s2 + $0xa0] sm:$0xff]  }
 0x1e7   :  { %4695 = vmatmul.mubr.msk.bf16.vlgmr.msra.gmra.mrb[0].mxu1 %vm1400_vm14, %v4239_v0  ;;  %v2153_v0 = vor.u32 %v2152_v48, %v2149_v47  ;;  %v4304_v47 = vrot.slane %v5678_v24, 11  ;;  %v2305_v24 = vrot.slane %v5610_v57, 7 }
 0x1e8   :  { %4699 = vmatpush3.bf16.msra.mxu1 %v4969_v53  ;;  %4706 = vmatprep.mubr.msk.bf16.mxu1 %vm1400_vm14, %v4254_v19  ;;  %v1913_v23 = vrot.slane %v1912_v31, 4  ;;  %v4270_v53 = vrot.slane %v2017_v8, 10  ;;  %v2043_v19 = vrot.slane %v2041_v22, 4  ;;  %v2170_v31 = vshrl.u32 %v2018_v55, 16 }
 0x1e9   :  { %4700 = vmatprep.subr.bf16.mxu1 %v4970_v54  ;;  %v2154_v29 = vrot.slane %v2153_v0, 4  ;;  %v2184_v8 = vshrl.u32 %v2136_v36, 16  ;;  %v4984_v0 = vld [vmem:[%s6219_s2 + $0xd8] sm:$0xff]   ;;  %v4305_v55 = vrot.slane %v5682_v45, 11  ;;  %v4987_v45 = vld [vmem:[%s6219_s2 + $0xf0] sm:$0xff]  }
 0x1ea   :  { %v1917_v1 = vsel %vm5183_vm9, %v1913_v23, %v1916_v6  ;;  %v2035_v39 = vsel %vm5322_vm6, %v4270_v53, %v2034_v30  ;;  %v2042_v30 = vsel %vm5322_vm6, %v4271_v51, %v2041_v22  ;;  %v2172_v23 = vrot.slane %v2170_v31, 6  ;;  %v4989_v51 = vld [vmem:[%s6219_s2 + $0x100] sm:$0xff]  }
 0x1eb   :  { %v4255_v38 = vcombine.low %v1917_v1, %v1927_v56  ;;  %v4272_v43 = vcombine.low %v2035_v39, %v2038_v11  ;;  %v2158_v15 = vsel %vm5425_vm2, %v2154_v29, %v5653_v40  ;;  %v4979_v40 = vld [vmem:[%s6219_s2 + $0xb0] sm:$0xff]   ;;  %v2186_v53 = vrot.slane %v2184_v8, 6  ;;  %v4980_v1 = vld [vmem:[%s6219_s2 + $0xb8] sm:$0xff]   ;;  %v4986_v29 = vld [vmem:[%s6219_s2 + $0xe8] sm:$0xff]  }
 0x1ec   :  { %4701 = vmatpush3.bf16.msra.mxu1 %v4970_v54  ;;  %v2166_v54 = vrot.slane %v2164_v58, 7  ;;  %v2176_v56 = vor.u32 %v2175_v26, %v2172_v23  ;;  %v2300_v39 = vrot.slane %v2298_v25, 4  ;;  %v2299_v22 = vsel %vm5442_vm8, %v4304_v47, %v2298_v25  ;;  %v5881_v23 = vld [vmem:[%s6220_s3] sm:$0xff]  }
 0x1ed   :  { %4702 = vmatprep.subr.bf16.mxu1 %v4971_v4 }
 0x1ee   :  { %v2167_v59 = vor.u32 %v2166_v54, %v2163_v60  ;;  %v2307_v60 = vrot.slane %v2305_v24, 4  ;;  %v2308_v54 = vrot.slane %v2136_v36, 7 }
 0x1f0   :  { %4703 = vmatpush3.bf16.msra.mxu1 %v4971_v4  ;;  %v2045_v4 = vsel %vm5322_vm6, %v2043_v19, %v2044_v27  ;;  %v2168_v6 = vsel %vm5425_vm2, %v2159_v7, %v2167_v59  ;;  %v4985_v19 = vld [vmem:[%s6219_s2 + $0xe0] sm:$0xff]   ;;  %v2309_v7 = vsel %vm5442_vm8, %v2307_v60, %v2308_v54  ;;  %v2306_v27 = vsel %vm5442_vm8, %v4305_v55, %v2305_v24  ;;  %v4988_v59 = vld [vmem:[%s6219_s2 + $0xf8] sm:$0xff]  }
 0x1f1   :  { %4704 = vmatprep.subr.bf16.mxu1 %v4972_v35  ;;  %v4273_v34 = vcombine.low %v2042_v30, %v2045_v4  ;;  %v4288_v61 = vcombine.low %v2158_v15, %v2168_v6  ;;  %v4340_v4 = vcombine.low %v5600_v46, %v5680_v49  ;;  %v4992_v6 = vld [vmem:[%s6219_s2 + $0x110] sm:$0xff]   ;;  %v4993_v30 = vld [vmem:[%s6219_s2 + $0x118] sm:$0xff]   ;;  %v4341_v46 = vcombine.low %v5610_v57, %v5690_v10 }
 0x1f2   :  { %v2700_v49 = vld [vmem:[#allocation4] sm:$0x3] }
 0x1f3   :  { %v2701_v15 = vsel %vm5863_vm15, 0, %v2700_v49 }
 0x1f4   :  { %4705 = vmatpush3.bf16.msra.mxu1 %v4972_v35  ;;  %v4978_v35 = vld [vmem:[%s6219_s2 + $0xa8] sm:$0xff]   ;;  %2702 = vst [vmem:[#allocation4] sm:$0x3] %v2701_v15 }
 0x1f5   :  { %4710 = vmatprep.subr.bf16.mxu1 %v4973_v3 }
 0x1f7   :  { %4707 = vmatmul.mubr.msk.bf16.vlgmr.msra.gmra.mrb[0].mxu1 %vm1400_vm14, %v4255_v38  ;;  %v2182_v38 = vrot.slane %v5668_v17, 4 }
 0x1f8   :  { %4711 = vmatpush3.bf16.msra.mxu1 %v4973_v3  ;;  %4718 = vmatprep.mubr.msk.bf16.mxu1 %vm1400_vm14, %v4272_v43  ;;  %v2187_v3 = vshll.u32 %v2136_v36, 16  ;;  %v2301_v43 = vrot.slane %v5756_v44, 7  ;;  %v4982_v44 = vld [vmem:[%s6219_s2 + $0xc8] sm:$0xff]   ;;  %v4995_v36 = vld [vmem:[%s6220_s3 + $0x10] sm:$0xff]  }
 0x1f9   :  { %4712 = vmatprep.subr.bf16.mxu1 %v4974_v62  ;;  %4770 = vmatprep.subr.bf16.mxu0 %v4995_v36 }
 0x1fa   :  { %v2189_v11 = vrot.slane %v2187_v3, 7  ;;  %v2302_v48 = vsel %vm5442_vm8, %v2300_v39, %v2301_v43  ;;  %4771 = vmatpush3.bf16.msra.mxu0 %v4995_v36 }
 0x1fc   :  { %4713 = vmatpush3.bf16.msra.mxu1 %v4974_v62  ;;  %v2177_v62 = vrot.slane %v2176_v56, 4  ;;  %v2190_v41 = vor.u32 %v2189_v11, %v2186_v53 }
 0x1fd   :  { %4714 = vmatprep.subr.bf16.mxu1 %v4975_v32 }
 0x1fe   :  { %v2181_v5 = vsel %vm5425_vm2, %v2177_v62, %v5668_v17  ;;  %v4983_v17 = vld [vmem:[%s6219_s2 + $0xd0] sm:$0xff]  }
 0x200   :  { %4715 = vmatpush3.bf16.msra.mxu1 %v4975_v32  ;;  %v2191_v32 = vsel %vm5425_vm2, %v2182_v38, %v2190_v41 }
 0x201   :  { %4716 = vmatprep.subr.bf16.mxu1 %v4976_v63  ;;  %v4289_v58 = vcombine.low %v2181_v5, %v2191_v32 }
 0x204   :  { %4717 = vmatpush3.bf16.msra.mxu1 %v4976_v63  ;;  %v4306_v63 = vcombine.low %v2299_v22, %v2302_v48 }
 0x205   :  { %4722 = vmatprep.subr.bf16.mxu1 %v4977_v9 }
 0x207   :  { %4719 = vmatmul.mubr.msk.bf16.vlgmr.msra.gmra.mrb[0].mxu1 %vm1400_vm14, %v4273_v34  ;;  %v2712_v34 = vld [vmem:[#allocation4 + $0x14] sm:$0x6] }
 0x208   :  { %4723 = vmatpush3.bf16.msra.mxu1 %v4977_v9  ;;  %4730 = vmatprep.mubr.msk.bf16.mxu1 %vm1400_vm14, %v4288_v61  ;;  %v4307_v9 = vcombine.low %v2306_v27, %v2309_v7  ;;  %v4996_v61 = vld [vmem:[%s6220_s3 + $0x18] sm:$0xff]  }
 0x209   :  { %4724 = vmatprep.subr.bf16.mxu1 %v4978_v35  ;;  %4772 = vmatprep.subr.bf16.mxu0 %v4996_v61 }
 0x20a   :  { %4773 = vmatpush3.bf16.msra.mxu0 %v4996_v61 }
 0x20b   :  { %4778 = vmatprep.subr.bf16.mxu0 %v5881_v23 }
 0x20c   :  { %4725 = vmatpush3.bf16.msra.mxu1 %v4978_v35 }
 0x20d   :  { %4726 = vmatprep.subr.bf16.mxu1 %v4979_v40 }
 0x210   :  { %4727 = vmatpush3.bf16.msra.mxu1 %v4979_v40 }
 0x211   :  { %4728 = vmatprep.subr.bf16.mxu1 %v4980_v1 }
 0x214   :  { %4729 = vmatpush3.bf16.msra.mxu1 %v4980_v1 }
 0x215   :  { %4734 = vmatprep.subr.bf16.mxu1 %v4981_v42 }
 0x217   :  { %4731 = vmatmul.mubr.msk.bf16.vlgmr.msra.gmra.mrb[0].mxu1 %vm1400_vm14, %v4289_v58 }
 0x218   :  { %4735 = vmatpush3.bf16.msra.mxu1 %v4981_v42  ;;  %4742 = vmatprep.mubr.msk.bf16.mxu1 %vm1400_vm14, %v4306_v63 }
 0x219   :  { %4736 = vmatprep.subr.bf16.mxu1 %v4982_v44 }
 0x21c   :  { %4737 = vmatpush3.bf16.msra.mxu1 %v4982_v44 }
 0x21d   :  { %4738 = vmatprep.subr.bf16.mxu1 %v4983_v17 }
 0x220   :  { %4739 = vmatpush3.bf16.msra.mxu1 %v4983_v17 }
 0x221   :  { %4740 = vmatprep.subr.bf16.mxu1 %v4984_v0 }
 0x224   :  { %4741 = vmatpush3.bf16.msra.mxu1 %v4984_v0 }
 0x225   :  { %4746 = vmatprep.subr.bf16.mxu1 %v4985_v19 }
 0x227   :  { %4743 = vmatmul.mubr.msk.bf16.vlgmr.msra.gmra.mrb[0].mxu1 %vm1400_vm14, %v4307_v9 }
 0x228   :  { %4747 = vmatpush3.bf16.msra.mxu1 %v4985_v19  ;;  %4754 = vmatprep.mubr.msk.bf16.mxu1 %vm1400_vm14, %v5713_v21  ;;  %v4991_v21 = vld [vmem:[%s6219_s2 + $0x108] sm:$0xff]  }
 0x229   :  { %4748 = vmatprep.subr.bf16.mxu1 %v4986_v29 }
 0x22c   :  { %4749 = vmatpush3.bf16.msra.mxu1 %v4986_v29 }
 0x22d   :  { %4750 = vmatprep.subr.bf16.mxu1 %v4987_v45 }
 0x230   :  { %4751 = vmatpush3.bf16.msra.mxu1 %v4987_v45 }
 0x231   :  { %4752 = vmatprep.subr.bf16.mxu1 %v4988_v59 }
 0x234   :  { %4753 = vmatpush3.bf16.msra.mxu1 %v4988_v59 }
 0x235   :  { %4758 = vmatprep.subr.bf16.mxu1 %v4989_v51 }
 0x237   :  { %4755 = vmatmul.mubr.msk.bf16.vlgmr.msra.gmra.mrb[0].mxu1 %vm1400_vm14, %v5729_v28  ;;  %v2703_v28 = vld [vmem:[#allocation4 + $0xc] sm:$0x3] }
 0x238   :  { %4759 = vmatpush3.bf16.msra.mxu1 %v4989_v51  ;;  %4766 = vmatprep.mubr.msk.bf16.mxu1 %vm1400_vm14, %v4340_v4  ;;  %v2704_v57 = vsel %vm5863_vm15, 0, %v2703_v28  ;;  %v2671_v28 = vld [vmem:[%s6225_s8] sm:$0x1] }
 0x239   :  { %4760 = vmatprep.subr.bf16.mxu1 %v4991_v21  ;;  %2705 = vst [vmem:[#allocation4 + $0xc] sm:$0x3] %v2704_v57 }
 0x23c   :  { %4761 = vmatpush3.bf16.msra.mxu1 %v4991_v21 }
 0x23d   :  { %4762 = vmatprep.subr.bf16.mxu1 %v4992_v6 }
 0x240   :  { %4763 = vmatpush3.bf16.msra.mxu1 %v4992_v6 }
 0x241   :  { %4764 = vmatprep.subr.bf16.mxu1 %v4993_v30 }
 0x244   :  { %4765 = vmatpush3.bf16.msra.mxu1 %v4993_v30  ;;  %v2667_v30 = vld [vmem:[%s6224_s7] sm:$0x1]  ;;  %s5061_s7 = smov [#allocation8]  }
 0x245   :  { %s4076_s8 = sshll.u32 %s5061_s7, 4  ;;  %s4077_s8 = int_to_ptr.vmem [resolvable:$true] %s4076_s8 }
 0x246   :  { %s5035_s17 = scalar_lea.vmem %s4077_s8, 32  ;;  %p5040_p1 = scmp.lt.s32.totalorder %s4077_s8, %s4077_s8 }
 0x247   :  { %4767 = vmatmul.mubr.msk.bf16.vlgmr.msra.gmra.mrb[0].mxu1 %vm1400_vm14, %v4341_v46  ;;  %vm2708_vm14 = vmand %vm2706_vm12, %vm2707_vm4  ;;  %p5036_p0 = scmp.ne.s32.totalorder %s4077_s8, %s5035_s17  ;;  %p5041_p2 = scmp.lt.s32.totalorder %s5035_s17, %s5035_s17 }
 0x248   :  { %v2710_v10 = vsel %vm2708_vm14, 0, %v2709_v2  ;;  %v2713_v35 = vsel %vm2708_vm14, 0, %v2712_v34  ;;  %vm5902_vm12 = vmand %vm2771_vm5, %vm2707_vm4  ;;  %vm2776_vm14 = vcmask 257024   ;;  %vm3831_vm4 = vcmask 123904  }
 0x249   :  { %2711 = vst [vmem:[#allocation4 + $0x8] sm:$0x6] %v2710_v10  ;;  %2714 = vst [vmem:[#allocation4 + $0x14] sm:$0x6] %v2713_v35  ;;  %p5042_p3 = por %p5041_p2, %p5040_p1 }
 0x24b   :  { %p5043_p4 = pnand %p5042_p3, %p5036_p0 }
 0x31a   :  { %v4768_v26 = vpop.f32.mrb[0].mxu1 }
 0x31b   :  { %v2612_v8 = vpop.f32.mrb[1].mxu1  ;;  %v2647_v56 = vmul.f32 %v4768_v26, %v4768_v26  ;;  %v2635_v39 = vsel %vm2631_vm11, %v4768_v26, 0.0 }
 0x31c   :  { %v2645_v3 = vmul.f32 %v2612_v8, %v2612_v8  ;;  %v4769_v40 = vpop.f32.mrb[2].mxu1  ;;  %v2632_v53 = vsel %vm2631_vm11, %v2612_v8, 0.0 }
 0x31d   :  { %v2615_v25 = vpop.f32.mrb[3].mxu1  ;;  %v2648_v41 = vmul.f32 %v4769_v40, %v4769_v40  ;;  %v2652_v47 = vsel %vm2631_vm11, %v2647_v56, 0.0  ;;  %v2637_v48 = vsel %vm2631_vm11, %v4769_v40, 0.0 }
 0x31e   :  { %v2633_v11 = vsel %vm2631_vm11, %v2615_v25, 0.0  ;;  %v2646_v1 = vmul.f32 %v2615_v25, %v2615_v25  ;;  %v2649_v62 = vsel %vm2631_vm11, %v2645_v3, 0.0 }
 0x31f   :  { %v2634_v38 = vadd.f32 %v2633_v11, %v2632_v53  ;;  %v2654_v22 = vsel %vm2631_vm11, %v2648_v41, 0.0 }
 0x320   :  { %v2650_v42 = vsel %vm2631_vm11, %v2646_v1, 0.0 }
 0x321   :  { %v2636_v43 = vadd.f32 %v2635_v39, %v2634_v38  ;;  %v2651_v32 = vadd.f32 %v2650_v42, %v2649_v62 }
 0x323   :  { %v2638_v5 = vadd.f32 %v2637_v48, %v2636_v43  ;;  %v2653_v58 = vadd.f32 %v2652_v47, %v2651_v32 }
 0x325   :  { %v2639_v44 = vrot.slane %v2638_v5, 4  ;;  %v2655_v63 = vadd.f32 %v2654_v22, %v2653_v58 }
 0x327   :  { %v2640_v17 = vadd.f32 %v2639_v44, %v2638_v5  ;;  %v2656_v24 = vrot.slane %v2655_v63, 4 }
 0x329   :  { %v2641_v0 = vrot.slane %v2640_v17, 2  ;;  %v2657_v60 = vadd.f32 %v2656_v24, %v2655_v63 }
 0x32b   :  { %v2642_v54 = vadd.f32 %v2641_v0, %v2640_v17  ;;  %v2658_v19 = vrot.slane %v2657_v60, 2 }
 0x32d   :  { %v2643_v55 = vrot.slane %v2642_v54, 1  ;;  %v2659_v7 = vadd.f32 %v2658_v19, %v2657_v60 }
 0x32f   :  { %v2644_v27 = vadd.f32 %v2643_v55, %v2642_v54  ;;  %v2660_v9 = vrot.slane %v2659_v7, 1  ;;  %v2773_v55 = vld [vmem:[#allocation4] sm:$0xe] }
 0x331   :  { %v2661_v29 = vadd.f32 %v2660_v9, %v2659_v7  ;;  %v2662_v45 = vmul.f32 0.03125, %v2644_v27  ;;  %v2781_v9 = vld [vmem:[#allocation4 + $0xc] sm:$0xe] }
 0x333   :  { %v2663_v59 = vmul.f32 0.03125, %v2661_v29  ;;  %v2664_v51 = vmul.f32 %v2662_v45, %v2662_v45 }
 0x335   :  { %v2665_v21 = vsub.f32 %v2663_v59, %v2664_v51  ;;  %v2778_v59 = vld [vmem:[#allocation4 + $0x8] sm:$0x3] }
 0x337   :  { %v2666_v4 = vmax.f32 %v2665_v21, 0.0 }
 0x339   :  { %v2668_v6 = vadd.f32 1e-05, %v2666_v4 }
 0x33b   :  { %5013 = vrsqrt.f32 %v2668_v6  ;;  %v2785_v6 = vld [vmem:[#allocation4 + $0x14] sm:$0x3] }
 0x345   :  { %v5014_v46 = vpop.eup %5013 }
 0x346   :  { %v2670_v49 = vmul.f32 %v5014_v46, %v2667_v30 }
 0x348   :  { %v2672_v2 = vmul.f32 %v2670_v49, %v2662_v45  ;;  %v2678_v34 = vrot.slane %v2670_v49, %v5581_v16 }
 0x34a   :  { %v2673_v15 = vsub.f32 %v2671_v28, %v2672_v2  ;;  %v2680_v57 = vmul.f32 %v2678_v34, %v2612_v8  ;;  %v2681_v10 = vmul.f32 %v2678_v34, %v2615_v25  ;;  %v2682_v35 = vmul.f32 %v4768_v26, %v2678_v34 }
 0x34b   :  { %v2683_v36 = vmul.f32 %v4769_v40, %v2678_v34 }
 0x34c   :  { %v2688_v61 = vrot.slane %v2673_v15, %v5581_v16 }
 0x34e   :  { %v2690_v3 = vadd.f32 %v2688_v61, %v2680_v57  ;;  %v2691_v56 = vadd.f32 %v2688_v61, %v2681_v10  ;;  %v2692_v53 = vadd.f32 %v2688_v61, %v2682_v35  ;;  %v2693_v11 = vadd.f32 %v2688_v61, %v2683_v36 }
 0x350   :  { %v2694_v1 = vmax.f32 %v2690_v3, 0.0  ;;  %v2695_v38 = vmax.f32 %v2691_v56, 0.0  ;;  %v2696_v39 = vmax.f32 %v2692_v53, 0.0  ;;  %v2697_v62 = vmax.f32 %v2693_v11, 0.0 }
 0x352   :  { %v4436_v41 = vpack.c.bf16 %v2694_v1, %v2694_v1  ;;  %v4437_v42 = vpack.c.bf16 %v2695_v38, %v2695_v38  ;;  %v4438_v43 = vpack.c.bf16 %v2696_v39, %v2696_v39  ;;  %v4439_v32 = vpack.c.bf16 %v2697_v62, %v2697_v62 }
 0x354   :  { %v2728_v47 = vshrl.u32 %v4436_v41, 16  ;;  %v2731_v8 = vshll.u32 %v4436_v41, 16  ;;  %v2737_v25 = vshrl.u32 %v4437_v42, 16  ;;  %v2740_v26 = vshll.u32 %v4437_v42, 16 }
 0x355   :  { %v2747_v40 = vshrl.u32 %v4438_v43, 16  ;;  %v2750_v48 = vshll.u32 %v4438_v43, 16  ;;  %v2756_v5 = vshrl.u32 %v4439_v32, 16  ;;  %v2759_v58 = vshll.u32 %v4439_v32, 16 }
 0x356   :  { %v2730_v22 = vrot.slane %v2728_v47, 6  ;;  %v2733_v44 = vrot.slane %v2731_v8, 7  ;;  %v2739_v63 = vrot.slane %v2737_v25, 6  ;;  %v2742_v17 = vrot.slane %v2740_v26, 7 }
 0x357   :  { %v2749_v24 = vrot.slane %v2747_v40, 6  ;;  %v2752_v0 = vrot.slane %v2750_v48, 7  ;;  %v2758_v60 = vrot.slane %v2756_v5, 6  ;;  %v2761_v54 = vrot.slane %v2759_v58, 7 }
 0x358   :  { %v2734_v7 = vor.u32 %v2733_v44, %v2730_v22  ;;  %v2743_v27 = vor.u32 %v2742_v17, %v2739_v63 }
 0x359   :  { %v2753_v29 = vor.u32 %v2752_v0, %v2749_v24  ;;  %v2762_v45 = vor.u32 %v2761_v54, %v2758_v60 }
 0x35a   :  { %v2735_v51 = vrot.slane %v2734_v7, 4  ;;  %v2745_v21 = vrot.slane %v2743_v27, 4  ;;  %v2774_v4 = vsel %vm5902_vm12, %v2734_v7, %v2773_v55 }
 0x35b   :  { %v2754_v30 = vrot.slane %v2753_v29, 4  ;;  %v2764_v46 = vrot.slane %v2762_v45, 4  ;;  %2775 = vst [vmem:[#allocation4] sm:$0xe] %v2774_v4  ;;  %v2782_v49 = vsel %vm5902_vm12, %v2753_v29, %v2781_v9 }
 0x35c   :  { %v2744_v28 = vsel %vm5425_vm2, %v2735_v51, %v2743_v27  ;;  %v2779_v2 = vsel %vm5863_vm15, %v2745_v21, %v2778_v59  ;;  %2783 = vst [vmem:[#allocation4 + $0xc] sm:$0xe] %v2782_v49 }
 0x35d   :  { %v2763_v34 = vsel %vm5425_vm2, %v2754_v30, %v2762_v45  ;;  %2777 = vst.msk [vmem:[#allocation4 + $0x4] sm:$0xf] %vm2776_vm14, %v2744_v28  ;;  %2780 = vst [vmem:[#allocation4 + $0x8] sm:$0x3] %v2779_v2  ;;  %v2786_v15 = vsel %vm5863_vm15, %v2764_v46, %v2785_v6  ;;  %v4999_v45 = vld [vmem:[%s6220_s3 + $0x8] sm:$0xff]   ;;  %vm3824_vm15 = vcmask 130050  }
 0x35e   :  { %2784 = vst.msk [vmem:[#allocation4 + $0x10] sm:$0xf] %vm2776_vm14, %v2763_v34  ;;  %2787 = vst [vmem:[#allocation4 + $0x14] sm:$0x3] %v2786_v15 }
 0x362   :  { %v2788_v57 = vld [vmem:[#allocation4] sm:$0xf] }
 0x363   :  { %v2804_v10 = vshrl.u32 %v2788_v57, 16  ;;  %v2807_v35 = vshll.u32 %v2788_v57, 16  ;;  %v5918_v36 = vld [vmem:[#allocation4 + $0xc] sm:$0xf]  ;;  %v3001_v21 = vld [vmem:[#allocation4] sm:$0xe] }
 0x364   :  { %v5920_v61 = vld [vmem:[#allocation4 + $0x4] sm:$0xf]  ;;  %v2796_v3 = vld [vmem:[#allocation4 + $0x8] sm:$0x1]  ;;  %v2828_v56 = vshrl.u32 %v5918_v36, 16  ;;  %v2831_v53 = vshll.u32 %v5918_v36, 16 }
 0x365   :  { %v2806_v11 = vrot.slane %v2804_v10, 4  ;;  %v2809_v1 = vrot.slane %v2807_v35, 5  ;;  %v5925_v38 = vshll.u32 %v5920_v61, 16  ;;  %v5928_v31 = vshrl.u32 %v5920_v61, 16  ;;  %v5930_v39 = vld [vmem:[#allocation4 + $0x10] sm:$0xf] }
 0x366   :  { %v2823_v62 = vshll.u32 %v2796_v3, 16  ;;  %v5932_v41 = vld [vmem:[#allocation4 + $0x14] sm:$0x1]  ;;  %v2830_v42 = vrot.slane %v2828_v56, 4  ;;  %v2833_v43 = vrot.slane %v2831_v53, 5  ;;  %v5935_v32 = vshll.u32 %v5930_v39, 16 }
 0x367   :  { %v2810_v47 = vor.u32 %v2809_v1, %v2806_v11  ;;  %v2815_v8 = vrot.slane %v5925_v38, 5  ;;  %v2819_v25 = vrot.slane %v5928_v31, 4  ;;  %v5940_v26 = vshrl.u32 %v5930_v39, 16  ;;  %v5965_v28 = vld [vmem:[#allocation4 + $0x8] sm:$0x3]  ;;  %v5002_v10 = vld [vmem:[%s6220_s3 + $0x28] sm:$0xff]  }
 0x368   :  { %v2834_v40 = vor.u32 %v2833_v43, %v2830_v42  ;;  %v2839_v48 = vrot.slane %v5935_v32, 5  ;;  %v2847_v44 = vshll.u32 %v5932_v41, 16  ;;  %v2825_v17 = vrot.slane %v2823_v62, 5  ;;  %v3002_v62 = vld [vmem:[#allocation4 + $0xc] sm:$0xe]  ;;  %v5003_v42 = vld [vmem:[%s6220_s3 + $0x30] sm:$0xff]  }
 0x369   :  { %v2811_v5 = vrot.slane %v2810_v47, 4  ;;  %v2820_v58 = vor.u32 %v2819_v25, %v2815_v8  ;;  %v2843_v22 = vrot.slane %v5940_v26, 4  ;;  %v4362_v59 = vcombine.low %v2788_v57, %v5920_v61  ;;  %v3466_v13 = vld [vmem:[#allocation4 + $0xc] sm:$0x8] }
 0x36a   :  { %v2835_v24 = vrot.slane %v2834_v40, 4  ;;  %v2849_v55 = vrot.slane %v2847_v44, 5  ;;  %v3014_v51 = vrot.slane %v5920_v61, 5  ;;  %v3017_v6 = vrot.slane %v2796_v3, 5 }
 0x36b   :  { %v2821_v63 = vrot.slane %v2820_v58, 4  ;;  %v2844_v0 = vor.u32 %v2843_v22, %v2839_v48  ;;  %v2816_v60 = vsel %vm5220_vm13, %v2811_v5, %v2815_v8  ;;  %v3111_v30 = vshrl.u32 %v3001_v21, 16  ;;  %v5987_v22 = vld [vmem:[#allocation4 + $0x14] sm:$0x3] }
 0x36c   :  { %v2840_v27 = vsel %vm5220_vm13, %v2835_v24, %v2839_v48  ;;  %v3016_v4 = vrot.slane %v3014_v51, 4  ;;  %v3114_v46 = vshll.u32 %v3001_v21, 16  ;;  %v4372_v49 = vrot.slane %v3001_v21, 9 }
 0x36d   :  { %v2826_v54 = vsel %vm5220_vm13, %v2821_v63, %v2825_v17  ;;  %v2845_v19 = vrot.slane %v2844_v0, 4  ;;  %v3119_v2 = vrot.slane %v5928_v31, 5  ;;  %v3120_v34 = vrot.slane %v5925_v38, 6 }
 0x36e   :  { %v4356_v7 = vcombine.low %v2816_v60, %v2826_v54  ;;  %v4363_v15 = vcombine.low %v5918_v36, %v5930_v39  ;;  %v3015_v57 = vsel %vm5262_vm3, %v4372_v49, %v3014_v51  ;;  %v3113_v35 = vrot.slane %v3111_v30, 5 }
 0x36f   :  { %v2850_v9 = vsel %vm5220_vm13, %v2845_v19, %v2849_v55  ;;  %v3116_v3 = vrot.slane %v3114_v46, 6  ;;  %v3125_v56 = vshrl.u32 %v5965_v28, 16  ;;  %v3128_v53 = vshll.u32 %v5965_v28, 16  ;;  %v3233_v46 = vld [vmem:[#allocation4] sm:$0xc] }
 0x370   :  { %4774 = vmatprep.mubr.msk.bf16.mxu0 %vm2631_vm11, %v4356_v7  ;;  %v4357_v29 = vcombine.low %v2840_v27, %v2850_v9  ;;  %v3021_v1 = vrot.slane %v5930_v39, 5  ;;  %v3121_v36 = vor.u32 %v3120_v34, %v3119_v2  ;;  %v3134_v40 = vshrl.u32 %v3002_v62, 16 }
 0x371   :  { %v3117_v43 = vor.u32 %v3116_v3, %v3113_v35  ;;  %v3127_v47 = vrot.slane %v3125_v56, 5  ;;  %v3130_v8 = vrot.slane %v3128_v53, 6  ;;  %v3137_v5 = vshll.u32 %v3002_v62, 16  ;;  %v6013_v3 = vld [vmem:[#allocation4 + $0x8] sm:$0x7] }
 0x372   :  { %4775 = vmatmul.mubr.msk.bf16.vlgmr.msra.gmra.mrb[4].mxu0 %vm2631_vm11, %v4357_v29  ;;  %v3023_v25 = vrot.slane %v3021_v1, 4  ;;  %v3123_v48 = vrot.slane %v3121_v36, 4  ;;  %v3024_v58 = vrot.slane %v5932_v41, 5  ;;  %v3142_v17 = vrot.slane %v5940_v26, 5 }
 0x373   :  { %4779 = vmatpush3.bf16.msra.mxu0 %v5881_v23  ;;  %4782 = vmatprep.mubr.msk.bf16.mxu0 %vm2631_vm11, %v4362_v59  ;;  %v3018_v23 = vsel %vm5262_vm3, %v3016_v4, %v3017_v6  ;;  %v3118_v44 = vrot.slane %v3117_v43, 4  ;;  %v3131_v63 = vor.u32 %v3130_v8, %v3127_v47  ;;  %v3143_v24 = vrot.slane %v5935_v32, 6 }
 0x374   :  { %4780 = vmatprep.subr.bf16.mxu0 %v4999_v45  ;;  %v4374_v11 = vcombine.low %v3015_v57, %v3018_v23  ;;  %v4373_v0 = vrot.slane %v3002_v62, 9  ;;  %v3025_v60 = vsel %vm5262_vm3, %v3023_v25, %v3024_v58  ;;  %v3136_v54 = vrot.slane %v3134_v40, 5  ;;  %v3234_v40 = vld [vmem:[#allocation4 + $0xc] sm:$0xc] }
 0x375   :  { %v3132_v19 = vsel %vm5183_vm9, %v3123_v48, %v3131_v63  ;;  %v3139_v55 = vrot.slane %v3137_v5, 6  ;;  %v3148_v41 = vshrl.u32 %v5987_v22, 16  ;;  %v3151_v7 = vshll.u32 %v5987_v22, 16 }
 0x376   :  { %v3022_v27 = vsel %vm5262_vm3, %v4373_v0, %v3021_v1  ;;  %v3122_v29 = vsel %vm5183_vm9, %v3118_v44, %v3121_v36  ;;  %v3144_v59 = vor.u32 %v3143_v24, %v3142_v17  ;;  %v3246_v6 = vrot.slane %v5920_v61, 6 }
 0x377   :  { %4781 = vmatpush3.bf16.msra.mxu0 %v4999_v45  ;;  %v4375_v9 = vcombine.low %v3022_v27, %v3025_v60  ;;  %v5004_v45 = vld [vmem:[%s6220_s3 + $0x38] sm:$0xff]   ;;  %v4384_v51 = vcombine.low %v3122_v29, %v3132_v19  ;;  %v3150_v21 = vrot.slane %v3148_v41, 5  ;;  %v3153_v4 = vrot.slane %v3151_v7, 6 }
 0x378   :  { %4786 = vmatprep.subr.bf16.mxu0 %v5000_v12  ;;  %v3146_v30 = vrot.slane %v3144_v59, 4  ;;  %v3248_v2 = vrot.slane %v3246_v6, 4  ;;  %v3343_v57 = vshrl.u32 %v3233_v46, 16  ;;  %v4394_v35 = vrot.slane %v3233_v46, 10 }
 0x379   :  { %v3154_v23 = vor.u32 %v3153_v4, %v3150_v21  ;;  %v3352_v1 = vrot.slane %v5925_v38, 7  ;;  %v3357_v33 = vshrl.u32 %v6013_v3, 16  ;;  %v3360_v47 = vshll.u32 %v6013_v3, 16 }
 0x37a   :  { %v3247_v36 = vsel %vm5322_vm6, %v4394_v35, %v3246_v6  ;;  %v3253_v25 = vrot.slane %v5930_v39, 6  ;;  %v3256_v17 = vrot.slane %v5987_v22, 6  ;;  %v3366_v24 = vshrl.u32 %v3234_v40, 16 }
 0x37b   :  { %v3155_v34 = vsel %vm5183_vm9, %v3146_v30, %v3154_v23  ;;  %v3359_v5 = vrot.slane %v3357_v33, 6  ;;  %v3362_v58 = vrot.slane %v3360_v47, 7  ;;  %v3369_v0 = vshll.u32 %v3234_v40, 16 }
 0x37c   :  { %v3255_v44 = vrot.slane %v3253_v25, 4  ;;  %v4395_v60 = vrot.slane %v3234_v40, 10  ;;  %v3374_v7 = vrot.slane %v5940_v26, 6  ;;  %v3375_v27 = vrot.slane %v5935_v32, 7  ;;  %v5008_v26 = vld [vmem:[%s6220_s3 + $0x58] sm:$0xff]  }
 0x37d   :  { %v3363_v19 = vor.u32 %v3362_v58, %v3359_v5  ;;  %v3368_v29 = vrot.slane %v3366_v24, 6  ;;  %v3478_v52 = vrot.slane %v5920_v61, 7  ;;  %v3481_v61 = vrot.slane %v6013_v3, 7 }
 0x37e   :  { %4783 = vmatmul.mubr.msk.bf16.vlgmr.msra.gmra.mrb[4].mxu0 %vm2631_vm11, %v4363_v15  ;;  %v3249_v15 = vrot.slane %v5965_v28, 6  ;;  %v5006_v28 = vld [vmem:[%s6220_s3 + $0x48] sm:$0xff]   ;;  %v3257_v41 = vsel %vm5322_vm6, %v3255_v44, %v3256_v17  ;;  %v3376_v32 = vor.u32 %v3375_v27, %v3374_v7  ;;  %v3485_v3 = vrot.slane %v5930_v39, 7  ;;  %v3636_v39 = vld [vmem:[#allocation5] sm:$0x1] }
 0x37f   :  { %4787 = vmatpush3.bf16.msra.mxu0 %v5000_v12  ;;  %4790 = vmatprep.mubr.msk.bf16.mxu0 %vm2631_vm11, %v4374_v11  ;;  %v3140_v12 = vor.u32 %v3139_v55, %v3136_v54  ;;  %v3351_v11 = vrot.slane %v5928_v31, 6  ;;  %v5007_v31 = vld [vmem:[%s6220_s3 + $0x50] sm:$0xff]   ;;  %v3336_v55 = vld [vmem:[#allocation4 + $0x14] sm:$0x7]  ;;  %v3480_v23 = vrot.slane %v3478_v52, 4 }
 0x380   :  { %4788 = vmatprep.subr.bf16.mxu0 %v5002_v10  ;;  %v3250_v53 = vsel %vm5322_vm6, %v3248_v2, %v3249_v15  ;;  %v3465_v15 = vld [vmem:[#allocation4] sm:$0x8]  ;;  %vm3642_vm3 = vsmask.f32 7938 }
 0x381   :  { %v3141_v49 = vrot.slane %v3140_v12, 4  ;;  %v4396_v8 = vcombine.low %v3247_v36, %v3250_v53  ;;  %v3353_v38 = vor.u32 %v3352_v1, %v3351_v11  ;;  %v3482_v35 = vsel %vm5442_vm8, %v3480_v23, %v3481_v61  ;;  %v5010_v1 = vld [vmem:[%s6220_s3 + $0x68] sm:$0xff]  }
 0x382   :  { %v3487_v36 = vrot.slane %v3485_v3, 4 }
 0x383   :  { %4789 = vmatpush3.bf16.msra.mxu0 %v5002_v10  ;;  %v3346_v10 = vshll.u32 %v3233_v46, 16  ;;  %v3145_v56 = vsel %vm5183_vm9, %v3141_v49, %v3144_v59  ;;  %v3355_v63 = vrot.slane %v3353_v38, 4  ;;  %v3380_v59 = vshrl.u32 %v3336_v55, 16  ;;  %v5009_v46 = vld [vmem:[%s6220_s3 + $0x60] sm:$0xff]  }
 0x384   :  { %4794 = vmatprep.subr.bf16.mxu0 %v5003_v42  ;;  %v4385_v62 = vcombine.low %v3145_v56, %v3155_v34  ;;  %v3378_v49 = vrot.slane %v3376_v32, 4  ;;  %vm3634_vm9 = vcmask 122880  }
 0x385   :  { %v3348_v43 = vrot.slane %v3346_v10, 7  ;;  %v3364_v22 = vsel %vm5425_vm2, %v3355_v63, %v3363_v19  ;;  %v4416_v10 = vrot.slane %v3465_v15, 11  ;;  %vm6076_vm13 = vmand %vm3634_vm9, %vm956_vm7  ;;  %vm3567_vm7 = vcmask 130048  }
 0x386   :  { %v3637_v40 = vsel %vm6076_vm13, 0, %v3636_v39 }
 0x387   :  { %v3479_v11 = vsel %vm5442_vm8, %v4416_v10, %v3478_v52  ;;  %3638 = vst [vmem:[#allocation5] sm:$0x1] %v3637_v40 }
 0x38a   :  { %4791 = vmatmul.mubr.msk.bf16.vlgmr.msra.gmra.mrb[4].mxu0 %vm2631_vm11, %v4375_v9  ;;  %v3254_v9 = vsel %vm5322_vm6, %v4395_v60, %v3253_v25  ;;  %vm3643_vm6 = vmand %vm3634_vm9, %vm3642_vm3 }
 0x38b   :  { %4795 = vmatpush3.bf16.msra.mxu0 %v5003_v42  ;;  %4798 = vmatprep.mubr.msk.bf16.mxu0 %vm2631_vm11, %v4384_v51  ;;  %v3345_v42 = vrot.slane %v3343_v57, 6  ;;  %v3383_v51 = vshll.u32 %v3336_v55, 16  ;;  %v4397_v12 = vcombine.low %v3254_v9, %v3257_v41 }
 0x38c   :  { %4796 = vmatprep.subr.bf16.mxu0 %v5004_v45 }
 0x38d   :  { %v3349_v48 = vor.u32 %v3348_v43, %v3345_v42  ;;  %v3385_v30 = vrot.slane %v3383_v51, 7  ;;  %v4417_v42 = vrot.slane %v3466_v13, 11 }
 0x38f   :  { %4797 = vmatpush3.bf16.msra.mxu0 %v5004_v45  ;;  %v3350_v54 = vrot.slane %v3349_v48, 4  ;;  %v3371_v45 = vrot.slane %v3369_v0, 7  ;;  %v3486_v33 = vsel %vm5442_vm8, %v4417_v42, %v3485_v3  ;;  %v3607_v3 = vld [vmem:[%s6227_s10] sm:$0x1] }
 0x390   :  { %4802 = vmatprep.subr.bf16.mxu0 %v5005_v50 }
 0x391   :  { %v3354_v21 = vsel %vm5425_vm2, %v3350_v54, %v3353_v38  ;;  %v3372_v6 = vor.u32 %v3371_v45, %v3368_v29  ;;  %v3644_v38 = vld [vmem:[#allocation5 + $0x8] sm:$0x1] }
 0x392   :  { %v4406_v4 = vcombine.low %v3354_v21, %v3364_v22  ;;  %v3645_v48 = vsel %vm3643_vm6, 0, %v3644_v38 }
 0x393   :  { %v3373_v2 = vrot.slane %v3372_v6, 4  ;;  %3646 = vst [vmem:[#allocation5 + $0x8] sm:$0x1] %v3645_v48 }
 0x395   :  { %v3377_v56 = vsel %vm5425_vm2, %v3373_v2, %v3376_v32 }
 0x396   :  { %4799 = vmatmul.mubr.msk.bf16.vlgmr.msra.gmra.mrb[4].mxu0 %vm2631_vm11, %v4385_v62  ;;  %v4418_v62 = vcombine.low %v3479_v11, %v3482_v35  ;;  %v3603_v11 = vld [vmem:[%s6226_s9] sm:$0x1] }
 0x397   :  { %4803 = vmatpush3.bf16.msra.mxu0 %v5005_v50  ;;  %4806 = vmatprep.mubr.msk.bf16.mxu0 %vm2631_vm11, %v4396_v8  ;;  %v3382_v50 = vrot.slane %v3380_v59, 6  ;;  %v3639_v8 = vld [vmem:[#allocation5 + $0xc] sm:$0x1] }
 0x398   :  { %4804 = vmatprep.subr.bf16.mxu0 %v5006_v28  ;;  %v3640_v37 = vsel %vm6076_vm13, 0, %v3639_v8 }
 0x399   :  { %v3386_v34 = vor.u32 %v3385_v30, %v3382_v50  ;;  %3641 = vst [vmem:[#allocation5 + $0xc] sm:$0x1] %v3640_v37 }
 0x39b   :  { %4805 = vmatpush3.bf16.msra.mxu0 %v5006_v28  ;;  %v3387_v57 = vsel %vm5425_vm2, %v3378_v49, %v3386_v34  ;;  %v3488_v28 = vrot.slane %v3336_v55, 7  ;;  %vm3702_vm2 = vcmask 125952  }
 0x39c   :  { %4810 = vmatprep.subr.bf16.mxu0 %v5007_v31  ;;  %v4407_v53 = vcombine.low %v3377_v56, %v3387_v57 }
 0x39d   :  { %v3489_v43 = vsel %vm5442_vm8, %v3487_v36, %v3488_v28  ;;  %vm6104_vm8 = vmand %vm3702_vm2, %vm3642_vm3 }
 0x39e   :  { %v4419_v47 = vcombine.low %v3486_v33, %v3489_v43 }
 0x3a2   :  { %4807 = vmatmul.mubr.msk.bf16.vlgmr.msra.gmra.mrb[4].mxu0 %vm2631_vm11, %v4397_v12 }
 0x3a3   :  { %4811 = vmatpush3.bf16.msra.mxu0 %v5007_v31  ;;  %4814 = vmatprep.mubr.msk.bf16.mxu0 %vm2631_vm11, %v4406_v4  ;;  %v3647_v31 = vld [vmem:[#allocation5 + $0x14] sm:$0x1] }
 0x3a4   :  { %4812 = vmatprep.subr.bf16.mxu0 %v5008_v26  ;;  %v3648_v5 = vsel %vm3643_vm6, 0, %v3647_v31 }
 0x3a5   :  { %3649 = vst [vmem:[#allocation5 + $0x14] sm:$0x1] %v3648_v5 }
 0x3a7   :  { %4813 = vmatpush3.bf16.msra.mxu0 %v5008_v26 }
 0x3a8   :  { %4818 = vmatprep.subr.bf16.mxu0 %v5009_v46 }
 0x3ae   :  { %4815 = vmatmul.mubr.msk.bf16.vlgmr.msra.gmra.mrb[4].mxu0 %vm2631_vm11, %v4407_v53 }
 0x3af   :  { %4819 = vmatpush3.bf16.msra.mxu0 %v5009_v46  ;;  %4822 = vmatprep.mubr.msk.bf16.mxu0 %vm2631_vm11, %v4418_v62 }
 0x3b0   :  { %4820 = vmatprep.subr.bf16.mxu0 %v5010_v1 }
 0x3b3   :  { %4821 = vmatpush3.bf16.msra.mxu0 %v5010_v1 }
 0x3ba   :  { %4823 = vmatmul.mubr.msk.bf16.vlgmr.msra.gmra.mrb[4].mxu0 %vm2631_vm11, %v4419_v47 }
 0x48d   :  { %v4824_v58 = vpop.f32.mrb[4].mxu0 }
 0x48e   :  { %v3548_v44 = vpop.f32.mrb[5].mxu0  ;;  %v3583_v0 = vmul.f32 %v4824_v58, %v4824_v58  ;;  %v3571_v41 = vsel %vm3567_vm7, %v4824_v58, 0.0 }
 0x48f   :  { %v3581_v63 = vmul.f32 %v3548_v44, %v3548_v44  ;;  %v4825_v17 = vpop.f32.mrb[6].mxu0  ;;  %v3568_v60 = vsel %vm3567_vm7, %v3548_v44, 0.0 }
 0x490   :  { %v3551_v24 = vpop.f32.mrb[7].mxu0  ;;  %v3584_v27 = vmul.f32 %v4825_v17, %v4825_v17  ;;  %v3588_v45 = vsel %vm3567_vm7, %v3583_v0, 0.0  ;;  %v3573_v59 = vsel %vm3567_vm7, %v4825_v17, 0.0 }
 0x491   :  { %v3569_v54 = vsel %vm3567_vm7, %v3551_v24, 0.0  ;;  %v3582_v19 = vmul.f32 %v3551_v24, %v3551_v24  ;;  %v3585_v7 = vsel %vm3567_vm7, %v3581_v63, 0.0 }
 0x492   :  { %v3570_v55 = vadd.f32 %v3569_v54, %v3568_v60  ;;  %v3590_v21 = vsel %vm3567_vm7, %v3584_v27, 0.0 }
 0x493   :  { %v3586_v9 = vsel %vm3567_vm7, %v3582_v19, 0.0 }
 0x494   :  { %v3572_v22 = vadd.f32 %v3571_v41, %v3570_v55  ;;  %v3587_v29 = vadd.f32 %v3586_v9, %v3585_v7 }
 0x496   :  { %v3574_v51 = vadd.f32 %v3573_v59, %v3572_v22  ;;  %v3589_v12 = vadd.f32 %v3588_v45, %v3587_v29  ;;  %v3712_v22 = vld [vmem:[#allocation5 + $0xc] sm:$0xf] }
 0x498   :  { %v3575_v26 = vrot.slane %v3574_v51, 4  ;;  %v3591_v4 = vadd.f32 %v3590_v21, %v3589_v12 }
 0x49a   :  { %v3576_v32 = vadd.f32 %v3575_v26, %v3574_v51  ;;  %v3592_v52 = vrot.slane %v3591_v4, 4  ;;  %v3709_v51 = vld [vmem:[#allocation5 + $0x8] sm:$0x1] }
 0x49c   :  { %v3577_v6 = vrot.slane %v3576_v32, 2  ;;  %v3593_v50 = vadd.f32 %v3592_v52, %v3591_v4  ;;  %v3704_v52 = vld [vmem:[#allocation5] sm:$0xf] }
 0x49e   :  { %v3578_v30 = vadd.f32 %v3577_v6, %v3576_v32  ;;  %v3594_v46 = vrot.slane %v3593_v50, 2  ;;  %v3716_v6 = vld [vmem:[#allocation5 + $0x14] sm:$0x1] }
 0x4a0   :  { %v3579_v49 = vrot.slane %v3578_v30, 1  ;;  %v3595_v23 = vadd.f32 %v3594_v46, %v3593_v50 }
 0x4a2   :  { %v3580_v2 = vadd.f32 %v3579_v49, %v3578_v30  ;;  %v3596_v34 = vrot.slane %v3595_v23, 1 }
 0x4a4   :  { %v3597_v15 = vadd.f32 %v3596_v34, %v3595_v23  ;;  %v3598_v61 = vmul.f32 0.03125, %v3580_v2 }
 0x4a6   :  { %v3599_v57 = vmul.f32 0.03125, %v3597_v15  ;;  %v3600_v10 = vmul.f32 %v3598_v61, %v3598_v61 }
 0x4a8   :  { %v3601_v35 = vsub.f32 %v3599_v57, %v3600_v10  ;;  %v3758_v10 = vsub.s32 1, %v5575_v20 }
 0x4aa   :  { %v3602_v56 = vmax.f32 %v3601_v35, 0.0  ;;  %v3759_v35 = vrot.slane %v3719_v14, %v3758_v10 }
 0x4ac   :  { %v3604_v53 = vadd.f32 1e-05, %v3602_v56 }
 0x4ae   :  { %5015 = vrsqrt.f32 %v3604_v53 }
 0x4b8   :  { %v5016_v1 = vpop.eup %5015 }
 0x4b9   :  { %v3606_v62 = vmul.f32 %v5016_v1, %v3603_v11 }
 0x4bb   :  { %v3608_v36 = vmul.f32 %v3606_v62, %v3598_v61  ;;  %v3614_v13 = vrot.slane %v3606_v62, %v5581_v16 }
 0x4bd   :  { %v3609_v28 = vsub.f32 %v3607_v3, %v3608_v36  ;;  %v3616_v42 = vmul.f32 %v3614_v13, %v3548_v44  ;;  %v3617_v43 = vmul.f32 %v3614_v13, %v3551_v24  ;;  %v3618_v33 = vmul.f32 %v4824_v58, %v3614_v13 }
 0x4be   :  { %v3619_v47 = vmul.f32 %v4825_v17, %v3614_v13 }
 0x4bf   :  { %v3624_v39 = vrot.slane %v3609_v28, %v5581_v16 }
 0x4c1   :  { %v3626_v8 = vadd.f32 %v3624_v39, %v3616_v42  ;;  %v3627_v38 = vadd.f32 %v3624_v39, %v3617_v43  ;;  %v3628_v31 = vadd.f32 %v3624_v39, %v3618_v33  ;;  %v3629_v40 = vadd.f32 %v3624_v39, %v3619_v47 }
 0x4c2   :  { %v3816_v47 = vsub.s32 2, %v5575_v20 }
 0x4c3   :  { %v3630_v37 = vmax.f32 %v3626_v8, 0.0  ;;  %v3631_v48 = vmax.f32 %v3627_v38, 0.0  ;;  %v3632_v5 = vmax.f32 %v3628_v31, 0.0  ;;  %v3633_v63 = vmax.f32 %v3629_v40, 0.0 }
 0x4c5   :  { %v4440_v0 = vpack.c.bf16 %v3630_v37, %v3630_v37  ;;  %v4441_v60 = vpack.c.bf16 %v3631_v48, %v3631_v48  ;;  %v4442_v54 = vpack.c.bf16 %v3632_v5, %v3632_v5  ;;  %v4443_v19 = vpack.c.bf16 %v3633_v63, %v3633_v63 }
 0x4c6   :  { %v3817_v48 = vrot.slane %v3719_v14, %v3816_v47 }
 0x4c7   :  { %v3663_v55 = vshrl.u32 %v4440_v0, 16  ;;  %v3671_v41 = vshrl.u32 %v4441_v60, 16  ;;  %v3680_v44 = vshrl.u32 %v4442_v54, 16  ;;  %v3674_v58 = vshll.u32 %v4441_v60, 16 }
 0x4c8   :  { %v3688_v17 = vshrl.u32 %v4443_v19, 16  ;;  %v3683_v9 = vshll.u32 %v4442_v54, 16  ;;  %v3691_v45 = vshll.u32 %v4443_v19, 16  ;;  %v3666_v12 = vshll.u32 %v4440_v0, 16 }
 0x4c9   :  { %v3665_v24 = vrot.slane %v3663_v55, 7  ;;  %v3673_v7 = vrot.slane %v3671_v41, 7  ;;  %v3682_v27 = vrot.slane %v3680_v44, 7 }
 0x4ca   :  { %v3690_v29 = vrot.slane %v3688_v17, 7 }
 0x4cb   :  { %v3669_v21 = vrot.slane %v3665_v24, 4  ;;  %v3676_v26 = vor.u32 %v3674_v58, %v3673_v7  ;;  %v3678_v4 = vrot.slane %v3673_v7, 4  ;;  %v3685_v32 = vor.u32 %v3683_v9, %v3682_v27 }
 0x4cc   :  { %v3686_v50 = vrot.slane %v3682_v27, 4  ;;  %v3693_v30 = vor.u32 %v3691_v45, %v3690_v29  ;;  %v3695_v46 = vrot.slane %v3690_v29, 4  ;;  %v3668_v49 = vor.u32 %v3666_v12, %v3665_v24 }
 0x4cd   :  { %v3677_v23 = vsel %vm5357_vm10, %v3669_v21, %v3676_v26  ;;  %v3710_v2 = vsel %vm6076_vm13, %v3678_v4, %v3709_v51  ;;  %v3713_v34 = vsel %vm6104_vm8, %v3685_v32, %v3712_v22  ;;  %v3731_v22 = vrot.slane %v3719_v14, %v5581_v16 }
 0x4ce   :  { %v3694_v15 = vsel %vm5357_vm10, %v3686_v50, %v3693_v30  ;;  %3711 = vst [vmem:[#allocation5 + $0x8] sm:$0x1] %v3710_v2  ;;  %3714 = vst [vmem:[#allocation5 + $0xc] sm:$0xf] %v3713_v34  ;;  %v3717_v61 = vsel %vm6076_vm13, %v3695_v46, %v3716_v6  ;;  %v3705_v57 = vsel %vm6104_vm8, %v3668_v49, %v3704_v52  ;;  %vm3766_vm10 = vcmask 130049  }
 0x4cf   :  { %3708 = vst.msk [vmem:[#allocation5 + $0x4] sm:$0xf] %vm3702_vm2, %v3677_v23  ;;  %3715 = vst.msk [vmem:[#allocation5 + $0x10] sm:$0xf] %vm3702_vm2, %v3694_v15 }
 0x4d0   :  { %3718 = vst [vmem:[#allocation5 + $0x14] sm:$0x1] %v3717_v61  ;;  %3706 = vst [vmem:[#allocation5] sm:$0xf] %v3705_v57 }
 0x4d5   :  { %v3752_v56 = vld [vmem:[#allocation5 + $0x8] sm:$0x1]  ;;  %v3811_v60 = vld [vmem:[#allocation5 + $0xc] sm:$0xe] }
 0x4d6   :  { %v3754_v53 = vunpack.c.l.bf16 %v3752_v56  ;;  %v3722_v11 = vld [vmem:[#allocation5 + $0xc] sm:$0xff]   ;;  %v3813_v55 = vunpack.c.l.bf16 %v3811_v60 }
 0x4d7   :  { %v4445_v25 = vld [vmem:[#allocation5] sm:$0xff]   ;;  %v3726_v3 = vunpack.c.l.bf16 %v3722_v11  ;;  %v3753_v36 = vld [vmem:[#allocation5 + $0x14] sm:$0x1]  ;;  %v3727_v38 = vunpack.c.h.bf16 %v3722_v11 }
 0x4d8   :  { %v4446_v1 = vunpack.c.l.bf16 %v4445_v25  ;;  %v4447_v62 = vunpack.c.h.bf16 %v4445_v25  ;;  %v3762_v13 = vmul.f32 %v3759_v35, %v3754_v53  ;;  %v3755_v33 = vunpack.c.l.bf16 %v3753_v36  ;;  %v3810_v31 = vld [vmem:[#allocation5] sm:$0xe] }
 0x4d9   :  { %v3763_v43 = vmul.f32 %v3759_v35, %v3726_v3  ;;  %v3764_v63 = vmul.f32 %v3759_v35, %v3727_v38  ;;  %v3812_v0 = vunpack.c.l.bf16 %v3810_v31  ;;  %v3821_v17 = vmul.f32 %v3817_v48, %v3813_v55 }
 0x4da   :  { %v3760_v28 = vmul.f32 %v4446_v1, %v3759_v35  ;;  %v3774_v42 = vsel %vm3634_vm9, %v3762_v13, 0.0  ;;  %v3761_v8 = vmul.f32 %v4447_v62, %v3759_v35  ;;  %v3765_v37 = vmul.f32 %v3759_v35, %v3755_v33 }
 0x4db   :  { %3775 = vadd.xlane.f32.xlu1 %v3774_v42  ;;  %v3777_v40 = vsel %vm3766_vm10, %v3763_v43, 0.0  ;;  %v3819_v19 = vmul.f32 %v4447_v62, %v3817_v48  ;;  %v3780_v41 = vsel %vm3567_vm7, %v3764_v63, 0.0  ;;  %v3818_v44 = vmul.f32 %v3817_v48, %v3812_v0 }
 0x4dc   :  { %v3767_v39 = vsel %vm3766_vm10, %v3760_v28, 0.0  ;;  %v3770_v5 = vsel %vm3567_vm7, %v3761_v8, 0.0  ;;  %v3783_v54 = vsel %vm3634_vm9, %v3765_v37, 0.0  ;;  %v3820_v7 = vmul.f32 %v3817_v48, %v3754_v53 }
 0x4dd   :  { %3768 = vadd.xlane.f32.xlu0 %v3767_v39  ;;  %v3828_v58 = vsel %vm3567_vm7, %v3819_v19, 0.0  ;;  %v3825_v24 = vsel %vm3824_vm15, %v3818_v44, 0.0  ;;  %v3835_v27 = vsel %vm3824_vm15, %v3821_v17, 0.0  ;;  %v3823_v9 = vmul.f32 %v3817_v48, %v3755_v33 }
 0x4de   :  { %v3832_v29 = vsel %vm3831_vm4, %v3820_v7, 0.0  ;;  %v3822_v45 = vmul.f32 %v3817_v48, %v3727_v38  ;;  %v3733_v51 = vmul.f32 %v4447_v62, %v3731_v22  ;;  %v3732_v21 = vmul.f32 %v4446_v1, %v3731_v22 }
 0x4df   :  { %3778 = vadd.xlane.f32.xlu1 %v3777_v40  ;;  %v3841_v59 = vsel %vm3831_vm4, %v3823_v9, 0.0  ;;  %v3735_v4 = vmul.f32 %v3731_v22, %v3727_v38  ;;  %v3734_v52 = vmul.f32 %v3731_v22, %v3726_v3  ;;  %v3885_v22 = vand.u32 127, %v1444_v18 }
 0x4e0   :  { %v3838_v12 = vsel %vm3567_vm7, %v3822_v45, 0.0  ;;  %v3739_v26 = vsel %vm3567_vm7, %v3733_v51, 0.0  ;;  %v3736_v32 = vsel %vm3567_vm7, %v3732_v21, 0.0 }
 0x4e1   :  { %3771 = vadd.xlane.f32.xlu0 %v3770_v5  ;;  %v3745_v6 = vsel %vm3567_vm7, %v3735_v4, 0.0  ;;  %v3742_v50 = vsel %vm3567_vm7, %v3734_v52, 0.0  ;;  %v6173_v51 = vsub.s32 %v3885_v22, %v5575_v20 }
 0x4e3   :  { %3784 = vadd.xlane.f32.xlu1 %v3783_v54 }
 0x4e5   :  { %3781 = vadd.xlane.f32.xlu0 %v3780_v41 }
 0x4e7   :  { %3829 = vadd.xlane.f32.xlu1 %v3828_v58 }
 0x4e9   :  { %3826 = vadd.xlane.f32.xlu0 %v3825_v24 }
 0x4eb   :  { %3836 = vadd.xlane.f32.xlu1 %v3835_v27 }
 0x4ed   :  { %3833 = vadd.xlane.f32.xlu0 %v3832_v29  ;;  %v3890_v29 = vadd.s32 4294967288, %v3885_v22 }
 0x4ef   :  { %3842 = vadd.xlane.f32.xlu1 %v3841_v59  ;;  %v6170_v59 = vsub.s32 %v3890_v29, %v5575_v20 }
 0x4f1   :  { %3839 = vadd.xlane.f32.xlu0 %v3838_v12 }
 0x4f3   :  { %3740 = vadd.xlane.f32.xlu1 %v3739_v26 }
 0x4f5   :  { %3737 = vadd.xlane.f32.xlu0 %v3736_v32 }
 0x4f7   :  { %3746 = vadd.xlane.f32.xlu1 %v3745_v6 }
 0x4f9   :  { %3743 = vadd.xlane.f32.xlu0 %v3742_v50 }
 0x568   :  { %v3776_v30 = vpop.xlane.xlu1 %3775 }
 0x569   :  { %v3795_v53 = vrot.slane %v3776_v30, 1 }
 0x56a   :  { %v3769_v46 = vpop.xlane.xlu0 %3768 }
 0x56b   :  { %v3792_v11 = vrot.slane %v3769_v46, 1 }
 0x56c   :  { %v3779_v49 = vpop.xlane.xlu1 %3778 }
 0x56d   :  { %v3797_v33 = vrot.slane %v3779_v49, 1 }
 0x56e   :  { %v3772_v23 = vpop.xlane.xlu0 %3771 }
 0x56f   :  { %v3793_v14 = vrot.slane %v3772_v23, 1 }
 0x570   :  { %v3785_v2 = vpop.xlane.xlu1 %3784 }
 0x571   :  { %v3796_v36 = vsel %vm227_vm1, %v3793_v14, %v3795_v53  ;;  %v3794_v42 = vsel %vm227_vm1, %v3792_v11, %v3793_v14  ;;  %v3800_v8 = vrot.slane %v3785_v2, 1 }
 0x572   :  { %v3782_v34 = vpop.xlane.xlu0 %3781 }
 0x573   :  { %v3798_v13 = vrot.slane %v3782_v34, 1 }
 0x574   :  { %v3830_v15 = vpop.xlane.xlu1 %3829 }
 0x575   :  { %v3851_v1 = vrot.slane %v3830_v15, 2  ;;  %v3799_v63 = vsel %vm227_vm1, %v3797_v33, %v3798_v13  ;;  %v3801_v19 = vsel %vm227_vm1, %v3798_v13, %v3800_v8  ;;  %vm3906_vm1 = vcmask 1041409  }
 0x576   :  { %v3827_v61 = vpop.xlane.xlu0 %3826 }
 0x577   :  { %v3850_v62 = vrot.slane %v3827_v61, 2 }
 0x578   :  { %v3837_v57 = vpop.xlane.xlu1 %3836 }
 0x579   :  { %v3852_v40 = vsel %vm226_vm0, %v3850_v62, %v3851_v1  ;;  %v3855_v48 = vrot.slane %v3837_v57, 2 }
 0x57a   :  { %v3834_v10 = vpop.xlane.xlu0 %3833 }
 0x57b   :  { %v3853_v25 = vrot.slane %v3834_v10, 2 }
 0x57c   :  { %v3843_v35 = vpop.xlane.xlu1 %3842 }
 0x57d   :  { %v3854_v47 = vsel %vm226_vm0, %v3851_v1, %v3853_v25  ;;  %v3858_v54 = vrot.slane %v3843_v35, 2 }
 0x57e   :  { %v3840_v56 = vpop.xlane.xlu0 %3839 }
 0x57f   :  { %v3856_v38 = vrot.slane %v3840_v56, 2 }
 0x580   :  { %v3741_v3 = vpop.xlane.xlu1 %3740 }
 0x581   :  { %v3807_v28 = vadd.f32 %v3796_v36, %v3741_v3  ;;  %v3857_v55 = vsel %vm226_vm0, %v3855_v48, %v3856_v38  ;;  %v3859_v58 = vsel %vm226_vm0, %v3856_v38, %v3858_v54  ;;  %vm3895_vm0 = vcmask 130112   ;;  %v3976_v54 = vld [vmem:[#allocation6] sm:$0x1] }
 0x582   :  { %v3738_v43 = vpop.xlane.xlu0 %3737 }
 0x583   :  { %v3806_v39 = vadd.f32 %v3794_v42, %v3738_v43  ;;  %v6143_v31 = vadd.f32 %v3854_v47, %v3807_v28 }
 0x584   :  { %v3747_v5 = vpop.xlane.xlu1 %3746 }
 0x585   :  { %v6146_v37 = vadd.f32 %v3852_v40, %v3806_v39  ;;  %3876 = vperm.xlu1 %4930, %v6143_v31   ;;  %v3809_v41 = vadd.f32 %v3801_v19, %v3747_v5  ;;  %v3921_v7 = vmul.f32 %v6143_v31, %v6143_v31 }
 0x586   :  { %v3744_v0 = vpop.xlane.xlu0 %3743 }
 0x587   :  { %v3808_v60 = vadd.f32 %v3799_v63, %v3744_v0  ;;  %3873 = vperm.xlu0 %4929, %v6146_v37   ;;  %v6157_v17 = vadd.f32 %v3859_v58, %v3809_v41  ;;  %v3920_v24 = vmul.f32 %v6146_v37, %v6146_v37  ;;  %v3980_v41 = vld [vmem:[#allocation7] sm:$0x1] }
 0x589   :  { %v6153_v44 = vadd.f32 %v3857_v55, %v3808_v60  ;;  %v3923_v9 = vmul.f32 %v6157_v17, %v6157_v17 }
 0x58b   :  { %3879 = vperm.xlu1 %4930, %v6153_v44   ;;  %v3922_v27 = vmul.f32 %v6153_v44, %v6153_v44 }
 0x58f   :  { %3882 = vperm.xlu1 %4930, %v6157_v17  }
 0x593   :  { %3929 = vperm.xlu1 %4930, %v3920_v24  }
 0x597   :  { %3932 = vperm.xlu1 %4930, %v3921_v7  }
 0x59b   :  { %3935 = vperm.xlu1 %4930, %v3922_v27  }
 0x59f   :  { %3938 = vperm.xlu1 %4930, %v3923_v9  }
 0x604   :  { %v3877_v45 = vpop.permute.xlu1 %3876 }
 0x605   :  { %v3894_v26 = vrot.slane %v3877_v45, %v6170_v59 }
 0x606   :  { %v3874_v12 = vpop.permute.xlu0 %3873 }
 0x607   :  { %v3889_v4 = vrot.slane %v3874_v12, %v6173_v51 }
 0x609   :  { %v3896_v6 = vsel %vm3895_vm0, %v3894_v26, %v3889_v4 }
 0x60a   :  { %v3880_v21 = vpop.permute.xlu1 %3879 }
 0x60b   :  { %v3900_v52 = vrot.slane %v3880_v21, %v6173_v51 }
 0x60e   :  { %v3883_v32 = vpop.permute.xlu1 %3882 }
 0x60f   :  { %v3904_v18 = vrot.slane %v3883_v32, %v6170_v59 }
 0x611   :  { %v3905_v50 = vsel %vm3895_vm0, %v3904_v18, %v3900_v52 }
 0x612   :  { %v3930_v30 = vpop.permute.xlu1 %3929  ;;  %v3907_v20 = vsel %vm3906_vm1, %v3905_v50, %v3896_v6 }
 0x613   :  { %v3909_v46 = vsel %vm3831_vm4, %v3907_v20, 0.0  ;;  %v3943_v15 = vrot.slane %v3930_v30, %v6173_v51 }
 0x614   :  { %3910 = vadd.xlane.f32.xlu1 %v3909_v46 }
 0x616   :  { %v3933_v49 = vpop.permute.xlu1 %3932 }
 0x617   :  { %v3947_v2 = vrot.slane %v3933_v49, %v6170_v59 }
 0x619   :  { %v3948_v10 = vsel %vm3895_vm0, %v3947_v2, %v3943_v15 }
 0x61a   :  { %v3936_v23 = vpop.permute.xlu1 %3935 }
 0x61b   :  { %v3952_v61 = vrot.slane %v3936_v23, %v6173_v51 }
 0x61e   :  { %v3939_v34 = vpop.permute.xlu1 %3938 }
 0x61f   :  { %v3956_v57 = vrot.slane %v3939_v34, %v6170_v59 }
 0x621   :  { %v3957_v14 = vsel %vm3895_vm0, %v3956_v57, %v3952_v61 }
 0x622   :  { %v3958_v35 = vsel %vm3906_vm1, %v3957_v14, %v3948_v10 }
 0x623   :  { %v3960_v56 = vsel %vm3831_vm4, %v3958_v35, 0.0 }
 0x624   :  { %3961 = vadd.xlane.f32.xlu0 %v3960_v56 }
 0x6a1   :  { %v3911_v53 = vpop.xlane.xlu1 %3910 }
 0x6a2   :  { %v3912_v25 = vrot.slane %v3911_v53, 4 }
 0x6a4   :  { %v3913_v11 = vadd.f32 %v3912_v25, %v3911_v53 }
 0x6a6   :  { %v3914_v1 = vrot.slane %v3913_v11, 2 }
 0x6a8   :  { %v3915_v62 = vadd.f32 %v3914_v1, %v3913_v11 }
 0x6aa   :  { %v3916_v3 = vrot.slane %v3915_v62, 1 }
 0x6ac   :  { %v3917_v36 = vadd.f32 %v3916_v3, %v3915_v62 }
 0x6ae   :  { %4922 = vpush %v3917_v36 }
 0x6b1   :  { %v3962_v13 = vpop.xlane.xlu0 %3961 }
 0x6b2   :  { %v3963_v28 = vrot.slane %v3962_v13, 4 }
 0x6b4   :  { %v3964_v42 = vadd.f32 %v3963_v28, %v3962_v13 }
 0x6b6   :  { %v3965_v43 = vrot.slane %v3964_v42, 2 }
 0x6b8   :  { %v3966_v33 = vadd.f32 %v3965_v43, %v3964_v42 }
 0x6ba   :  { %v3967_v47 = vrot.slane %v3966_v33, 1 }
 0x6bc   :  { %v3968_v39 = vadd.f32 %v3967_v47, %v3966_v33 }
 0x6be   :  { %4924 = vpush %v3968_v39 }
 0x6df   :  { %s4923_s4 = spop %4922 }
 0x6e0   :  { %v3919_v8 = vstv %s4923_s4 }
 0x6e1   :  { %v3971_v38 = vmul.f32 0.03125, %v3919_v8 }
 0x6e3   :  { %v3973_v48 = vmul.f32 %v3971_v38, %v3971_v38 }
 0x6ef   :  { %s4925_s6 = spop %4924 }
 0x6f0   :  { %v3970_v40 = vstv %s4925_s6 }
 0x6f1   :  { %v3972_v5 = vmul.f32 0.03125, %v3970_v40 }
 0x6f3   :  { %v3974_v63 = vsub.f32 %v3972_v5, %v3973_v48 }
 0x6f5   :  { %v3975_v0 = vmax.f32 %v3974_v63, 0.0 }
 0x6f7   :  { %v3977_v60 = vadd.f32 1e-05, %v3975_v0 }
 0x6f9   :  { %5017 = vrsqrt.f32 %v3977_v60 }
 0x703   :  { %v5018_v19 = vpop.eup %5017 }
 0x704   :  { %v3979_v55 = vmul.f32 %v5018_v19, %v3976_v54 }
 0x706   :  { %v3987_v58 = vrot.slane %v3979_v55, %v5581_v16  ;;  %v3981_v24 = vmul.f32 %v3979_v55, %v3971_v38 }
 0x708   :  { %3989 = vperm.xlu0 %4929, %v3987_v58   ;;  %v3982_v7 = vsub.f32 %v3980_v41, %v3981_v24 }
 0x70a   :  { %v4000_v27 = vrot.slane %v3982_v7, %v5581_v16 }
 0x70c   :  { %4002 = vperm.xlu1 %4930, %v4000_v27  }
 0x787   :  { %v3990_v9 = vpop.permute.xlu0 %3989 }
 0x788   :  { %v3992_v22 = vmul.f32 %v3990_v9, %v6146_v37  ;;  %v3993_v29 = vmul.f32 %v3990_v9, %v6143_v31  ;;  %v3994_v45 = vmul.f32 %v3990_v9, %v6153_v44  ;;  %v3995_v12 = vmul.f32 %v3990_v9, %v6157_v17 }
 0x78b   :  { %v4003_v21 = vpop.permute.xlu1 %4002 }
 0x78c   :  { %v4005_v26 = vadd.f32 %v4003_v21, %v3992_v22  ;;  %v4006_v4 = vadd.f32 %v4003_v21, %v3993_v29  ;;  %v4007_v32 = vadd.f32 %v4003_v21, %v3994_v45  ;;  %v4008_v52 = vadd.f32 %v4003_v21, %v3995_v12 }
 0x78e   :  { %v4428_v18 = vmul.f32 -1.442695, %v4005_v26  ;;  %v4429_v6 = vmul.f32 -1.442695, %v4006_v4  ;;  %v4430_v50 = vmul.f32 -1.442695, %v4007_v32 }
 0x78f   :  { %v4431_v30 = vmul.f32 -1.442695, %v4008_v52 }
 0x790   :  { %5019 = vpow2.f32 %v4428_v18 }
 0x791   :  { %5021 = vpow2.f32 %v4429_v6 }
 0x792   :  { %5023 = vpow2.f32 %v4430_v50 }
 0x793   :  { %5025 = vpow2.f32 %v4431_v30 }
 0x79a   :  { %v5020_v16 = vpop.eup %5019 }
 0x79b   :  { %v5022_v37 = vpop.eup %5021  ;;  %v4021_v31 = vadd.f32 1.0, %v5020_v16 }
 0x79c   :  { %v5024_v20 = vpop.eup %5023  ;;  %v4022_v44 = vadd.f32 1.0, %v5022_v37 }
 0x79d   :  { %v5026_v46 = vpop.eup %5025  ;;  %v4023_v17 = vadd.f32 1.0, %v5024_v20  ;;  %5027 = vrcp.f32 %v4021_v31 }
 0x79e   :  { %v4024_v49 = vadd.f32 1.0, %v5026_v46  ;;  %5029 = vrcp.f32 %v4022_v44 }
 0x79f   :  { %5031 = vrcp.f32 %v4023_v17 }
 0x7a0   :  { %5033 = vrcp.f32 %v4024_v49 }
 0x7a7   :  { %v5028_v23 = vpop.eup %5027 }
 0x7a8   :  { %v5030_v2 = vpop.eup %5029  ;;  %4038 = vperm.xlu1 %4930, %v5028_v23  }
 0x7a9   :  { %4041 = vperm.xlu0 %4929, %v5030_v2   ;;  %v5032_v34 = vpop.eup %5031 }
 0x7aa   :  { %v5034_v15 = vpop.eup %5033 }
 0x7ac   :  { %4044 = vperm.xlu1 %4930, %v5032_v34  }
 0x7ad   :  { %4047 = vperm.xlu0 %4929, %v5034_v15  }
 0x827   :  { %v4039_v61 = vpop.permute.xlu1 %4038 }
 0x828   :  { %v4042_v57 = vpop.permute.xlu0 %4041  ;;  %v4052_v14 = vrot.slane %v4039_v61, %v6173_v51 }
 0x829   :  { %v4056_v10 = vrot.slane %v4042_v57, %v6170_v59 }
 0x82b   :  { %v4045_v35 = vpop.permute.xlu1 %4044  ;;  %v4057_v11 = vsel %vm3895_vm0, %v4056_v10, %v4052_v14 }
 0x82c   :  { %v4048_v56 = vpop.permute.xlu0 %4047  ;;  %v4061_v53 = vrot.slane %v4045_v35, %v6173_v51 }
 0x82d   :  { %v4065_v25 = vrot.slane %v4048_v56, %v6170_v59 }
 0x82f   :  { %v4066_v1 = vsel %vm3895_vm0, %v4065_v25, %v4061_v53 }
 0x830   :  { %v4067_v62 = vsel %vm3906_vm1, %v4066_v1, %v4057_v11 }
 0x831   :  { %4069 = vst.msk [vmem:[#allocation8] sm:$0x3] %vm3831_vm4, %v4067_v62 }
 0x832   :  { %5046 = shalt.err (!%p5043_p4)
}
 0x833   :  { %s5047_s12 = scalar_lea.hbm %s6229_s13, 32 }
 0x834   :  { %p5048_p5 = scmp.ne.s32.totalorder %s6229_s13, %s5047_s12  ;;  %p5051_p6 = scmp.lt.u32.totalorder %s5047_s12, %s6229_s13 }
 0x836   :  { %p5053_p7 = pnand %p5051_p6, %p5048_p5 }
 0x838   :  { %5056 = shalt.err (!%p5053_p7)
}
 0x839   :  { %4079 = dma.vmem_to_hbm [thread:$0]  %s4077_s8, 32, %s6229_s13, [#allocation9]  }
 0x83a   :  { %5057 = dma.done.wait [#allocation9], 32  }
 0x83b   :  { %5058 = vsyncadd [#allocation9], 4294967264 }
 0x83c   :  { %4083 = vsyncpa [#allocation9], 1 }

</bundles_post_ra>
